<compile_context>
chip_gen: v5e
topology: v5e:2x2
jax: 0.10.0
libtpu: 0.0.40
codegen_flags: <defaults>
</compile_context>

<pallas_src>
import functools

import jax
import jax.numpy as jnp
from jax.experimental import pallas as pl
from jax.experimental.pallas import tpu as pltpu

N_SLOTS = 10
N_PAIRS = 25   # pairs per group


# ----------------------------- kernel ---------------------------------------

def main_model_kernel(
    x_ref,                                               # (10, 140, TB) feature-major
    hw1t, hb1, hw2t, hb2,                                # hero layers 1-2
    wf, bf,                                              # fused [hero-L3 | counter-L1a | counter-L1b]
    cw2t, cb2, cw3t, cb3,                                # counter layers 2-3 (L3 cols pre-permuted)
    tw1t, tb1, tw2t, tb2, tw3t, tb3,                     # team MLP (L1 packed, 84 cols)
    fw1at, fw1bt, fb1, fw2t, fb2, fw3t, fb3,             # final MLP (split L1)
    out_ref,                                             # (2, TB)
):
    TB = x_ref.shape[-1]

    def mm(w, a):
        # MXU matmul; activations cast to the (possibly bf16) weight dtype,
        # accumulation stays f32.
        return jnp.dot(w, a.astype(w.dtype), preferred_element_type=jnp.float32)

    def relu(v):
        return jnp.maximum(v, 0.0)

    # ---- hero MLP (L1, L2) + fused [hero | pa | pb] head, per slot ----------
    w1, b1 = hw1t[...], hb1[...]
    w2, b2 = hw2t[...], hb2[...]
    w3, b3 = wf[...], bf[...]
    f_slots = []
    for s in range(N_SLOTS):
        xs = x_ref[s]                                   # (140, TB)
        h = relu(mm(w1, xs) + b1)                       # (32, TB)
        h = relu(mm(w2, h) + b2)                        # (32, TB)
        f_slots.append(mm(w3, h) + b3)                  # (48, TB) = [hero | pa | pb]
    f_all = jnp.stack(f_slots, axis=0)                  # (10, 48, TB)

    hero = f_all[:, 0:16, :]                            # (10, 16, TB)
    pa = f_all[:, 16:32, :]                             # first-position term  (+ counter-L1 bias)
    pb = f_all[:, 32:48, :]                             # second-position term

    # ---- counter stage: 2 groups x 25 pairs as one (50, 16, TB) slab --------
    def group_pre(pa_grp, pb_grp):                      # each (5, 16, TB)
        pre = pa_grp[:, None, :, :] + pb_grp[None, :, :, :]   # (5, 5, 16, TB)
        return pre.reshape(N_PAIRS, 16, TB)             # free leading merge

    pre1 = group_pre(pa[0:5], pb[5:10])                 # group 1: (i in 0..4, j in 5..9)
    pre2 = group_pre(pa[5:10], pb[0:5])                 # group 2: (i in 5..9, j in 0..4)
    h1 = relu(jnp.concatenate([pre1, pre2], axis=0))    # (50, 16, TB)

    cw2b = jnp.broadcast_to(cw2t[...], (2 * N_PAIRS,) + cw2t.shape)
    cw3b = jnp.broadcast_to(cw3t[...], (2 * N_PAIRS,) + cw3t.shape)
    h2 = relu(jnp.einsum('pog,pgb->pob', cw2b, h1.astype(cw2b.dtype),
                         preferred_element_type=jnp.float32) + cb2[...])
    c = jnp.einsum('pog,pgb->pob', cw3b, h2.astype(cw3b.dtype),
                   preferred_element_type=jnp.float32) + cb3[...]    # (50, 8, TB)

    pair_max = jnp.max(c.reshape(2, N_PAIRS, 8, TB), axis=1)         # (2, 8, TB)
    # Columns were permuted offline to [0,2,4,6,1,3,5,7] -> MaxPool2d((1,2)) is:
    pooled = jnp.maximum(pair_max[:, 0:4, :], pair_max[:, 4:8, :])   # (2, 4, TB)

    # ---- team MLP per group (L1 packed over [5x hero | pooled]) -------------
    def team_head(slot_range, pooled_g):
        cat = jnp.concatenate([hero[s] for s in slot_range] + [pooled_g],
                              axis=0)                    # (84, TB)
        t = relu(mm(tw1t[...], cat) + tb1[...])          # (64, TB)
        t = relu(mm(tw2t[...], t) + tb2[...])            # (64, TB)
        return mm(tw3t[...], t) + tb3[...]               # (16, TB)

    team1 = team_head(range(0, 5), pooled[0])
    team2 = team_head(range(5, 10), pooled[1])

    # ---- final MLP (split L1 weights == cat(team1, team2)) ------------------
    f1 = relu(mm(fw1at[...], team1) + mm(fw1bt[...], team2) + fb1[...])
    f2 = relu(mm(fw2t[...], f1) + fb2[...])
    logits = mm(fw3t[...], f2) + fb3[...]                # (2, TB)

    # ---- softmax over the 2 classes (sublane axis) ---------------------------
    m = jnp.max(logits, axis=0, keepdims=True)
    e = jnp.exp(logits - m)
    out_ref[...] = e * pl.reciprocal(jnp.sum(e, axis=0, keepdims=True))


# ------------------------- param preparation ---------------------------------

def _prep_kernel_params(params, use_bf16=False):
    """Transpose / fuse / permute the MLP params for the feature-major kernel."""
    hero_p, counter_p, team_p, final_p = params
    hw1, hb1, hw2, hb2, hw3, hb3 = hero_p
    cw1, cb1, cw2, cb2, cw3, cb3 = counter_p
    tw1, tb1, tw2, tb2, tw3, tb3 = team_p
    fw1, fb1, fw2, fb2, fw3, fb3 = final_p

    def col(b):                                          # (1, n) -> (n, 1) bias column
        return b.reshape(-1, 1)

    # MaxPool2d((1,2)) -> max(rows[:4], rows[4:]) after this column permutation.
    perm = jnp.array([0, 2, 4, 6, 1, 3, 5, 7])
    cw3p = cw3[:, perm]
    cb3p = cb3[:, perm]

    cw1a = cw1[:16]                                      # applies to the first hero
    cw1b = cw1[16:]                                      # applies to the second hero

    # Fused hero-L3 + counter-L1 (feature-major): rows = [hero(16) | pa(16) | pb(16)].
    wf = jnp.concatenate([hw3.T, (hw3 @ cw1a).T, (hw3 @ cw1b).T], axis=0)       # (48, 32)
    bf = jnp.concatenate([col(hb3),
                          col(hb3 @ cw1a + cb1),         # counter-L1 bias folded into pa
                          col(hb3 @ cw1b)], axis=0)      # (48, 1)

    wdt = jnp.bfloat16 if use_bf16 else jnp.float32
    W = lambda w: w.astype(wdt)                          # weights may go bf16 (v6e/v7x)

    return (W(hw1.T), col(hb1), W(hw2.T), col(hb2),
            W(wf), bf,
            W(cw2.T), col(cb2), W(cw3p.T), col(cb3p),
            W(tw1.T), col(tb1), W(tw2.T), col(tb2), W(tw3.T), col(tb3),
            W(fw1[:16].T), W(fw1[16:].T), col(fb1), W(fw2.T), col(fb2),
            W(fw3.T), col(fb3))


# ----------------------------- wrapper ---------------------------------------

def _round_up(n, m):
    return -(-n // m) * m


@functools.partial(jax.jit, static_argnames=("block_b", "use_bf16"))
def main_model_pallas(x, params, *, block_b=256, use_bf16=False):
    """x: (B, 10, 140) float32; params: 4 MLP param tuples in (fan_in, fan_out) layout."""
    B0 = x.shape[0]

    # Batch tile: multiple of 128 (lane width); prefer >= 2 grid steps so the
    # "parallel" batch axis can shard across both v7x TensorCores.
    bp0 = _round_up(max(B0, 128), 128)
    tb = min(block_b, bp0)
    if bp0 >= 256:
        tb = min(tb, bp0 // 2)
    tb = max(128, (tb // 128) * 128)
    Bp = _round_up(B0, tb)
    grid = (Bp // tb,)

    if Bp != B0:
        x = jnp.pad(x, ((0, Bp - B0), (0, 0), (0, 0)))

    # Feature-major input layout: (slot, feature, batch) so batch sits in lanes.
    # TODO(synk): one extra XLA HBM pass; the producer should emit this layout.
    x_fm = jnp.transpose(x, (1, 2, 0))                   # (10, 140, Bp)

    kparams = _prep_kernel_params(params, use_bf16=use_bf16)

    in_specs = [pl.BlockSpec((10, 140, tb), lambda i: (0, 0, i))]
    # Weights/biases: full blocks with constant index maps -> DMA'd once and
    # VMEM-resident across all batch tiles (no per-step re-fetch).
    in_specs += [pl.BlockSpec(p.shape, lambda i: (0, 0)) for p in kparams]
    out_spec = pl.BlockSpec((2, tb), lambda i: (0, i))   # lane-dense output

    out_fm = pl.pallas_call(
        main_model_kernel,
        out_shape=jax.ShapeDtypeStruct((2, Bp), jnp.float32),
        grid=grid,
        in_specs=in_specs,
        out_specs=out_spec,
        compiler_params=pltpu.CompilerParams(
            dimension_semantics=("parallel",),
            vmem_limit_bytes=48 * 1024 * 1024,
        ),
    )(x_fm, *kparams)

    return out_fm.T[:B0]                                 # (B, 2)


# ------------------------- parameter construction ----------------------------

def _init_linear(key, fan_in, fan_out):
    kw, kb = jax.random.split(key)
    bound = 1.0 / jnp.sqrt(float(fan_in))
    w = jax.random.uniform(kw, (fan_in, fan_out), jnp.float32, -bound, bound)
    b = jax.random.uniform(kb, (1, fan_out), jnp.float32, -bound, bound)
    return w, b


def _make_mlp_params(key, d_in, d_hidden, d_out):
    k1, k2, k3 = jax.random.split(key, 3)
    w1, b1 = _init_linear(k1, d_in, d_hidden)
    w2, b2 = _init_linear(k2, d_hidden, d_hidden)
    w3, b3 = _init_linear(k3, d_hidden, d_out)
    return (w1, b1, w2, b2, w3, b3)


# --------------------------- pure-JAX reference -------------------------------

def _mlp3_ref(x, p):
    w1, b1, w2, b2, w3, b3 = p
    h = jax.nn.relu(x @ w1 + b1)
    h = jax.nn.relu(h @ w2 + b2)
    return h @ w3 + b3


def ref_forward(x, params):
    hero_p, counter_p, team_p, final_p = params
    heros = [_mlp3_ref(x[:, h, :], hero_p) for h in range(10)]
    combos = ([(i, j) for i in range(5) for j in range(5, 10)]
              + [(i, j) for i in range(5, 10) for j in range(5)])
    counters = [_mlp3_ref(jnp.concatenate([heros[i], heros[j]], 1), counter_p)
                for (i, j) in combos]
    g1 = jnp.stack(counters[:25], axis=1)   # (B, 25, 8)
    g2 = jnp.stack(counters[25:], axis=1)
    p1 = jnp.max(jnp.maximum(g1[..., 0::2], g1[..., 1::2]), axis=1)   # (B, 4)
    p2 = jnp.max(jnp.maximum(g2[..., 0::2], g2[..., 1::2]), axis=1)
    first = jnp.concatenate(heros[:5] + [p1], axis=1)
    second = jnp.concatenate(heros[5:] + [p2], axis=1)
    o1 = _mlp3_ref(first, team_p)
    o2 = _mlp3_ref(second, team_p)
    logits = _mlp3_ref(jnp.concatenate([o1, o2], axis=1), final_p)
    return jax.nn.softmax(logits, axis=1)


# ------------------------------------ main ------------------------------------

if __name__ == "__main__":
    key = jax.random.PRNGKey(0)
    kx, kh, kc, kt, kf = jax.random.split(key, 5)

    B = 8
    x = jax.random.normal(kx, (B, 10, 140), jnp.float32)

    params = [
        _make_mlp_params(kh, 140, 32, 16),          # hero_model
        _make_mlp_params(kc, 32, 16, 8),            # counter
        _make_mlp_params(kt, 16 * 5 + 4, 64, 16),   # team_model
        _make_mlp_params(kf, 32, 16, 2),            # final_model
    ]

    out = jax.block_until_ready(main_model_pallas(x, params))
    ref = ref_forward(x, params)

    assert out.shape == (B, 2)
    assert jnp.allclose(out, ref, atol=5e-5, rtol=1e-4), (out, ref)
    assert jnp.allclose(jnp.sum(out, axis=1), 1.0, atol=1e-5)

    print("KERNEL_OK")
</pallas_src>

<mosaic_0001>
module attributes {stable_mosaic.version = 11 : i64} {
  func.func @main_model_kernel(%arg0: i32, %arg1: memref<10x140x128xf32, #tpu.memory_space<vmem>>, %arg2: memref<32x140xf32, #tpu.memory_space<vmem>>, %arg3: memref<32x1xf32, #tpu.memory_space<vmem>>, %arg4: memref<32x32xf32, #tpu.memory_space<vmem>>, %arg5: memref<32x1xf32, #tpu.memory_space<vmem>>, %arg6: memref<48x32xf32, #tpu.memory_space<vmem>>, %arg7: memref<48x1xf32, #tpu.memory_space<vmem>>, %arg8: memref<16x16xf32, #tpu.memory_space<vmem>>, %arg9: memref<16x1xf32, #tpu.memory_space<vmem>>, %arg10: memref<8x16xf32, #tpu.memory_space<vmem>>, %arg11: memref<8x1xf32, #tpu.memory_space<vmem>>, %arg12: memref<64x84xf32, #tpu.memory_space<vmem>>, %arg13: memref<64x1xf32, #tpu.memory_space<vmem>>, %arg14: memref<64x64xf32, #tpu.memory_space<vmem>>, %arg15: memref<64x1xf32, #tpu.memory_space<vmem>>, %arg16: memref<16x64xf32, #tpu.memory_space<vmem>>, %arg17: memref<16x1xf32, #tpu.memory_space<vmem>>, %arg18: memref<16x16xf32, #tpu.memory_space<vmem>>, %arg19: memref<16x16xf32, #tpu.memory_space<vmem>>, %arg20: memref<16x1xf32, #tpu.memory_space<vmem>>, %arg21: memref<16x16xf32, #tpu.memory_space<vmem>>, %arg22: memref<16x1xf32, #tpu.memory_space<vmem>>, %arg23: memref<2x16xf32, #tpu.memory_space<vmem>>, %arg24: memref<2x1xf32, #tpu.memory_space<vmem>>, %arg25: memref<2x128xf32, #tpu.memory_space<vmem>>) attributes {dimension_semantics = [#tpu.dimension_semantics<parallel>], iteration_bounds = array<i64: 1>, scalar_prefetch = 0 : i64, scratch_operands = 0 : i64, tpu.core_type = #tpu.core_type<tc>, window_params = [{transform_indices = @transform_0, window_bounds = array<i64: 10, 140, 128>}, {pipeline_mode = #tpu.pipeline_mode<synchronous>, transform_indices = @transform_1, window_bounds = array<i64: 32, 140>}, {pipeline_mode = #tpu.pipeline_mode<synchronous>, transform_indices = @transform_2, window_bounds = array<i64: 32, 1>}, {pipeline_mode = #tpu.pipeline_mode<synchronous>, transform_indices = @transform_3, window_bounds = array<i64: 32, 32>}, {pipeline_mode = #tpu.pipeline_mode<synchronous>, transform_indices = @transform_4, window_bounds = array<i64: 32, 1>}, {pipeline_mode = #tpu.pipeline_mode<synchronous>, transform_indices = @transform_5, window_bounds = array<i64: 48, 32>}, {pipeline_mode = #tpu.pipeline_mode<synchronous>, transform_indices = @transform_6, window_bounds = array<i64: 48, 1>}, {pipeline_mode = #tpu.pipeline_mode<synchronous>, transform_indices = @transform_7, window_bounds = array<i64: 16, 16>}, {pipeline_mode = #tpu.pipeline_mode<synchronous>, transform_indices = @transform_8, window_bounds = array<i64: 16, 1>}, {pipeline_mode = #tpu.pipeline_mode<synchronous>, transform_indices = @transform_9, window_bounds = array<i64: 8, 16>}, {pipeline_mode = #tpu.pipeline_mode<synchronous>, transform_indices = @transform_10, window_bounds = array<i64: 8, 1>}, {pipeline_mode = #tpu.pipeline_mode<synchronous>, transform_indices = @transform_11, window_bounds = array<i64: 64, 84>}, {pipeline_mode = #tpu.pipeline_mode<synchronous>, transform_indices = @transform_12, window_bounds = array<i64: 64, 1>}, {pipeline_mode = #tpu.pipeline_mode<synchronous>, transform_indices = @transform_13, window_bounds = array<i64: 64, 64>}, {pipeline_mode = #tpu.pipeline_mode<synchronous>, transform_indices = @transform_14, window_bounds = array<i64: 64, 1>}, {pipeline_mode = #tpu.pipeline_mode<synchronous>, transform_indices = @transform_15, window_bounds = array<i64: 16, 64>}, {pipeline_mode = #tpu.pipeline_mode<synchronous>, transform_indices = @transform_16, window_bounds = array<i64: 16, 1>}, {pipeline_mode = #tpu.pipeline_mode<synchronous>, transform_indices = @transform_17, window_bounds = array<i64: 16, 16>}, {pipeline_mode = #tpu.pipeline_mode<synchronous>, transform_indices = @transform_18, window_bounds = array<i64: 16, 16>}, {pipeline_mode = #tpu.pipeline_mode<synchronous>, transform_indices = @transform_19, window_bounds = array<i64: 16, 1>}, {pipeline_mode = #tpu.pipeline_mode<synchronous>, transform_indices = @transform_20, window_bounds = array<i64: 16, 16>}, {pipeline_mode = #tpu.pipeline_mode<synchronous>, transform_indices = @transform_21, window_bounds = array<i64: 16, 1>}, {pipeline_mode = #tpu.pipeline_mode<synchronous>, transform_indices = @transform_22, window_bounds = array<i64: 2, 16>}, {pipeline_mode = #tpu.pipeline_mode<synchronous>, transform_indices = @transform_23, window_bounds = array<i64: 2, 1>}, {transform_indices = @transform_24, window_bounds = array<i64: 2, 128>}]} {
    %c0 = arith.constant 0 : index
    %c0_0 = arith.constant 0 : index
    %0 = vector.load %arg2[%c0, %c0_0] : memref<32x140xf32, #tpu.memory_space<vmem>>, vector<32x140xf32>
    %c0_1 = arith.constant 0 : index
    %c0_2 = arith.constant 0 : index
    %1 = vector.load %arg3[%c0_1, %c0_2] : memref<32x1xf32, #tpu.memory_space<vmem>>, vector<32x1xf32>
    %c0_3 = arith.constant 0 : index
    %c0_4 = arith.constant 0 : index
    %2 = vector.load %arg4[%c0_3, %c0_4] : memref<32x32xf32, #tpu.memory_space<vmem>>, vector<32x32xf32>
    %c0_5 = arith.constant 0 : index
    %c0_6 = arith.constant 0 : index
    %3 = vector.load %arg5[%c0_5, %c0_6] : memref<32x1xf32, #tpu.memory_space<vmem>>, vector<32x1xf32>
    %c0_7 = arith.constant 0 : index
    %c0_8 = arith.constant 0 : index
    %4 = vector.load %arg6[%c0_7, %c0_8] : memref<48x32xf32, #tpu.memory_space<vmem>>, vector<48x32xf32>
    %c0_9 = arith.constant 0 : index
    %c0_10 = arith.constant 0 : index
    %5 = vector.load %arg7[%c0_9, %c0_10] : memref<48x1xf32, #tpu.memory_space<vmem>>, vector<48x1xf32>
    %c0_11 = arith.constant 0 : index
    %c0_12 = arith.constant 0 : index
    %c0_13 = arith.constant 0 : index
    %6 = vector.load %arg1[%c0_11, %c0_12, %c0_13] : memref<10x140x128xf32, #tpu.memory_space<vmem>>, vector<1x140x128xf32>
    %7 = vector.shape_cast %6 : vector<1x140x128xf32> to vector<140x128xf32>
    %cst = arith.constant dense<0.000000e+00> : vector<32x128xf32>
    %8 = tpu.matmul %0, %7, %cst {dimension_numbers = #tpu.dot_dimension_numbers<[1], [0], [0], [1], [0, 0, 1, 1], [], []>} : vector<32x140xf32>, vector<140x128xf32>, vector<32x128xf32> -> vector<32x128xf32>
    %9 = vector.broadcast %1 : vector<32x1xf32> to vector<32x128xf32>
    %10 = arith.addf %8, %9 : vector<32x128xf32>
    %cst_14 = arith.constant 0.000000e+00 : f32
    %11 = vector.broadcast %cst_14 : f32 to vector<32x128xf32>
    %12 = arith.maximumf %10, %11 : vector<32x128xf32>
    %cst_15 = arith.constant dense<0.000000e+00> : vector<32x128xf32>
    %13 = tpu.matmul %2, %12, %cst_15 {dimension_numbers = #tpu.dot_dimension_numbers<[1], [0], [0], [1], [0, 0, 1, 1], [], []>} : vector<32x32xf32>, vector<32x128xf32>, vector<32x128xf32> -> vector<32x128xf32>
    %14 = vector.broadcast %3 : vector<32x1xf32> to vector<32x128xf32>
    %15 = arith.addf %13, %14 : vector<32x128xf32>
    %cst_16 = arith.constant 0.000000e+00 : f32
    %16 = vector.broadcast %cst_16 : f32 to vector<32x128xf32>
    %17 = arith.maximumf %15, %16 : vector<32x128xf32>
    %cst_17 = arith.constant dense<0.000000e+00> : vector<48x128xf32>
    %18 = tpu.matmul %4, %17, %cst_17 {dimension_numbers = #tpu.dot_dimension_numbers<[1], [0], [0], [1], [0, 0, 1, 1], [], []>} : vector<48x32xf32>, vector<32x128xf32>, vector<48x128xf32> -> vector<48x128xf32>
    %19 = vector.broadcast %5 : vector<48x1xf32> to vector<48x128xf32>
    %20 = arith.addf %18, %19 : vector<48x128xf32>
    %c1 = arith.constant 1 : index
    %c0_18 = arith.constant 0 : index
    %c0_19 = arith.constant 0 : index
    %21 = vector.load %arg1[%c1, %c0_18, %c0_19] : memref<10x140x128xf32, #tpu.memory_space<vmem>>, vector<1x140x128xf32>
    %22 = vector.shape_cast %21 : vector<1x140x128xf32> to vector<140x128xf32>
    %cst_20 = arith.constant dense<0.000000e+00> : vector<32x128xf32>
    %23 = tpu.matmul %0, %22, %cst_20 {dimension_numbers = #tpu.dot_dimension_numbers<[1], [0], [0], [1], [0, 0, 1, 1], [], []>} : vector<32x140xf32>, vector<140x128xf32>, vector<32x128xf32> -> vector<32x128xf32>
    %24 = vector.broadcast %1 : vector<32x1xf32> to vector<32x128xf32>
    %25 = arith.addf %23, %24 : vector<32x128xf32>
    %cst_21 = arith.constant 0.000000e+00 : f32
    %26 = vector.broadcast %cst_21 : f32 to vector<32x128xf32>
    %27 = arith.maximumf %25, %26 : vector<32x128xf32>
    %cst_22 = arith.constant dense<0.000000e+00> : vector<32x128xf32>
    %28 = tpu.matmul %2, %27, %cst_22 {dimension_numbers = #tpu.dot_dimension_numbers<[1], [0], [0], [1], [0, 0, 1, 1], [], []>} : vector<32x32xf32>, vector<32x128xf32>, vector<32x128xf32> -> vector<32x128xf32>
    %29 = vector.broadcast %3 : vector<32x1xf32> to vector<32x128xf32>
    %30 = arith.addf %28, %29 : vector<32x128xf32>
    %cst_23 = arith.constant 0.000000e+00 : f32
    %31 = vector.broadcast %cst_23 : f32 to vector<32x128xf32>
    %32 = arith.maximumf %30, %31 : vector<32x128xf32>
    %cst_24 = arith.constant dense<0.000000e+00> : vector<48x128xf32>
    %33 = tpu.matmul %4, %32, %cst_24 {dimension_numbers = #tpu.dot_dimension_numbers<[1], [0], [0], [1], [0, 0, 1, 1], [], []>} : vector<48x32xf32>, vector<32x128xf32>, vector<48x128xf32> -> vector<48x128xf32>
    %34 = vector.broadcast %5 : vector<48x1xf32> to vector<48x128xf32>
    %35 = arith.addf %33, %34 : vector<48x128xf32>
    %c2 = arith.constant 2 : index
    %c0_25 = arith.constant 0 : index
    %c0_26 = arith.constant 0 : index
    %36 = vector.load %arg1[%c2, %c0_25, %c0_26] : memref<10x140x128xf32, #tpu.memory_space<vmem>>, vector<1x140x128xf32>
    %37 = vector.shape_cast %36 : vector<1x140x128xf32> to vector<140x128xf32>
    %cst_27 = arith.constant dense<0.000000e+00> : vector<32x128xf32>
    %38 = tpu.matmul %0, %37, %cst_27 {dimension_numbers = #tpu.dot_dimension_numbers<[1], [0], [0], [1], [0, 0, 1, 1], [], []>} : vector<32x140xf32>, vector<140x128xf32>, vector<32x128xf32> -> vector<32x128xf32>
    %39 = vector.broadcast %1 : vector<32x1xf32> to vector<32x128xf32>
    %40 = arith.addf %38, %39 : vector<32x128xf32>
    %cst_28 = arith.constant 0.000000e+00 : f32
    %41 = vector.broadcast %cst_28 : f32 to vector<32x128xf32>
    %42 = arith.maximumf %40, %41 : vector<32x128xf32>
    %cst_29 = arith.constant dense<0.000000e+00> : vector<32x128xf32>
    %43 = tpu.matmul %2, %42, %cst_29 {dimension_numbers = #tpu.dot_dimension_numbers<[1], [0], [0], [1], [0, 0, 1, 1], [], []>} : vector<32x32xf32>, vector<32x128xf32>, vector<32x128xf32> -> vector<32x128xf32>
    %44 = vector.broadcast %3 : vector<32x1xf32> to vector<32x128xf32>
    %45 = arith.addf %43, %44 : vector<32x128xf32>
    %cst_30 = arith.constant 0.000000e+00 : f32
    %46 = vector.broadcast %cst_30 : f32 to vector<32x128xf32>
    %47 = arith.maximumf %45, %46 : vector<32x128xf32>
    %cst_31 = arith.constant dense<0.000000e+00> : vector<48x128xf32>
    %48 = tpu.matmul %4, %47, %cst_31 {dimension_numbers = #tpu.dot_dimension_numbers<[1], [0], [0], [1], [0, 0, 1, 1], [], []>} : vector<48x32xf32>, vector<32x128xf32>, vector<48x128xf32> -> vector<48x128xf32>
    %49 = vector.broadcast %5 : vector<48x1xf32> to vector<48x128xf32>
    %50 = arith.addf %48, %49 : vector<48x128xf32>
    %c3 = arith.constant 3 : index
    %c0_32 = arith.constant 0 : index
    %c0_33 = arith.constant 0 : index
    %51 = vector.load %arg1[%c3, %c0_32, %c0_33] : memref<10x140x128xf32, #tpu.memory_space<vmem>>, vector<1x140x128xf32>
    %52 = vector.shape_cast %51 : vector<1x140x128xf32> to vector<140x128xf32>
    %cst_34 = arith.constant dense<0.000000e+00> : vector<32x128xf32>
    %53 = tpu.matmul %0, %52, %cst_34 {dimension_numbers = #tpu.dot_dimension_numbers<[1], [0], [0], [1], [0, 0, 1, 1], [], []>} : vector<32x140xf32>, vector<140x128xf32>, vector<32x128xf32> -> vector<32x128xf32>
    %54 = vector.broadcast %1 : vector<32x1xf32> to vector<32x128xf32>
    %55 = arith.addf %53, %54 : vector<32x128xf32>
    %cst_35 = arith.constant 0.000000e+00 : f32
    %56 = vector.broadcast %cst_35 : f32 to vector<32x128xf32>
    %57 = arith.maximumf %55, %56 : vector<32x128xf32>
    %cst_36 = arith.constant dense<0.000000e+00> : vector<32x128xf32>
    %58 = tpu.matmul %2, %57, %cst_36 {dimension_numbers = #tpu.dot_dimension_numbers<[1], [0], [0], [1], [0, 0, 1, 1], [], []>} : vector<32x32xf32>, vector<32x128xf32>, vector<32x128xf32> -> vector<32x128xf32>
    %59 = vector.broadcast %3 : vector<32x1xf32> to vector<32x128xf32>
    %60 = arith.addf %58, %59 : vector<32x128xf32>
    %cst_37 = arith.constant 0.000000e+00 : f32
    %61 = vector.broadcast %cst_37 : f32 to vector<32x128xf32>
    %62 = arith.maximumf %60, %61 : vector<32x128xf32>
    %cst_38 = arith.constant dense<0.000000e+00> : vector<48x128xf32>
    %63 = tpu.matmul %4, %62, %cst_38 {dimension_numbers = #tpu.dot_dimension_numbers<[1], [0], [0], [1], [0, 0, 1, 1], [], []>} : vector<48x32xf32>, vector<32x128xf32>, vector<48x128xf32> -> vector<48x128xf32>
    %64 = vector.broadcast %5 : vector<48x1xf32> to vector<48x128xf32>
    %65 = arith.addf %63, %64 : vector<48x128xf32>
    %c4 = arith.constant 4 : index
    %c0_39 = arith.constant 0 : index
    %c0_40 = arith.constant 0 : index
    %66 = vector.load %arg1[%c4, %c0_39, %c0_40] : memref<10x140x128xf32, #tpu.memory_space<vmem>>, vector<1x140x128xf32>
    %67 = vector.shape_cast %66 : vector<1x140x128xf32> to vector<140x128xf32>
    %cst_41 = arith.constant dense<0.000000e+00> : vector<32x128xf32>
    %68 = tpu.matmul %0, %67, %cst_41 {dimension_numbers = #tpu.dot_dimension_numbers<[1], [0], [0], [1], [0, 0, 1, 1], [], []>} : vector<32x140xf32>, vector<140x128xf32>, vector<32x128xf32> -> vector<32x128xf32>
    %69 = vector.broadcast %1 : vector<32x1xf32> to vector<32x128xf32>
    %70 = arith.addf %68, %69 : vector<32x128xf32>
    %cst_42 = arith.constant 0.000000e+00 : f32
    %71 = vector.broadcast %cst_42 : f32 to vector<32x128xf32>
    %72 = arith.maximumf %70, %71 : vector<32x128xf32>
    %cst_43 = arith.constant dense<0.000000e+00> : vector<32x128xf32>
    %73 = tpu.matmul %2, %72, %cst_43 {dimension_numbers = #tpu.dot_dimension_numbers<[1], [0], [0], [1], [0, 0, 1, 1], [], []>} : vector<32x32xf32>, vector<32x128xf32>, vector<32x128xf32> -> vector<32x128xf32>
    %74 = vector.broadcast %3 : vector<32x1xf32> to vector<32x128xf32>
    %75 = arith.addf %73, %74 : vector<32x128xf32>
    %cst_44 = arith.constant 0.000000e+00 : f32
    %76 = vector.broadcast %cst_44 : f32 to vector<32x128xf32>
    %77 = arith.maximumf %75, %76 : vector<32x128xf32>
    %cst_45 = arith.constant dense<0.000000e+00> : vector<48x128xf32>
    %78 = tpu.matmul %4, %77, %cst_45 {dimension_numbers = #tpu.dot_dimension_numbers<[1], [0], [0], [1], [0, 0, 1, 1], [], []>} : vector<48x32xf32>, vector<32x128xf32>, vector<48x128xf32> -> vector<48x128xf32>
    %79 = vector.broadcast %5 : vector<48x1xf32> to vector<48x128xf32>
    %80 = arith.addf %78, %79 : vector<48x128xf32>
    %c5 = arith.constant 5 : index
    %c0_46 = arith.constant 0 : index
    %c0_47 = arith.constant 0 : index
    %81 = vector.load %arg1[%c5, %c0_46, %c0_47] : memref<10x140x128xf32, #tpu.memory_space<vmem>>, vector<1x140x128xf32>
    %82 = vector.shape_cast %81 : vector<1x140x128xf32> to vector<140x128xf32>
    %cst_48 = arith.constant dense<0.000000e+00> : vector<32x128xf32>
    %83 = tpu.matmul %0, %82, %cst_48 {dimension_numbers = #tpu.dot_dimension_numbers<[1], [0], [0], [1], [0, 0, 1, 1], [], []>} : vector<32x140xf32>, vector<140x128xf32>, vector<32x128xf32> -> vector<32x128xf32>
    %84 = vector.broadcast %1 : vector<32x1xf32> to vector<32x128xf32>
    %85 = arith.addf %83, %84 : vector<32x128xf32>
    %cst_49 = arith.constant 0.000000e+00 : f32
    %86 = vector.broadcast %cst_49 : f32 to vector<32x128xf32>
    %87 = arith.maximumf %85, %86 : vector<32x128xf32>
    %cst_50 = arith.constant dense<0.000000e+00> : vector<32x128xf32>
    %88 = tpu.matmul %2, %87, %cst_50 {dimension_numbers = #tpu.dot_dimension_numbers<[1], [0], [0], [1], [0, 0, 1, 1], [], []>} : vector<32x32xf32>, vector<32x128xf32>, vector<32x128xf32> -> vector<32x128xf32>
    %89 = vector.broadcast %3 : vector<32x1xf32> to vector<32x128xf32>
    %90 = arith.addf %88, %89 : vector<32x128xf32>
    %cst_51 = arith.constant 0.000000e+00 : f32
    %91 = vector.broadcast %cst_51 : f32 to vector<32x128xf32>
    %92 = arith.maximumf %90, %91 : vector<32x128xf32>
    %cst_52 = arith.constant dense<0.000000e+00> : vector<48x128xf32>
    %93 = tpu.matmul %4, %92, %cst_52 {dimension_numbers = #tpu.dot_dimension_numbers<[1], [0], [0], [1], [0, 0, 1, 1], [], []>} : vector<48x32xf32>, vector<32x128xf32>, vector<48x128xf32> -> vector<48x128xf32>
    %94 = vector.broadcast %5 : vector<48x1xf32> to vector<48x128xf32>
    %95 = arith.addf %93, %94 : vector<48x128xf32>
    %c6 = arith.constant 6 : index
    %c0_53 = arith.constant 0 : index
    %c0_54 = arith.constant 0 : index
    %96 = vector.load %arg1[%c6, %c0_53, %c0_54] : memref<10x140x128xf32, #tpu.memory_space<vmem>>, vector<1x140x128xf32>
    %97 = vector.shape_cast %96 : vector<1x140x128xf32> to vector<140x128xf32>
    %cst_55 = arith.constant dense<0.000000e+00> : vector<32x128xf32>
    %98 = tpu.matmul %0, %97, %cst_55 {dimension_numbers = #tpu.dot_dimension_numbers<[1], [0], [0], [1], [0, 0, 1, 1], [], []>} : vector<32x140xf32>, vector<140x128xf32>, vector<32x128xf32> -> vector<32x128xf32>
    %99 = vector.broadcast %1 : vector<32x1xf32> to vector<32x128xf32>
    %100 = arith.addf %98, %99 : vector<32x128xf32>
    %cst_56 = arith.constant 0.000000e+00 : f32
    %101 = vector.broadcast %cst_56 : f32 to vector<32x128xf32>
    %102 = arith.maximumf %100, %101 : vector<32x128xf32>
    %cst_57 = arith.constant dense<0.000000e+00> : vector<32x128xf32>
    %103 = tpu.matmul %2, %102, %cst_57 {dimension_numbers = #tpu.dot_dimension_numbers<[1], [0], [0], [1], [0, 0, 1, 1], [], []>} : vector<32x32xf32>, vector<32x128xf32>, vector<32x128xf32> -> vector<32x128xf32>
    %104 = vector.broadcast %3 : vector<32x1xf32> to vector<32x128xf32>
    %105 = arith.addf %103, %104 : vector<32x128xf32>
    %cst_58 = arith.constant 0.000000e+00 : f32
    %106 = vector.broadcast %cst_58 : f32 to vector<32x128xf32>
    %107 = arith.maximumf %105, %106 : vector<32x128xf32>
    %cst_59 = arith.constant dense<0.000000e+00> : vector<48x128xf32>
    %108 = tpu.matmul %4, %107, %cst_59 {dimension_numbers = #tpu.dot_dimension_numbers<[1], [0], [0], [1], [0, 0, 1, 1], [], []>} : vector<48x32xf32>, vector<32x128xf32>, vector<48x128xf32> -> vector<48x128xf32>
    %109 = vector.broadcast %5 : vector<48x1xf32> to vector<48x128xf32>
    %110 = arith.addf %108, %109 : vector<48x128xf32>
    %c7 = arith.constant 7 : index
    %c0_60 = arith.constant 0 : index
    %c0_61 = arith.constant 0 : index
    %111 = vector.load %arg1[%c7, %c0_60, %c0_61] : memref<10x140x128xf32, #tpu.memory_space<vmem>>, vector<1x140x128xf32>
    %112 = vector.shape_cast %111 : vector<1x140x128xf32> to vector<140x128xf32>
    %cst_62 = arith.constant dense<0.000000e+00> : vector<32x128xf32>
    %113 = tpu.matmul %0, %112, %cst_62 {dimension_numbers = #tpu.dot_dimension_numbers<[1], [0], [0], [1], [0, 0, 1, 1], [], []>} : vector<32x140xf32>, vector<140x128xf32>, vector<32x128xf32> -> vector<32x128xf32>
    %114 = vector.broadcast %1 : vector<32x1xf32> to vector<32x128xf32>
    %115 = arith.addf %113, %114 : vector<32x128xf32>
    %cst_63 = arith.constant 0.000000e+00 : f32
    %116 = vector.broadcast %cst_63 : f32 to vector<32x128xf32>
    %117 = arith.maximumf %115, %116 : vector<32x128xf32>
    %cst_64 = arith.constant dense<0.000000e+00> : vector<32x128xf32>
    %118 = tpu.matmul %2, %117, %cst_64 {dimension_numbers = #tpu.dot_dimension_numbers<[1], [0], [0], [1], [0, 0, 1, 1], [], []>} : vector<32x32xf32>, vector<32x128xf32>, vector<32x128xf32> -> vector<32x128xf32>
    %119 = vector.broadcast %3 : vector<32x1xf32> to vector<32x128xf32>
    %120 = arith.addf %118, %119 : vector<32x128xf32>
    %cst_65 = arith.constant 0.000000e+00 : f32
    %121 = vector.broadcast %cst_65 : f32 to vector<32x128xf32>
    %122 = arith.maximumf %120, %121 : vector<32x128xf32>
    %cst_66 = arith.constant dense<0.000000e+00> : vector<48x128xf32>
    %123 = tpu.matmul %4, %122, %cst_66 {dimension_numbers = #tpu.dot_dimension_numbers<[1], [0], [0], [1], [0, 0, 1, 1], [], []>} : vector<48x32xf32>, vector<32x128xf32>, vector<48x128xf32> -> vector<48x128xf32>
    %124 = vector.broadcast %5 : vector<48x1xf32> to vector<48x128xf32>
    %125 = arith.addf %123, %124 : vector<48x128xf32>
    %c8 = arith.constant 8 : index
    %c0_67 = arith.constant 0 : index
    %c0_68 = arith.constant 0 : index
    %126 = vector.load %arg1[%c8, %c0_67, %c0_68] : memref<10x140x128xf32, #tpu.memory_space<vmem>>, vector<1x140x128xf32>
    %127 = vector.shape_cast %126 : vector<1x140x128xf32> to vector<140x128xf32>
    %cst_69 = arith.constant dense<0.000000e+00> : vector<32x128xf32>
    %128 = tpu.matmul %0, %127, %cst_69 {dimension_numbers = #tpu.dot_dimension_numbers<[1], [0], [0], [1], [0, 0, 1, 1], [], []>} : vector<32x140xf32>, vector<140x128xf32>, vector<32x128xf32> -> vector<32x128xf32>
    %129 = vector.broadcast %1 : vector<32x1xf32> to vector<32x128xf32>
    %130 = arith.addf %128, %129 : vector<32x128xf32>
    %cst_70 = arith.constant 0.000000e+00 : f32
    %131 = vector.broadcast %cst_70 : f32 to vector<32x128xf32>
    %132 = arith.maximumf %130, %131 : vector<32x128xf32>
    %cst_71 = arith.constant dense<0.000000e+00> : vector<32x128xf32>
    %133 = tpu.matmul %2, %132, %cst_71 {dimension_numbers = #tpu.dot_dimension_numbers<[1], [0], [0], [1], [0, 0, 1, 1], [], []>} : vector<32x32xf32>, vector<32x128xf32>, vector<32x128xf32> -> vector<32x128xf32>
    %134 = vector.broadcast %3 : vector<32x1xf32> to vector<32x128xf32>
    %135 = arith.addf %133, %134 : vector<32x128xf32>
    %cst_72 = arith.constant 0.000000e+00 : f32
    %136 = vector.broadcast %cst_72 : f32 to vector<32x128xf32>
    %137 = arith.maximumf %135, %136 : vector<32x128xf32>
    %cst_73 = arith.constant dense<0.000000e+00> : vector<48x128xf32>
    %138 = tpu.matmul %4, %137, %cst_73 {dimension_numbers = #tpu.dot_dimension_numbers<[1], [0], [0], [1], [0, 0, 1, 1], [], []>} : vector<48x32xf32>, vector<32x128xf32>, vector<48x128xf32> -> vector<48x128xf32>
    %139 = vector.broadcast %5 : vector<48x1xf32> to vector<48x128xf32>
    %140 = arith.addf %138, %139 : vector<48x128xf32>
    %c9 = arith.constant 9 : index
    %c0_74 = arith.constant 0 : index
    %c0_75 = arith.constant 0 : index
    %141 = vector.load %arg1[%c9, %c0_74, %c0_75] : memref<10x140x128xf32, #tpu.memory_space<vmem>>, vector<1x140x128xf32>
    %142 = vector.shape_cast %141 : vector<1x140x128xf32> to vector<140x128xf32>
    %cst_76 = arith.constant dense<0.000000e+00> : vector<32x128xf32>
    %143 = tpu.matmul %0, %142, %cst_76 {dimension_numbers = #tpu.dot_dimension_numbers<[1], [0], [0], [1], [0, 0, 1, 1], [], []>} : vector<32x140xf32>, vector<140x128xf32>, vector<32x128xf32> -> vector<32x128xf32>
    %144 = vector.broadcast %1 : vector<32x1xf32> to vector<32x128xf32>
    %145 = arith.addf %143, %144 : vector<32x128xf32>
    %cst_77 = arith.constant 0.000000e+00 : f32
    %146 = vector.broadcast %cst_77 : f32 to vector<32x128xf32>
    %147 = arith.maximumf %145, %146 : vector<32x128xf32>
    %cst_78 = arith.constant dense<0.000000e+00> : vector<32x128xf32>
    %148 = tpu.matmul %2, %147, %cst_78 {dimension_numbers = #tpu.dot_dimension_numbers<[1], [0], [0], [1], [0, 0, 1, 1], [], []>} : vector<32x32xf32>, vector<32x128xf32>, vector<32x128xf32> -> vector<32x128xf32>
    %149 = vector.broadcast %3 : vector<32x1xf32> to vector<32x128xf32>
    %150 = arith.addf %148, %149 : vector<32x128xf32>
    %cst_79 = arith.constant 0.000000e+00 : f32
    %151 = vector.broadcast %cst_79 : f32 to vector<32x128xf32>
    %152 = arith.maximumf %150, %151 : vector<32x128xf32>
    %cst_80 = arith.constant dense<0.000000e+00> : vector<48x128xf32>
    %153 = tpu.matmul %4, %152, %cst_80 {dimension_numbers = #tpu.dot_dimension_numbers<[1], [0], [0], [1], [0, 0, 1, 1], [], []>} : vector<48x32xf32>, vector<32x128xf32>, vector<48x128xf32> -> vector<48x128xf32>
    %154 = vector.broadcast %5 : vector<48x1xf32> to vector<48x128xf32>
    %155 = arith.addf %153, %154 : vector<48x128xf32>
    %156 = vector.shape_cast %20 : vector<48x128xf32> to vector<1x48x128xf32>
    %157 = vector.shape_cast %35 : vector<48x128xf32> to vector<1x48x128xf32>
    %158 = vector.shape_cast %50 : vector<48x128xf32> to vector<1x48x128xf32>
    %159 = vector.shape_cast %65 : vector<48x128xf32> to vector<1x48x128xf32>
    %160 = vector.shape_cast %80 : vector<48x128xf32> to vector<1x48x128xf32>
    %161 = vector.shape_cast %95 : vector<48x128xf32> to vector<1x48x128xf32>
    %162 = vector.shape_cast %110 : vector<48x128xf32> to vector<1x48x128xf32>
    %163 = vector.shape_cast %125 : vector<48x128xf32> to vector<1x48x128xf32>
    %164 = vector.shape_cast %140 : vector<48x128xf32> to vector<1x48x128xf32>
    %165 = vector.shape_cast %155 : vector<48x128xf32> to vector<1x48x128xf32>
    %166 = tpu.concatenate %156, %157, %158, %159, %160, %161, %162, %163, %164, %165 in 0 : vector<1x48x128xf32>, vector<1x48x128xf32>, vector<1x48x128xf32>, vector<1x48x128xf32>, vector<1x48x128xf32>, vector<1x48x128xf32>, vector<1x48x128xf32>, vector<1x48x128xf32>, vector<1x48x128xf32>, vector<1x48x128xf32> -> vector<10x48x128xf32>
    %167 = vector.extract_strided_slice %166 {offsets = [0, 0, 0], sizes = [10, 16, 128], strides = [1, 1, 1]} : vector<10x48x128xf32> to vector<10x16x128xf32>
    %168 = vector.extract_strided_slice %166 {offsets = [0, 16, 0], sizes = [10, 16, 128], strides = [1, 1, 1]} : vector<10x48x128xf32> to vector<10x16x128xf32>
    %169 = vector.extract_strided_slice %166 {offsets = [0, 32, 0], sizes = [10, 16, 128], strides = [1, 1, 1]} : vector<10x48x128xf32> to vector<10x16x128xf32>
    %170 = vector.extract_strided_slice %168 {offsets = [0, 0, 0], sizes = [5, 16, 128], strides = [1, 1, 1]} : vector<10x16x128xf32> to vector<5x16x128xf32>
    %171 = vector.extract_strided_slice %169 {offsets = [5, 0, 0], sizes = [5, 16, 128], strides = [1, 1, 1]} : vector<10x16x128xf32> to vector<5x16x128xf32>
    %172 = vector.shape_cast %170 : vector<5x16x128xf32> to vector<5x1x16x128xf32>
    %173 = vector.shape_cast %171 : vector<5x16x128xf32> to vector<1x5x16x128xf32>
    %174 = vector.broadcast %172 : vector<5x1x16x128xf32> to vector<5x5x16x128xf32>
    %175 = vector.broadcast %173 : vector<1x5x16x128xf32> to vector<5x5x16x128xf32>
    %176 = arith.addf %174, %175 : vector<5x5x16x128xf32>
    %177 = vector.shape_cast %176 : vector<5x5x16x128xf32> to vector<25x16x128xf32>
    %178 = vector.extract_strided_slice %168 {offsets = [5, 0, 0], sizes = [5, 16, 128], strides = [1, 1, 1]} : vector<10x16x128xf32> to vector<5x16x128xf32>
    %179 = vector.extract_strided_slice %169 {offsets = [0, 0, 0], sizes = [5, 16, 128], strides = [1, 1, 1]} : vector<10x16x128xf32> to vector<5x16x128xf32>
    %180 = vector.shape_cast %178 : vector<5x16x128xf32> to vector<5x1x16x128xf32>
    %181 = vector.shape_cast %179 : vector<5x16x128xf32> to vector<1x5x16x128xf32>
    %182 = vector.broadcast %180 : vector<5x1x16x128xf32> to vector<5x5x16x128xf32>
    %183 = vector.broadcast %181 : vector<1x5x16x128xf32> to vector<5x5x16x128xf32>
    %184 = arith.addf %182, %183 : vector<5x5x16x128xf32>
    %185 = vector.shape_cast %184 : vector<5x5x16x128xf32> to vector<25x16x128xf32>
    %186 = tpu.concatenate %177, %185 in 0 : vector<25x16x128xf32>, vector<25x16x128xf32> -> vector<50x16x128xf32>
    %cst_81 = arith.constant 0.000000e+00 : f32
    %187 = vector.broadcast %cst_81 : f32 to vector<50x16x128xf32>
    %188 = arith.maximumf %186, %187 : vector<50x16x128xf32>
    %c0_82 = arith.constant 0 : index
    %c0_83 = arith.constant 0 : index
    %189 = vector.load %arg8[%c0_82, %c0_83] : memref<16x16xf32, #tpu.memory_space<vmem>>, vector<16x16xf32>
    %190 = vector.shape_cast %189 : vector<16x16xf32> to vector<1x16x16xf32>
    %191 = vector.broadcast %190 : vector<1x16x16xf32> to vector<50x16x16xf32>
    %c0_84 = arith.constant 0 : index
    %c0_85 = arith.constant 0 : index
    %192 = vector.load %arg10[%c0_84, %c0_85] : memref<8x16xf32, #tpu.memory_space<vmem>>, vector<8x16xf32>
    %193 = vector.shape_cast %192 : vector<8x16xf32> to vector<1x8x16xf32>
    %194 = vector.broadcast %193 : vector<1x8x16xf32> to vector<50x8x16xf32>
    "tpu.trace_start"() <{level = 10 : i32, message = "pog,pgb->pob"}> : () -> ()
    %cst_86 = arith.constant dense<0.000000e+00> : vector<50x16x128xf32>
    %195 = tpu.matmul %191, %188, %cst_86 {dimension_numbers = #tpu.dot_dimension_numbers<[2], [1], [1], [2], [0, 0, 0, 1, 1, 2], [0], [0]>} : vector<50x16x16xf32>, vector<50x16x128xf32>, vector<50x16x128xf32> -> vector<50x16x128xf32>
    "tpu.trace_stop"() : () -> ()
    %c0_87 = arith.constant 0 : index
    %c0_88 = arith.constant 0 : index
    %196 = vector.load %arg9[%c0_87, %c0_88] : memref<16x1xf32, #tpu.memory_space<vmem>>, vector<16x1xf32>
    %197 = vector.shape_cast %196 : vector<16x1xf32> to vector<1x16x1xf32>
    %198 = vector.broadcast %197 : vector<1x16x1xf32> to vector<50x16x128xf32>
    %199 = arith.addf %195, %198 : vector<50x16x128xf32>
    %cst_89 = arith.constant 0.000000e+00 : f32
    %200 = vector.broadcast %cst_89 : f32 to vector<50x16x128xf32>
    %201 = arith.maximumf %199, %200 : vector<50x16x128xf32>
    "tpu.trace_start"() <{level = 10 : i32, message = "pog,pgb->pob"}> : () -> ()
    %cst_90 = arith.constant dense<0.000000e+00> : vector<50x8x128xf32>
    %202 = tpu.matmul %194, %201, %cst_90 {dimension_numbers = #tpu.dot_dimension_numbers<[2], [1], [1], [2], [0, 0, 0, 1, 1, 2], [0], [0]>} : vector<50x8x16xf32>, vector<50x16x128xf32>, vector<50x8x128xf32> -> vector<50x8x128xf32>
    "tpu.trace_stop"() : () -> ()
    %c0_91 = arith.constant 0 : index
    %c0_92 = arith.constant 0 : index
    %203 = vector.load %arg11[%c0_91, %c0_92] : memref<8x1xf32, #tpu.memory_space<vmem>>, vector<8x1xf32>
    %204 = vector.shape_cast %203 : vector<8x1xf32> to vector<1x8x1xf32>
    %205 = vector.broadcast %204 : vector<1x8x1xf32> to vector<50x8x128xf32>
    %206 = arith.addf %202, %205 : vector<50x8x128xf32>
    %207 = vector.shape_cast %206 : vector<50x8x128xf32> to vector<2x25x8x128xf32>
    %cst_93 = arith.constant dense<0xFF800000> : vector<2x8x128xf32>
    %208 = vector.multi_reduction <maximumf>, %207, %cst_93 [1] : vector<2x25x8x128xf32> to vector<2x8x128xf32>
    %209 = vector.extract_strided_slice %208 {offsets = [0, 0, 0], sizes = [2, 4, 128], strides = [1, 1, 1]} : vector<2x8x128xf32> to vector<2x4x128xf32>
    %210 = vector.extract_strided_slice %208 {offsets = [0, 4, 0], sizes = [2, 4, 128], strides = [1, 1, 1]} : vector<2x8x128xf32> to vector<2x4x128xf32>
    %211 = arith.maximumf %209, %210 : vector<2x4x128xf32>
    %212 = vector.extract_strided_slice %211 {offsets = [0, 0, 0], sizes = [1, 4, 128], strides = [1, 1, 1]} : vector<2x4x128xf32> to vector<1x4x128xf32>
    %213 = vector.shape_cast %212 : vector<1x4x128xf32> to vector<4x128xf32>
    %214 = vector.extract_strided_slice %167 {offsets = [0, 0, 0], sizes = [1, 16, 128], strides = [1, 1, 1]} : vector<10x16x128xf32> to vector<1x16x128xf32>
    %215 = vector.shape_cast %214 : vector<1x16x128xf32> to vector<16x128xf32>
    %216 = vector.extract_strided_slice %167 {offsets = [1, 0, 0], sizes = [1, 16, 128], strides = [1, 1, 1]} : vector<10x16x128xf32> to vector<1x16x128xf32>
    %217 = vector.shape_cast %216 : vector<1x16x128xf32> to vector<16x128xf32>
    %218 = vector.extract_strided_slice %167 {offsets = [2, 0, 0], sizes = [1, 16, 128], strides = [1, 1, 1]} : vector<10x16x128xf32> to vector<1x16x128xf32>
    %219 = vector.shape_cast %218 : vector<1x16x128xf32> to vector<16x128xf32>
    %220 = vector.extract_strided_slice %167 {offsets = [3, 0, 0], sizes = [1, 16, 128], strides = [1, 1, 1]} : vector<10x16x128xf32> to vector<1x16x128xf32>
    %221 = vector.shape_cast %220 : vector<1x16x128xf32> to vector<16x128xf32>
    %222 = vector.extract_strided_slice %167 {offsets = [4, 0, 0], sizes = [1, 16, 128], strides = [1, 1, 1]} : vector<10x16x128xf32> to vector<1x16x128xf32>
    %223 = vector.shape_cast %222 : vector<1x16x128xf32> to vector<16x128xf32>
    %224 = tpu.concatenate %215, %217, %219, %221, %223, %213 in 0 : vector<16x128xf32>, vector<16x128xf32>, vector<16x128xf32>, vector<16x128xf32>, vector<16x128xf32>, vector<4x128xf32> -> vector<84x128xf32>
    %c0_94 = arith.constant 0 : index
    %c0_95 = arith.constant 0 : index
    %225 = vector.load %arg12[%c0_94, %c0_95] : memref<64x84xf32, #tpu.memory_space<vmem>>, vector<64x84xf32>
    %cst_96 = arith.constant dense<0.000000e+00> : vector<64x128xf32>
    %226 = tpu.matmul %225, %224, %cst_96 {dimension_numbers = #tpu.dot_dimension_numbers<[1], [0], [0], [1], [0, 0, 1, 1], [], []>} : vector<64x84xf32>, vector<84x128xf32>, vector<64x128xf32> -> vector<64x128xf32>
    %c0_97 = arith.constant 0 : index
    %c0_98 = arith.constant 0 : index
    %227 = vector.load %arg13[%c0_97, %c0_98] : memref<64x1xf32, #tpu.memory_space<vmem>>, vector<64x1xf32>
    %228 = vector.broadcast %227 : vector<64x1xf32> to vector<64x128xf32>
    %229 = arith.addf %226, %228 : vector<64x128xf32>
    %cst_99 = arith.constant 0.000000e+00 : f32
    %230 = vector.broadcast %cst_99 : f32 to vector<64x128xf32>
    %231 = arith.maximumf %229, %230 : vector<64x128xf32>
    %c0_100 = arith.constant 0 : index
    %c0_101 = arith.constant 0 : index
    %232 = vector.load %arg14[%c0_100, %c0_101] : memref<64x64xf32, #tpu.memory_space<vmem>>, vector<64x64xf32>
    %cst_102 = arith.constant dense<0.000000e+00> : vector<64x128xf32>
    %233 = tpu.matmul %232, %231, %cst_102 {dimension_numbers = #tpu.dot_dimension_numbers<[1], [0], [0], [1], [0, 0, 1, 1], [], []>} : vector<64x64xf32>, vector<64x128xf32>, vector<64x128xf32> -> vector<64x128xf32>
    %c0_103 = arith.constant 0 : index
    %c0_104 = arith.constant 0 : index
    %234 = vector.load %arg15[%c0_103, %c0_104] : memref<64x1xf32, #tpu.memory_space<vmem>>, vector<64x1xf32>
    %235 = vector.broadcast %234 : vector<64x1xf32> to vector<64x128xf32>
    %236 = arith.addf %233, %235 : vector<64x128xf32>
    %cst_105 = arith.constant 0.000000e+00 : f32
    %237 = vector.broadcast %cst_105 : f32 to vector<64x128xf32>
    %238 = arith.maximumf %236, %237 : vector<64x128xf32>
    %c0_106 = arith.constant 0 : index
    %c0_107 = arith.constant 0 : index
    %239 = vector.load %arg16[%c0_106, %c0_107] : memref<16x64xf32, #tpu.memory_space<vmem>>, vector<16x64xf32>
    %cst_108 = arith.constant dense<0.000000e+00> : vector<16x128xf32>
    %240 = tpu.matmul %239, %238, %cst_108 {dimension_numbers = #tpu.dot_dimension_numbers<[1], [0], [0], [1], [0, 0, 1, 1], [], []>} : vector<16x64xf32>, vector<64x128xf32>, vector<16x128xf32> -> vector<16x128xf32>
    %c0_109 = arith.constant 0 : index
    %c0_110 = arith.constant 0 : index
    %241 = vector.load %arg17[%c0_109, %c0_110] : memref<16x1xf32, #tpu.memory_space<vmem>>, vector<16x1xf32>
    %242 = vector.broadcast %241 : vector<16x1xf32> to vector<16x128xf32>
    %243 = arith.addf %240, %242 : vector<16x128xf32>
    %244 = vector.extract_strided_slice %211 {offsets = [1, 0, 0], sizes = [1, 4, 128], strides = [1, 1, 1]} : vector<2x4x128xf32> to vector<1x4x128xf32>
    %245 = vector.shape_cast %244 : vector<1x4x128xf32> to vector<4x128xf32>
    %246 = vector.extract_strided_slice %167 {offsets = [5, 0, 0], sizes = [1, 16, 128], strides = [1, 1, 1]} : vector<10x16x128xf32> to vector<1x16x128xf32>
    %247 = vector.shape_cast %246 : vector<1x16x128xf32> to vector<16x128xf32>
    %248 = vector.extract_strided_slice %167 {offsets = [6, 0, 0], sizes = [1, 16, 128], strides = [1, 1, 1]} : vector<10x16x128xf32> to vector<1x16x128xf32>
    %249 = vector.shape_cast %248 : vector<1x16x128xf32> to vector<16x128xf32>
    %250 = vector.extract_strided_slice %167 {offsets = [7, 0, 0], sizes = [1, 16, 128], strides = [1, 1, 1]} : vector<10x16x128xf32> to vector<1x16x128xf32>
    %251 = vector.shape_cast %250 : vector<1x16x128xf32> to vector<16x128xf32>
    %252 = vector.extract_strided_slice %167 {offsets = [8, 0, 0], sizes = [1, 16, 128], strides = [1, 1, 1]} : vector<10x16x128xf32> to vector<1x16x128xf32>
    %253 = vector.shape_cast %252 : vector<1x16x128xf32> to vector<16x128xf32>
    %254 = vector.extract_strided_slice %167 {offsets = [9, 0, 0], sizes = [1, 16, 128], strides = [1, 1, 1]} : vector<10x16x128xf32> to vector<1x16x128xf32>
    %255 = vector.shape_cast %254 : vector<1x16x128xf32> to vector<16x128xf32>
    %256 = tpu.concatenate %247, %249, %251, %253, %255, %245 in 0 : vector<16x128xf32>, vector<16x128xf32>, vector<16x128xf32>, vector<16x128xf32>, vector<16x128xf32>, vector<4x128xf32> -> vector<84x128xf32>
    %c0_111 = arith.constant 0 : index
    %c0_112 = arith.constant 0 : index
    %257 = vector.load %arg12[%c0_111, %c0_112] : memref<64x84xf32, #tpu.memory_space<vmem>>, vector<64x84xf32>
    %cst_113 = arith.constant dense<0.000000e+00> : vector<64x128xf32>
    %258 = tpu.matmul %257, %256, %cst_113 {dimension_numbers = #tpu.dot_dimension_numbers<[1], [0], [0], [1], [0, 0, 1, 1], [], []>} : vector<64x84xf32>, vector<84x128xf32>, vector<64x128xf32> -> vector<64x128xf32>
    %c0_114 = arith.constant 0 : index
    %c0_115 = arith.constant 0 : index
    %259 = vector.load %arg13[%c0_114, %c0_115] : memref<64x1xf32, #tpu.memory_space<vmem>>, vector<64x1xf32>
    %260 = vector.broadcast %259 : vector<64x1xf32> to vector<64x128xf32>
    %261 = arith.addf %258, %260 : vector<64x128xf32>
    %cst_116 = arith.constant 0.000000e+00 : f32
    %262 = vector.broadcast %cst_116 : f32 to vector<64x128xf32>
    %263 = arith.maximumf %261, %262 : vector<64x128xf32>
    %c0_117 = arith.constant 0 : index
    %c0_118 = arith.constant 0 : index
    %264 = vector.load %arg14[%c0_117, %c0_118] : memref<64x64xf32, #tpu.memory_space<vmem>>, vector<64x64xf32>
    %cst_119 = arith.constant dense<0.000000e+00> : vector<64x128xf32>
    %265 = tpu.matmul %264, %263, %cst_119 {dimension_numbers = #tpu.dot_dimension_numbers<[1], [0], [0], [1], [0, 0, 1, 1], [], []>} : vector<64x64xf32>, vector<64x128xf32>, vector<64x128xf32> -> vector<64x128xf32>
    %c0_120 = arith.constant 0 : index
    %c0_121 = arith.constant 0 : index
    %266 = vector.load %arg15[%c0_120, %c0_121] : memref<64x1xf32, #tpu.memory_space<vmem>>, vector<64x1xf32>
    %267 = vector.broadcast %266 : vector<64x1xf32> to vector<64x128xf32>
    %268 = arith.addf %265, %267 : vector<64x128xf32>
    %cst_122 = arith.constant 0.000000e+00 : f32
    %269 = vector.broadcast %cst_122 : f32 to vector<64x128xf32>
    %270 = arith.maximumf %268, %269 : vector<64x128xf32>
    %c0_123 = arith.constant 0 : index
    %c0_124 = arith.constant 0 : index
    %271 = vector.load %arg16[%c0_123, %c0_124] : memref<16x64xf32, #tpu.memory_space<vmem>>, vector<16x64xf32>
    %cst_125 = arith.constant dense<0.000000e+00> : vector<16x128xf32>
    %272 = tpu.matmul %271, %270, %cst_125 {dimension_numbers = #tpu.dot_dimension_numbers<[1], [0], [0], [1], [0, 0, 1, 1], [], []>} : vector<16x64xf32>, vector<64x128xf32>, vector<16x128xf32> -> vector<16x128xf32>
    %c0_126 = arith.constant 0 : index
    %c0_127 = arith.constant 0 : index
    %273 = vector.load %arg17[%c0_126, %c0_127] : memref<16x1xf32, #tpu.memory_space<vmem>>, vector<16x1xf32>
    %274 = vector.broadcast %273 : vector<16x1xf32> to vector<16x128xf32>
    %275 = arith.addf %272, %274 : vector<16x128xf32>
    %c0_128 = arith.constant 0 : index
    %c0_129 = arith.constant 0 : index
    %276 = vector.load %arg18[%c0_128, %c0_129] : memref<16x16xf32, #tpu.memory_space<vmem>>, vector<16x16xf32>
    %cst_130 = arith.constant dense<0.000000e+00> : vector<16x128xf32>
    %277 = tpu.matmul %276, %243, %cst_130 {dimension_numbers = #tpu.dot_dimension_numbers<[1], [0], [0], [1], [0, 0, 1, 1], [], []>} : vector<16x16xf32>, vector<16x128xf32>, vector<16x128xf32> -> vector<16x128xf32>
    %c0_131 = arith.constant 0 : index
    %c0_132 = arith.constant 0 : index
    %278 = vector.load %arg19[%c0_131, %c0_132] : memref<16x16xf32, #tpu.memory_space<vmem>>, vector<16x16xf32>
    %cst_133 = arith.constant dense<0.000000e+00> : vector<16x128xf32>
    %279 = tpu.matmul %278, %275, %cst_133 {dimension_numbers = #tpu.dot_dimension_numbers<[1], [0], [0], [1], [0, 0, 1, 1], [], []>} : vector<16x16xf32>, vector<16x128xf32>, vector<16x128xf32> -> vector<16x128xf32>
    %280 = arith.addf %277, %279 : vector<16x128xf32>
    %c0_134 = arith.constant 0 : index
    %c0_135 = arith.constant 0 : index
    %281 = vector.load %arg20[%c0_134, %c0_135] : memref<16x1xf32, #tpu.memory_space<vmem>>, vector<16x1xf32>
    %282 = vector.broadcast %281 : vector<16x1xf32> to vector<16x128xf32>
    %283 = arith.addf %280, %282 : vector<16x128xf32>
    %cst_136 = arith.constant 0.000000e+00 : f32
    %284 = vector.broadcast %cst_136 : f32 to vector<16x128xf32>
    %285 = arith.maximumf %283, %284 : vector<16x128xf32>
    %c0_137 = arith.constant 0 : index
    %c0_138 = arith.constant 0 : index
    %286 = vector.load %arg21[%c0_137, %c0_138] : memref<16x16xf32, #tpu.memory_space<vmem>>, vector<16x16xf32>
    %cst_139 = arith.constant dense<0.000000e+00> : vector<16x128xf32>
    %287 = tpu.matmul %286, %285, %cst_139 {dimension_numbers = #tpu.dot_dimension_numbers<[1], [0], [0], [1], [0, 0, 1, 1], [], []>} : vector<16x16xf32>, vector<16x128xf32>, vector<16x128xf32> -> vector<16x128xf32>
    %c0_140 = arith.constant 0 : index
    %c0_141 = arith.constant 0 : index
    %288 = vector.load %arg22[%c0_140, %c0_141] : memref<16x1xf32, #tpu.memory_space<vmem>>, vector<16x1xf32>
    %289 = vector.broadcast %288 : vector<16x1xf32> to vector<16x128xf32>
    %290 = arith.addf %287, %289 : vector<16x128xf32>
    %cst_142 = arith.constant 0.000000e+00 : f32
    %291 = vector.broadcast %cst_142 : f32 to vector<16x128xf32>
    %292 = arith.maximumf %290, %291 : vector<16x128xf32>
    %c0_143 = arith.constant 0 : index
    %c0_144 = arith.constant 0 : index
    %293 = vector.load %arg23[%c0_143, %c0_144] : memref<2x16xf32, #tpu.memory_space<vmem>>, vector<2x16xf32>
    %cst_145 = arith.constant dense<0.000000e+00> : vector<2x128xf32>
    %294 = tpu.matmul %293, %292, %cst_145 {dimension_numbers = #tpu.dot_dimension_numbers<[1], [0], [0], [1], [0, 0, 1, 1], [], []>} : vector<2x16xf32>, vector<16x128xf32>, vector<2x128xf32> -> vector<2x128xf32>
    %c0_146 = arith.constant 0 : index
    %c0_147 = arith.constant 0 : index
    %295 = vector.load %arg24[%c0_146, %c0_147] : memref<2x1xf32, #tpu.memory_space<vmem>>, vector<2x1xf32>
    %296 = vector.broadcast %295 : vector<2x1xf32> to vector<2x128xf32>
    %297 = arith.addf %294, %296 : vector<2x128xf32>
    %cst_148 = arith.constant dense<0xFF800000> : vector<128xf32>
    %298 = vector.multi_reduction <maximumf>, %297, %cst_148 [0] : vector<2x128xf32> to vector<128xf32>
    %299 = vector.shape_cast %298 : vector<128xf32> to vector<1x128xf32>
    %300 = vector.broadcast %299 : vector<1x128xf32> to vector<2x128xf32>
    %301 = arith.subf %297, %300 : vector<2x128xf32>
    %302 = math.exp %301 : vector<2x128xf32>
    %cst_149 = arith.constant dense<0.000000e+00> : vector<128xf32>
    %303 = vector.multi_reduction <add>, %302, %cst_149 [0] : vector<2x128xf32> to vector<128xf32>
    %304 = vector.shape_cast %303 : vector<128xf32> to vector<1x128xf32>
    %305 = tpu.reciprocal %304 : vector<1x128xf32> -> vector<1x128xf32>
    %306 = vector.broadcast %305 : vector<1x128xf32> to vector<2x128xf32>
    %307 = arith.mulf %302, %306 : vector<2x128xf32>
    %c0_150 = arith.constant 0 : index
    %c0_151 = arith.constant 0 : index
    %308 = vector.load %arg25[%c0_150, %c0_151] : memref<2x128xf32, #tpu.memory_space<vmem>>, vector<2x128xf32>
    tpu.vector_store %arg25[%c0_150, %c0_151], %307 {strides = array<i32>} : memref<2x128xf32, #tpu.memory_space<vmem>>, vector<2x128xf32>,
    return
  }
  func.func @transform_0(%arg0: i32) -> (i32, i32, i32) {
    %c0_i32 = arith.constant 0 : i32
    %c0_i32_0 = arith.constant 0 : i32
    %c0_i32_1 = arith.constant 0 : i32
    return %c0_i32, %c0_i32_0, %arg0 : i32, i32, i32
  }
  func.func @transform_1(%arg0: i32) -> (i32, i32) {
    %c0_i32 = arith.constant 0 : i32
    %c0_i32_0 = arith.constant 0 : i32
    %c0_i32_1 = arith.constant 0 : i32
    return %c0_i32, %c0_i32_0 : i32, i32
  }
  func.func @transform_2(%arg0: i32) -> (i32, i32) {
    %c0_i32 = arith.constant 0 : i32
    %c0_i32_0 = arith.constant 0 : i32
    %c0_i32_1 = arith.constant 0 : i32
    return %c0_i32, %c0_i32_0 : i32, i32
  }
  func.func @transform_3(%arg0: i32) -> (i32, i32) {
    %c0_i32 = arith.constant 0 : i32
    %c0_i32_0 = arith.constant 0 : i32
    %c0_i32_1 = arith.constant 0 : i32
    return %c0_i32, %c0_i32_0 : i32, i32
  }
  func.func @transform_4(%arg0: i32) -> (i32, i32) {
    %c0_i32 = arith.constant 0 : i32
    %c0_i32_0 = arith.constant 0 : i32
    %c0_i32_1 = arith.constant 0 : i32
    return %c0_i32, %c0_i32_0 : i32, i32
  }
  func.func @transform_5(%arg0: i32) -> (i32, i32) {
    %c0_i32 = arith.constant 0 : i32
    %c0_i32_0 = arith.constant 0 : i32
    %c0_i32_1 = arith.constant 0 : i32
    return %c0_i32, %c0_i32_0 : i32, i32
  }
  func.func @transform_6(%arg0: i32) -> (i32, i32) {
    %c0_i32 = arith.constant 0 : i32
    %c0_i32_0 = arith.constant 0 : i32
    %c0_i32_1 = arith.constant 0 : i32
    return %c0_i32, %c0_i32_0 : i32, i32
  }
  func.func @transform_7(%arg0: i32) -> (i32, i32) {
    %c0_i32 = arith.constant 0 : i32
    %c0_i32_0 = arith.constant 0 : i32
    %c0_i32_1 = arith.constant 0 : i32
    return %c0_i32, %c0_i32_0 : i32, i32
  }
  func.func @transform_8(%arg0: i32) -> (i32, i32) {
    %c0_i32 = arith.constant 0 : i32
    %c0_i32_0 = arith.constant 0 : i32
    %c0_i32_1 = arith.constant 0 : i32
    return %c0_i32, %c0_i32_0 : i32, i32
  }
  func.func @transform_9(%arg0: i32) -> (i32, i32) {
    %c0_i32 = arith.constant 0 : i32
    %c0_i32_0 = arith.constant 0 : i32
    %c0_i32_1 = arith.constant 0 : i32
    return %c0_i32, %c0_i32_0 : i32, i32
  }
  func.func @transform_10(%arg0: i32) -> (i32, i32) {
    %c0_i32 = arith.constant 0 : i32
    %c0_i32_0 = arith.constant 0 : i32
    %c0_i32_1 = arith.constant 0 : i32
    return %c0_i32, %c0_i32_0 : i32, i32
  }
  func.func @transform_11(%arg0: i32) -> (i32, i32) {
    %c0_i32 = arith.constant 0 : i32
    %c0_i32_0 = arith.constant 0 : i32
    %c0_i32_1 = arith.constant 0 : i32
    return %c0_i32, %c0_i32_0 : i32, i32
  }
  func.func @transform_12(%arg0: i32) -> (i32, i32) {
    %c0_i32 = arith.constant 0 : i32
    %c0_i32_0 = arith.constant 0 : i32
    %c0_i32_1 = arith.constant 0 : i32
    return %c0_i32, %c0_i32_0 : i32, i32
  }
  func.func @transform_13(%arg0: i32) -> (i32, i32) {
    %c0_i32 = arith.constant 0 : i32
    %c0_i32_0 = arith.constant 0 : i32
    %c0_i32_1 = arith.constant 0 : i32
    return %c0_i32, %c0_i32_0 : i32, i32
  }
  func.func @transform_14(%arg0: i32) -> (i32, i32) {
    %c0_i32 = arith.constant 0 : i32
    %c0_i32_0 = arith.constant 0 : i32
    %c0_i32_1 = arith.constant 0 : i32
    return %c0_i32, %c0_i32_0 : i32, i32
  }
  func.func @transform_15(%arg0: i32) -> (i32, i32) {
    %c0_i32 = arith.constant 0 : i32
    %c0_i32_0 = arith.constant 0 : i32
    %c0_i32_1 = arith.constant 0 : i32
    return %c0_i32, %c0_i32_0 : i32, i32
  }
  func.func @transform_16(%arg0: i32) -> (i32, i32) {
    %c0_i32 = arith.constant 0 : i32
    %c0_i32_0 = arith.constant 0 : i32
    %c0_i32_1 = arith.constant 0 : i32
    return %c0_i32, %c0_i32_0 : i32, i32
  }
  func.func @transform_17(%arg0: i32) -> (i32, i32) {
    %c0_i32 = arith.constant 0 : i32
    %c0_i32_0 = arith.constant 0 : i32
    %c0_i32_1 = arith.constant 0 : i32
    return %c0_i32, %c0_i32_0 : i32, i32
  }
  func.func @transform_18(%arg0: i32) -> (i32, i32) {
    %c0_i32 = arith.constant 0 : i32
    %c0_i32_0 = arith.constant 0 : i32
    %c0_i32_1 = arith.constant 0 : i32
    return %c0_i32, %c0_i32_0 : i32, i32
  }
  func.func @transform_19(%arg0: i32) -> (i32, i32) {
    %c0_i32 = arith.constant 0 : i32
    %c0_i32_0 = arith.constant 0 : i32
    %c0_i32_1 = arith.constant 0 : i32
    return %c0_i32, %c0_i32_0 : i32, i32
  }
  func.func @transform_20(%arg0: i32) -> (i32, i32) {
    %c0_i32 = arith.constant 0 : i32
    %c0_i32_0 = arith.constant 0 : i32
    %c0_i32_1 = arith.constant 0 : i32
    return %c0_i32, %c0_i32_0 : i32, i32
  }
  func.func @transform_21(%arg0: i32) -> (i32, i32) {
    %c0_i32 = arith.constant 0 : i32
    %c0_i32_0 = arith.constant 0 : i32
    %c0_i32_1 = arith.constant 0 : i32
    return %c0_i32, %c0_i32_0 : i32, i32
  }
  func.func @transform_22(%arg0: i32) -> (i32, i32) {
    %c0_i32 = arith.constant 0 : i32
    %c0_i32_0 = arith.constant 0 : i32
    %c0_i32_1 = arith.constant 0 : i32
    return %c0_i32, %c0_i32_0 : i32, i32
  }
  func.func @transform_23(%arg0: i32) -> (i32, i32) {
    %c0_i32 = arith.constant 0 : i32
    %c0_i32_0 = arith.constant 0 : i32
    %c0_i32_1 = arith.constant 0 : i32
    return %c0_i32, %c0_i32_0 : i32, i32
  }
  func.func @transform_24(%arg0: i32) -> (i32, i32) {
    %c0_i32 = arith.constant 0 : i32
    %c0_i32_0 = arith.constant 0 : i32
    return %c0_i32, %arg0 : i32, i32
  }
}

</mosaic_0001>

<bundles_post_ra>
// kernel: main_model_pallas.1
= control target key start
LH: loop header
LB: loop body
LE: loop exit
PB: predicated region body
PF: predicated region fallthrough
CT: control target
= control target key end

     0   :  { %s8201_s0 = inlined_call_operand.vmem [shape: f32[10,140,128], index: 0, kind: input, shape index: {}]   ;;  %s8202_s1 = inlined_call_operand.vmem [shape: f32[32,140], index: 1, kind: input, shape index: {}]   ;;  %s8203_s2 = inlined_call_operand.vmem [shape: f32[32,1], index: 2, kind: input, shape index: {}]   ;;  %s8204_s3 = inlined_call_operand.vmem [shape: f32[32,32], index: 3, kind: input, shape index: {}]   ;;  %s8205_s4 = inlined_call_operand.vmem [shape: f32[32,1], index: 4, kind: input, shape index: {}]   ;;  %s8206_s5 = inlined_call_operand.vmem [shape: f32[48,32], index: 5, kind: input, shape index: {}]   ;;  %s8207_s6 = inlined_call_operand.vmem [shape: f32[48,1], index: 6, kind: input, shape index: {}]   ;;  %s8208_s7 = inlined_call_operand.vmem [shape: f32[16,16], index: 7, kind: input, shape index: {}]   ;;  %s8209_s8 = inlined_call_operand.vmem [shape: f32[16,1], index: 8, kind: input, shape index: {}]   ;;  %s8210_s9 = inlined_call_operand.vmem [shape: f32[8,16], index: 9, kind: input, shape index: {}]   ;;  %s8211_s10 = inlined_call_operand.vmem [shape: f32[8,1], index: 10, kind: input, shape index: {}]   ;;  %s8212_s11 = inlined_call_operand.vmem [shape: f32[64,84], index: 11, kind: input, shape index: {}]   ;;  %s8213_s12 = inlined_call_operand.vmem [shape: f32[64,1], index: 12, kind: input, shape index: {}]   ;;  %s8214_s13 = inlined_call_operand.vmem [shape: f32[64,64], index: 13, kind: input, shape index: {}]   ;;  %s8215_s14 = inlined_call_operand.vmem [shape: f32[64,1], index: 14, kind: input, shape index: {}]   ;;  %s8216_s15 = inlined_call_operand.vmem [shape: f32[16,64], index: 15, kind: input, shape index: {}]   ;;  %s8217_s16 = inlined_call_operand.vmem [shape: f32[16,1], index: 16, kind: input, shape index: {}]   ;;  %s8218_s17 = inlined_call_operand.vmem [shape: f32[16,16], index: 17, kind: input, shape index: {}]   ;;  %s8219_s18 = inlined_call_operand.vmem [shape: f32[16,16], index: 18, kind: input, shape index: {}]   ;;  %s8220_s19 = inlined_call_operand.vmem [shape: f32[16,1], index: 19, kind: input, shape index: {}]   ;;  %s8221_s20 = inlined_call_operand.vmem [shape: f32[16,16], index: 20, kind: input, shape index: {}]   ;;  %s8222_s21 = inlined_call_operand.vmem [shape: f32[16,1], index: 21, kind: input, shape index: {}]   ;;  %s8223_s22 = inlined_call_operand.vmem [shape: f32[2,16], index: 22, kind: input, shape index: {}]   ;;  %s8224_s23 = inlined_call_operand.vmem [shape: f32[2,1], index: 23, kind: input, shape index: {}]   ;;  %s8225_s24 = inlined_call_operand.hbm [shape: f32[2,128], index: 24, kind: output, shape index: {}]  }
   0x1   :  { %8235 = sst [smem:[#allocation30_spill]] %s8201_s0 }
   0x2   :  { %8236 = sst [smem:[#allocation31_spill]] %s8202_s1 }
   0x3   :  { %8237 = sst [smem:[#allocation32_spill]] %s8203_s2 }
   0x4   :  { %8238 = sst [smem:[#allocation33_spill]] %s8204_s3 }
   0x5   :  { %8239 = sst [smem:[#allocation34_spill]] %s8205_s4 }
   0x6   :  { %8240 = sst [smem:[#allocation35_spill]] %s8206_s5 }
   0x7   :  { %8241 = sst [smem:[#allocation36_spill]] %s8207_s6 }
   0x8   :  { %8242 = sst [smem:[#allocation37_spill]] %s8208_s7 }
   0x9   :  { %8243 = sst [smem:[#allocation38_spill]] %s8209_s8 }
   0xa   :  { %s8244_s27 = sld [smem:[#allocation30_spill]]  ;;  %vm161_vm0 = vcmask 1043456   ;;  %v5478_v3 = vmov 0   ;;  %vm148_vm1 = vcmask 97280  }
   0xb   :  { %s8245_s0 = sld [smem:[#allocation32_spill]]  ;;  %5426 = vset.pattern.permute.xlu1 %v5478_v3  ;;  %5425 = vset.pattern.permute.xlu0 %v5478_v3 }
   0xc   :  { %s8246_s26 = sld [smem:[#allocation31_spill]]  ;;  %5427 = vset.pattern.permute.xlu2 %v5478_v3 }
   0xd   :  { %s8247_s5 = sld [smem:[#allocation34_spill]] }
  0x10   :  { %v125_v0 = vld [vmem:[%s8244_s27 + $0x78] sm:$0xff]  ;;  %v127_v1 = vld [vmem:[%s8244_s27 + $0x88] sm:$0xf]  ;;  %v124_v5 = vld [vmem:[%s8244_s27 + $0x70] sm:$0xff] }
  0x11   :  { %v89_v2 = vld [vmem:[%s8245_s0 + $0x18] sm:$0xff]  ;;  %v87_v4 = vld [vmem:[%s8245_s0 + $0x8] sm:$0xff]  ;;  %v126_v6 = vld [vmem:[%s8244_s27 + $0x80] sm:$0xff]  ;;  %165 = vmatpush.msra.mxu0 %v125_v0  ;;  %4914 = vmatpush.msk.msra.mxu1 %vm161_vm0, %v127_v1 }
  0x12   :  { %v5627_v7 = vld [vmem:[%s8246_s26 + $0x8] sm:$0xff]  ;;  %145 = vperm.xlu0 %5425, %v89_v2   ;;  %135 = vperm.xlu1 %5426, %v87_v4   ;;  %v122_v10 = vld [vmem:[%s8244_s27 + $0x60] sm:$0xff]  ;;  %v121_v12 = vld [vmem:[%s8244_s27 + $0x58] sm:$0xff] }
  0x13   :  { %v123_v8 = vld [vmem:[%s8244_s27 + $0x68] sm:$0xff]  ;;  %166 = vmatpush.msra.mxu0 %v124_v5  ;;  %209 = vmatpush.msra.mxu1 %v126_v6  ;;  %v4943_v11 = vld [vmem:[%s8244_s27 + $0x100] sm:$0xff]  ;;  %v4942_v13 = vld [vmem:[%s8244_s27 + $0xf8] sm:$0xff] }
  0x14   :  { %v4944_v9 = vld [vmem:[%s8244_s27 + $0x108] sm:$0xff]  ;;  %4915 = vmatmul.msk.f32.vlgmr.msra.gmra.mxu1 %vm148_vm1, %v5627_v7  ;;  %v88_v14 = vld [vmem:[%s8245_s0 + $0x10] sm:$0xff]  ;;  %v86_v15 = vld [vmem:[%s8245_s0] sm:$0xff] }
  0x15   :  { %167 = vmatpush.msra.mxu0 %v123_v8  ;;  %398 = vmatpush.msrb.mxu1 %v4944_v9  ;;  %v120_v16 = vld [vmem:[%s8244_s27 + $0x50] sm:$0xff]  ;;  %v5664_v18 = vld [vmem:[%s8246_s26 + $0x18] sm:$0xff]  ;;  %v119_v19 = vld [vmem:[%s8244_s27 + $0x48] sm:$0xff] }
  0x16   :  { %v4941_v17 = vld [vmem:[%s8244_s27 + $0xf0] sm:$0xff]  ;;  %v4940_v20 = vld [vmem:[%s8244_s27 + $0xe8] sm:$0xff]  ;;  %v118_v21 = vld [vmem:[%s8244_s27 + $0x40] sm:$0xff] }
  0x17   :  { %168 = vmatpush.msra.mxu0 %v122_v10  ;;  %399 = vmatpush.msrb.mxu1 %v4943_v11  ;;  %v4939_v22 = vld [vmem:[%s8244_s27 + $0xe0] sm:$0xff]  ;;  %v117_v23 = vld [vmem:[%s8244_s27 + $0x38] sm:$0xff]  ;;  %v95_v25 = vld [vmem:[%s8247_s5 + $0x8] sm:$0xff] }
  0x18   :  { %v4938_v24 = vld [vmem:[%s8244_s27 + $0xd8] sm:$0xff]  ;;  %v94_v26 = vld [vmem:[%s8247_s5] sm:$0xff]  ;;  %v116_v27 = vld [vmem:[%s8244_s27 + $0x30] sm:$0xff] }
  0x19   :  { %169 = vmatpush.msra.mxu0 %v121_v12  ;;  %400 = vmatpush.msrb.mxu1 %v4942_v13  ;;  %v4937_v28 = vld [vmem:[%s8244_s27 + $0xd0] sm:$0xff]  ;;  %v5701_v29 = vld [vmem:[%s8246_s26 + $0x28] sm:$0xff]  ;;  %v114_v32 = vld [vmem:[%s8244_s27 + $0x20] sm:$0xff] }
  0x1a   :  { %140 = vperm.xlu0 %5425, %v88_v14   ;;  %130 = vperm.xlu1 %5426, %v86_v15   ;;  %v115_v30 = vld [vmem:[%s8244_s27 + $0x28] sm:$0xff]  ;;  %v4935_v33 = vld [vmem:[%s8244_s27 + $0xc0] sm:$0xff] }
  0x1b   :  { %170 = vmatpush.msra.mxu0 %v120_v16  ;;  %401 = vmatpush.msrb.mxu1 %v4941_v17  ;;  %v4936_v31 = vld [vmem:[%s8244_s27 + $0xc8] sm:$0xff] }
  0x1c   :  { %4916 = vmatmul.msk.f32.gmra.mxu1 %vm148_vm1, %v5664_v18 }
  0x1d   :  { %171 = vmatpush.msra.mxu0 %v119_v19  ;;  %402 = vmatpush.msrb.mxu1 %v4940_v20 }
  0x1f   :  { %172 = vmatpush.msra.mxu0 %v118_v21  ;;  %403 = vmatpush.msrb.mxu1 %v4939_v22 }
  0x21   :  { %173 = vmatpush.msra.mxu0 %v117_v23  ;;  %404 = vmatpush.msrb.mxu1 %v4938_v24 }
  0x22   :  { %234 = vperm.xlu0 %5425, %v95_v25   ;;  %229 = vperm.xlu1 %5426, %v94_v26  }
  0x23   :  { %174 = vmatpush.msra.mxu0 %v116_v27  ;;  %405 = vmatpush.msrb.mxu1 %v4937_v28 }
  0x24   :  { %4917 = vmatmul.msk.f32.gmra.mxu1 %vm148_vm1, %v5701_v29 }
  0x25   :  { %29 = vsyncpa [#allocation3], 0  ;;  %175 = vmatpush.msra.mxu0 %v115_v30  ;;  %406 = vmatpush.msrb.mxu1 %v4936_v31  ;;  %v113_v34 = vld [vmem:[%s8244_s27 + $0x18] sm:$0xff]  ;;  %s8248_s4 = sld [smem:[#allocation36_spill]]  ;;  %v112_v38 = vld [vmem:[%s8244_s27 + $0x10] sm:$0xff]  ;;  %vm247_vm2 = vcmask 261120  }
  0x26   :  { %v4934_v35 = vld [vmem:[%s8244_s27 + $0xb8] sm:$0xff]  ;;  %v4933_v39 = vld [vmem:[%s8244_s27 + $0xb0] sm:$0xff]  ;;  %v111_v41 = vld [vmem:[%s8244_s27 + $0x8] sm:$0xff]  ;;  %s8249_s1 = sld [smem:[#allocation38_spill]]  ;;  %vm1959_vm3 = vcmask 130048   ;;  %vm4337_vm4 = vcmask 687104  }
  0x27   :  { %176 = vmatpush.msra.mxu0 %v114_v32  ;;  %407 = vmatpush.msrb.mxu1 %v4935_v33  ;;  %v5738_v40 = vld [vmem:[%s8246_s26 + $0x38] sm:$0xff]  ;;  %v4932_v42 = vld [vmem:[%s8244_s27 + $0xa8] sm:$0xff]  ;;  %v110_v43 = vld [vmem:[%s8244_s27] sm:$0xff]  ;;  %s8250_s28 = sld [smem:[#allocation33_spill]]  ;;  %vm4470_vm5 = vcmask 523264   ;;  %vm4864_vm6 = vcmask 1041408  }
  0x28   :  { %v4931_v44 = vld [vmem:[%s8244_s27 + $0xa0] sm:$0xff]  ;;  %v4930_v46 = vld [vmem:[%s8244_s27 + $0x98] sm:$0xff]  ;;  %v4929_v49 = vld [vmem:[%s8244_s27 + $0x90] sm:$0xff]  ;;  %s8251_s2 = sld [smem:[#allocation35_spill]]  ;;  %s4905_s25 = sshll.u32 %s8225_s24, 4  ;;  %s4906_s25 = int_to_ptr.hbm [resolvable:$true] %s4905_s25 }
  0x29   :  { %177 = vmatpush.msra.mxu0 %v113_v34  ;;  %408 = vmatpush.msrb.mxu1 %v4934_v35  ;;  %v5757_v45 = vld [vmem:[%s8246_s26] sm:$0xff]  ;;  %v4977_v50 = vld [vmem:[%s8244_s27 + $0x198] sm:$0xff]  ;;  %v4976_v51 = vld [vmem:[%s8244_s27 + $0x190] sm:$0xff] }
  0x2a   :  { %v5782_v52 = vld [vmem:[%s8246_s26 + $0x10] sm:$0xff]  ;;  %v4975_v53 = vld [vmem:[%s8244_s27 + $0x188] sm:$0xff]  ;;  %v4974_v56 = vld [vmem:[%s8244_s27 + $0x180] sm:$0xff] }
  0x2b   :  { %v109_v36 = vld [vmem:[%s8248_s4 + $0x28] sm:$0xff]  ;;  %v106_v37 = vld [vmem:[%s8248_s4 + $0x10] sm:$0xff]  ;;  %178 = vmatpush.msra.mxu0 %v112_v38  ;;  %409 = vmatpush.msrb.mxu1 %v4933_v39  ;;  %v104_v55 = vld [vmem:[%s8248_s4] sm:$0xff] }
  0x2c   :  { %320 = vperm.xlu0 %5425, %v109_v36   ;;  %305 = vperm.xlu1 %5426, %v106_v37   ;;  %v1948_v47 = vld [vmem:[%s8249_s1 + $0x8] sm:$0xff]  ;;  %v1947_v48 = vld [vmem:[%s8249_s1] sm:$0xff]  ;;  %v4973_v57 = vld [vmem:[%s8244_s27 + $0x178] sm:$0xff] }
  0x2d   :  { %4918 = vmatmul.msk.f32.gmra.mxu1 %vm148_vm1, %v5738_v40  ;;  %179 = vmatpush.msra.mxu0 %v111_v41  ;;  %v105_v54 = vld [vmem:[%s8248_s4 + $0x8] sm:$0xff]  ;;  %v4972_v58 = vld [vmem:[%s8244_s27 + $0x170] sm:$0xff]  ;;  %v5807_v59 = vld [vmem:[%s8246_s26 + $0x20] sm:$0xff] }
  0x2e   :  { %410 = vmatpush.msrb.mxu1 %v4932_v42  ;;  %v4971_v60 = vld [vmem:[%s8244_s27 + $0x168] sm:$0xff]  ;;  %v4295_v61 = vld [vmem:[%s8213_s12 + $0x30] sm:$0xff]  ;;  %v4970_v63 = vld [vmem:[%s8244_s27 + $0x160] sm:$0xff] }
  0x2f   :  { %180 = vmatpush.msra.mxu0 %v110_v43  ;;  %v4294_v62 = vld [vmem:[%s8213_s12 + $0x28] sm:$0xff]  ;;  %v4969_v0 = vld [vmem:[%s8244_s27 + $0x158] sm:$0xff]  ;;  %v4968_v1 = vld [vmem:[%s8244_s27 + $0x150] sm:$0xff] }
  0x30   :  { %411 = vmatpush.msrb.mxu1 %v4931_v44  ;;  %181 = vmatmul.f32.vlgmr.msra.gmra.mxu0 %v5757_v45  ;;  %v5832_v2 = vld [vmem:[%s8246_s26 + $0x30] sm:$0xff]  ;;  %v4967_v3 = vld [vmem:[%s8244_s27 + $0x148] sm:$0xff]  ;;  %v4292_v4 = vld [vmem:[%s8213_s12 + $0x18] sm:$0xff] }
  0x31   :  { %v4291_v5 = vld [vmem:[%s8213_s12 + $0x10] sm:$0xff]  ;;  %v4966_v6 = vld [vmem:[%s8244_s27 + $0x140] sm:$0xff]  ;;  %v4965_v8 = vld [vmem:[%s8244_s27 + $0x138] sm:$0xff] }
  0x32   :  { %412 = vmatpush.msrb.mxu1 %v4930_v46  ;;  %v4964_v9 = vld [vmem:[%s8244_s27 + $0x130] sm:$0xff]  ;;  %v4963_v10 = vld [vmem:[%s8244_s27 + $0x128] sm:$0xff]  ;;  %v4289_v11 = vld [vmem:[%s8213_s12] sm:$0xff] }
  0x33   :  { %v4429_v12 = vld [vmem:[%s8215_s14 + $0x38] sm:$0xff]  ;;  %v4962_v13 = vld [vmem:[%s8244_s27 + $0x120] sm:$0xff]  ;;  %v4427_v14 = vld [vmem:[%s8215_s14 + $0x28] sm:$0xff] }
  0x34   :  { %1956 = vperm.xlu0 %5425, %v1948_v47   ;;  %1951 = vperm.xlu1 %5426, %v1947_v48   ;;  %v4426_v15 = vld [vmem:[%s8215_s14 + $0x20] sm:$0xff]  ;;  %v4424_v16 = vld [vmem:[%s8215_s14 + $0x10] sm:$0xff]  ;;  %v4423_v17 = vld [vmem:[%s8215_s14 + $0x8] sm:$0xff] }
  0x35   :  { %413 = vmatpush.msrb.mxu1 %v4929_v49  ;;  %v4547_v19 = vld [vmem:[%s8217_s16 + $0x8] sm:$0xff]  ;;  %v4546_v20 = vld [vmem:[%s8217_s16] sm:$0xff]  ;;  %v97_v24 = vld [vmem:[%s8247_s5 + $0x18] sm:$0xff] }
  0x36   :  { %414 = vmatmul.f32.vlgmr.msrb.gmra.mxu1 %v5757_v45  ;;  %v4773_v21 = vld [vmem:[%s8220_s19] sm:$0xff]  ;;  %v4792_v22 = vld [vmem:[%s8222_s21 + $0x8] sm:$0xff]  ;;  %244 = vperm.xlu2 %5427, %v97_v24   ;;  %v96_v25 = vld [vmem:[%s8247_s5 + $0x10] sm:$0xff] }
  0x37   :  { %550 = vmatpush.msra.mxu1 %v4977_v50  ;;  %v4835_v23 = vld [vmem:[%s8224_s23] sm:$0x3]  ;;  %v107_v26 = vld [vmem:[%s8248_s4 + $0x18] sm:$0xff]  ;;  %v4290_v43 = vld [vmem:[%s8213_s12 + $0x8] sm:$0xff] }
  0x38   :  { %184 = vmatmul.f32.gmra.mxu0 %v5782_v52  ;;  %v108_v27 = vld [vmem:[%s8248_s4 + $0x20] sm:$0xff]  ;;  %v4296_v33 = vld [vmem:[%s8213_s12 + $0x38] sm:$0xff]  ;;  %v4999_v24 = vld [vmem:[%s8244_s27 + $0x1d0] sm:$0xff] }
  0x39   :  { %551 = vmatpush.msra.mxu1 %v4976_v51  ;;  %v3216_v30 = vld [vmem:[%s8211_s10] sm:$0xff] }
  0x3a   :  { %v4293_v37 = vld [vmem:[%s8213_s12 + $0x20] sm:$0xff] }
  0x3b   :  { %552 = vmatpush.msra.mxu1 %v4975_v53 }
  0x3c   :  { %300 = vperm.xlu0 %5425, %v105_v54   ;;  %295 = vperm.xlu1 %5426, %v104_v55  }
  0x3d   :  { %553 = vmatpush.msra.mxu1 %v4974_v56 }
  0x3e   :  { %417 = vmatmul.f32.gmra.mxu1 %v5782_v52  ;;  %239 = vperm.xlu2 %5427, %v96_v25   ;;  %v4998_v25 = vld [vmem:[%s8244_s27 + $0x1c8] sm:$0xff] }
  0x3f   :  { %554 = vmatpush.msra.mxu1 %v4973_v57 }
  0x40   :  { %187 = vmatmul.f32.gmra.mxu0 %v5807_v59 }
  0x41   :  { %555 = vmatpush.msra.mxu1 %v4972_v58  ;;  %v4428_v58 = vld [vmem:[%s8215_s14 + $0x30] sm:$0xff] }
  0x43   :  { %556 = vmatpush.msra.mxu1 %v4971_v60 }
  0x44   :  { %4329 = vperm.xlu0 %5425, %v4295_v61   ;;  %4324 = vperm.xlu1 %5426, %v4294_v62   ;;  %v5939_v62 = vld [vmem:[%s8250_s28] sm:$0xff] }
  0x45   :  { %557 = vmatpush.msra.mxu1 %v4970_v63  ;;  %v4946_v63 = vld [vmem:[%s8244_s27 + $0x118] sm:$0xf] }
  0x46   :  { %420 = vmatmul.f32.gmra.mxu1 %v5807_v59  ;;  %310 = vperm.xlu2 %5427, %v107_v26   ;;  %v4997_v26 = vld [vmem:[%s8244_s27 + $0x1c0] sm:$0xff] }
  0x47   :  { %558 = vmatpush.msra.mxu1 %v4969_v0  ;;  %v4945_v0 = vld [vmem:[%s8244_s27 + $0x110] sm:$0xff] }
  0x48   :  { %190 = vmatmul.f32.gmra.mxu0 %v5832_v2 }
  0x49   :  { %559 = vmatpush.msra.mxu1 %v4968_v1  ;;  %v4425_v1 = vld [vmem:[%s8215_s14 + $0x18] sm:$0xff] }
  0x4b   :  { %560 = vmatpush.msra.mxu1 %v4967_v3  ;;  %v5956_v3 = vld [vmem:[%s8250_s28 + $0x8] sm:$0xff] }
  0x4c   :  { %4314 = vperm.xlu0 %5425, %v4292_v4   ;;  %4309 = vperm.xlu1 %5426, %v4291_v5   ;;  %v4422_v4 = vld [vmem:[%s8215_s14] sm:$0xff]  ;;  %v5966_v5 = vld [vmem:[%s8250_s28 + $0x10] sm:$0xff] }
  0x4d   :  { %561 = vmatpush.msra.mxu1 %v4966_v6  ;;  %v4774_v6 = vld [vmem:[%s8220_s19 + $0x8] sm:$0xff]  ;;  %s8271_s19 = sld [smem:[#allocation37_spill]] }
  0x4e   :  { %423 = vmatmul.f32.gmra.mxu1 %v5832_v2  ;;  %315 = vperm.xlu2 %5427, %v108_v27   ;;  %v4996_v27 = vld [vmem:[%s8244_s27 + $0x1b8] sm:$0xff] }
  0x4f   :  { %562 = vmatpush.msra.mxu1 %v4965_v8  ;;  %v5976_v8 = vld [vmem:[%s8250_s28 + $0x18] sm:$0xff] }
  0x51   :  { %563 = vmatpush.msra.mxu1 %v4964_v9  ;;  %v4791_v9 = vld [vmem:[%s8222_s21] sm:$0xff] }
  0x53   :  { %564 = vmatpush.msra.mxu1 %v4963_v10  ;;  %v4979_v10 = vld [vmem:[%s8244_s27 + $0x1a8] sm:$0xf] }
  0x54   :  { %4299 = vperm.xlu0 %5425, %v4289_v11   ;;  %4467 = vperm.xlu1 %5426, %v4429_v12   ;;  %v4978_v11 = vld [vmem:[%s8244_s27 + $0x1a0] sm:$0xff]  ;;  %v5010_v12 = vld [vmem:[%s8244_s27 + $0x228] sm:$0xff] }
  0x55   :  { %565 = vmatpush.msra.mxu1 %v4962_v13  ;;  %v5009_v13 = vld [vmem:[%s8244_s27 + $0x220] sm:$0xff] }
  0x56   :  { %566 = vmatmul.f32.vlgmr.msra.gmra.mxu1 %v5757_v45  ;;  %3219 = vperm.xlu2 %5427, %v3216_v30  }
  0x5c   :  { %4457 = vperm.xlu0 %5425, %v4427_v14   ;;  %4452 = vperm.xlu1 %5426, %v4426_v15   ;;  %v5008_v14 = vld [vmem:[%s8244_s27 + $0x218] sm:$0xff]  ;;  %v5007_v15 = vld [vmem:[%s8244_s27 + $0x210] sm:$0xff] }
  0x5e   :  { %569 = vmatmul.f32.gmra.mxu1 %v5782_v52  ;;  %4334 = vperm.xlu2 %5427, %v4296_v33  }
  0x64   :  { %4442 = vperm.xlu0 %5425, %v4424_v16   ;;  %4437 = vperm.xlu1 %5426, %v4423_v17   ;;  %v5006_v16 = vld [vmem:[%s8244_s27 + $0x208] sm:$0xff]  ;;  %v5005_v17 = vld [vmem:[%s8244_s27 + $0x200] sm:$0xff] }
  0x66   :  { %572 = vmatmul.f32.gmra.mxu1 %v5807_v59  ;;  %4319 = vperm.xlu2 %5427, %v4293_v37  }
  0x6c   :  { %4555 = vperm.xlu0 %5425, %v4547_v19   ;;  %4550 = vperm.xlu1 %5426, %v4546_v20   ;;  %v5004_v19 = vld [vmem:[%s8244_s27 + $0x1f8] sm:$0xff]  ;;  %v5003_v20 = vld [vmem:[%s8244_s27 + $0x1f0] sm:$0xff] }
  0x6e   :  { %575 = vmatmul.f32.gmra.mxu1 %v5832_v2  ;;  %4304 = vperm.xlu2 %5427, %v4290_v43  }
  0x74   :  { %4777 = vperm.xlu0 %5425, %v4773_v21   ;;  %4800 = vperm.xlu1 %5426, %v4792_v22   ;;  %v5002_v21 = vld [vmem:[%s8244_s27 + $0x1e8] sm:$0xff]  ;;  %v5001_v22 = vld [vmem:[%s8244_s27 + $0x1e0] sm:$0xff] }
  0x76   :  { %4462 = vperm.xlu2 %5427, %v4428_v58  }
  0x7c   :  { %4838 = vperm.xlu0 %5425, %v4835_v23   ;;  %v5000_v23 = vld [vmem:[%s8244_s27 + $0x1d8] sm:$0xff] }
  0x7e   :  { %4447 = vperm.xlu2 %5427, %v4425_v1  }
  0x84   :  { %v5915_v35 = vpop.permute.xlu0 %145  ;;  %v5917_v36 = vpop.permute.xlu1 %135 }
  0x86   :  { %4432 = vperm.xlu2 %5427, %v4422_v4  }
  0x8c   :  { %v5922_v41 = vpop.permute.xlu0 %140  ;;  %v5930_v48 = vpop.permute.xlu1 %130 }
  0x8e   :  { %4782 = vperm.xlu2 %5427, %v4774_v6  }
  0x90   :  { %v6058_v33 = vpop.permute.xlu2 %244 }
  0x91   :  { %v211_v28 = vpop.f32.mrf.mxu1 }
  0x96   :  { %4795 = vperm.xlu2 %5427, %v4791_v9  }
  0x99   :  { %v214_v32 = vpop.f32.mrf.mxu1 }
  0xa1   :  { %v217_v38 = vpop.f32.mrf.mxu1 }
  0xaa   :  { %v220_v49 = vpop.f32.mrf.mxu1 }
  0xad   :  { %v182_v31 = vpop.f32.mrf.mxu0 }
  0xae   :  { %v183_v50 = vadd.f32 %v182_v31, %v5930_v48 }
  0xb0   :  { %v212_v57 = vadd.f32 %v211_v28, %v183_v50  ;;  %v4995_v28 = vld [vmem:[%s8244_s27 + $0x1b0] sm:$0xff] }
  0xb2   :  { %v223_v61 = vmax.f32 %v212_v57, 0.0 }
  0xb5   :  { %v185_v34 = vpop.f32.mrf.mxu0 }
  0xb6   :  { %v186_v46 = vadd.f32 %v185_v34, %v5917_v36 }
  0xb8   :  { %v215_v55 = vadd.f32 %v214_v32, %v186_v46  ;;  %v415_v32 = vpop.f32.mrf.mxu1 }
  0xba   :  { %v224_v60 = vmax.f32 %v215_v55, 0.0 }
  0xbd   :  { %v188_v39 = vpop.f32.mrf.mxu0 }
  0xbe   :  { %v189_v42 = vadd.f32 %v188_v39, %v5922_v41 }
  0xc0   :  { %v218_v53 = vadd.f32 %v217_v38, %v189_v42  ;;  %v418_v37 = vpop.f32.mrf.mxu1  ;;  %v6060_v38 = vpop.permute.xlu2 %239 }
  0xc2   :  { %v225_v56 = vmax.f32 %v218_v53, 0.0 }
  0xc5   :  { %v191_v44 = vpop.f32.mrf.mxu0 }
  0xc6   :  { %v192_v47 = vadd.f32 %v191_v44, %v5915_v35  ;;  %v6064_v44 = vpop.permute.xlu0 %234 }
  0xc8   :  { %v221_v51 = vadd.f32 %v220_v49, %v192_v47  ;;  %v6067_v49 = vpop.permute.xlu1 %229  ;;  %v421_v57 = vpop.f32.mrf.mxu1 }
  0xc9   :  { %v422_v4 = vadd.f32 %v421_v57, %v5922_v41 }
  0xca   :  { %v226_v54 = vmax.f32 %v221_v51, 0.0 }
  0xcc   :  { %272 = vmatpush.msra.mxu2 %v226_v54 }
  0xce   :  { %273 = vmatpush.msra.mxu2 %v225_v56  ;;  %v6073_v56 = vld [vmem:[%s8251_s2] sm:$0xff] }
  0xd0   :  { %274 = vmatpush.msra.mxu2 %v224_v60  ;;  %v6080_v60 = vld [vmem:[%s8251_s2 + $0x8] sm:$0xff] }
  0xd2   :  { %275 = vmatpush.msra.mxu2 %v223_v61  ;;  %v424_v61 = vpop.f32.mrf.mxu1 }
  0xd3   :  { %4919 = vmatmul.msk.f32.vlgmr.msra.gmra.mxu2 %vm247_vm2, %v5939_v62  ;;  %v425_v6 = vadd.f32 %v424_v61, %v5915_v35 }
  0xd4   :  { %4947 = vmatpush.msk.msrb.mxu2 %vm161_vm0, %v4946_v63 }
  0xd6   :  { %442 = vmatpush.msrb.mxu2 %v4945_v0  ;;  %v6087_v0 = vld [vmem:[%s8251_s2 + $0x10] sm:$0xff] }
  0xd8   :  { %4980 = vmatpush.msk.msra.mxu2 %vm161_vm0, %v4979_v10  ;;  %v419_v10 = vadd.f32 %v418_v37, %v5917_v36 }
  0xda   :  { %594 = vmatpush.msra.mxu2 %v4978_v11  ;;  %v567_v1 = vpop.f32.mrf.mxu1 }
  0xdb   :  { %4920 = vmatmul.msk.f32.gmra.mxu2 %vm247_vm2, %v5956_v3 }
  0xe3   :  { %4921 = vmatmul.msk.f32.gmra.mxu2 %vm247_vm2, %v5966_v5 }
  0xeb   :  { %4922 = vmatmul.msk.f32.gmra.mxu2 %vm247_vm2, %v5976_v8 }
  0xf3   :  { %4948 = vmatmul.msk.f32.vlgmr.msrb.gmra.mxu2 %vm148_vm1, %v5627_v7 }
  0xf4   :  { %702 = vmatpush.msrb.mxu2 %v5010_v12 }
  0xf6   :  { %703 = vmatpush.msrb.mxu2 %v5009_v13  ;;  %v6097_v13 = vld [vmem:[%s8251_s2 + $0x18] sm:$0xff] }
  0xf8   :  { %704 = vmatpush.msrb.mxu2 %v5008_v14  ;;  %v416_v14 = vadd.f32 %v415_v32, %v5930_v48 }
  0xfa   :  { %705 = vmatpush.msrb.mxu2 %v5007_v15 }
  0xfb   :  { %4949 = vmatmul.msk.f32.gmra.mxu2 %vm148_vm1, %v5664_v18 }
  0xfc   :  { %706 = vmatpush.msrb.mxu2 %v5006_v16 }
  0xfe   :  { %707 = vmatpush.msrb.mxu2 %v5005_v17 }
 0x100   :  { %708 = vmatpush.msrb.mxu2 %v5004_v19 }
 0x102   :  { %709 = vmatpush.msrb.mxu2 %v5003_v20 }
 0x103   :  { %4950 = vmatmul.msk.f32.gmra.mxu2 %vm148_vm1, %v5701_v29 }
 0x104   :  { %710 = vmatpush.msrb.mxu2 %v5002_v21  ;;  %v570_v21 = vpop.f32.mrf.mxu1 }
 0x105   :  { %v571_v37 = vadd.f32 %v570_v21, %v5917_v36 }
 0x106   :  { %711 = vmatpush.msrb.mxu2 %v5001_v22 }
 0x108   :  { %712 = vmatpush.msrb.mxu2 %v5000_v23 }
 0x10a   :  { %713 = vmatpush.msrb.mxu2 %v4999_v24  ;;  %v6105_v24 = vld [vmem:[%s8251_s2 + $0x20] sm:$0xff] }
 0x10b   :  { %4951 = vmatmul.msk.f32.gmra.mxu2 %vm148_vm1, %v5738_v40 }
 0x10c   :  { %714 = vmatpush.msrb.mxu2 %v4998_v25 }
 0x10e   :  { %715 = vmatpush.msrb.mxu2 %v4997_v26  ;;  %v6112_v26 = vld [vmem:[%s8251_s2 + $0x28] sm:$0xff] }
 0x110   :  { %716 = vmatpush.msrb.mxu2 %v4996_v27  ;;  %v573_v27 = vpop.f32.mrf.mxu1 }
 0x112   :  { %717 = vmatpush.msrb.mxu2 %v4995_v28 }
 0x113   :  { %4981 = vmatmul.msk.f32.vlgmr.msra.gmra.mxu2 %vm148_vm1, %v5627_v7 }
 0x11b   :  { %4982 = vmatmul.msk.f32.gmra.mxu2 %vm148_vm1, %v5664_v18 }
 0x123   :  { %4983 = vmatmul.msk.f32.gmra.mxu2 %vm148_vm1, %v5701_v29 }
 0x12b   :  { %4984 = vmatmul.msk.f32.gmra.mxu2 %vm148_vm1, %v5738_v40 }
 0x133   :  { %718 = vmatmul.f32.vlgmr.msrb.gmra.mxu2 %v5757_v45 }
 0x13b   :  { %721 = vmatmul.f32.gmra.mxu2 %v5782_v52 }
 0x143   :  { %724 = vmatmul.f32.gmra.mxu2 %v5807_v59 }
 0x14b   :  { %727 = vmatmul.f32.gmra.mxu2 %v5832_v2 }
 0x156   :  { %v277_v30 = vpop.f32.mrf.mxu2 }
 0x157   :  { %v278_v50 = vadd.f32 %v277_v30, %v6067_v49  ;;  %v576_v30 = vpop.f32.mrf.mxu1 }
 0x158   :  { %v577_v32 = vadd.f32 %v576_v30, %v5915_v35  ;;  %v5042_v30 = vld [vmem:[%s8244_s27 + $0x2b0] sm:$0xff] }
 0x159   :  { %v289_v55 = vmax.f32 %v278_v50, 0.0 }
 0x15e   :  { %v280_v31 = vpop.f32.mrf.mxu2 }
 0x15f   :  { %v281_v46 = vadd.f32 %v280_v31, %v6064_v44  ;;  %v574_v31 = vadd.f32 %v573_v27, %v5922_v41 }
 0x161   :  { %v290_v53 = vmax.f32 %v281_v46, 0.0 }
 0x166   :  { %v283_v34 = vpop.f32.mrf.mxu2 }
 0x167   :  { %v284_v42 = vadd.f32 %v283_v34, %v6060_v38 }
 0x169   :  { %v291_v51 = vmax.f32 %v284_v42, 0.0 }
 0x16e   :  { %v286_v39 = vpop.f32.mrf.mxu2 }
 0x16f   :  { %v287_v43 = vadd.f32 %v286_v39, %v6058_v33 }
 0x171   :  { %v292_v47 = vmax.f32 %v287_v43, 0.0  ;;  %v568_v43 = vadd.f32 %v567_v1, %v5930_v48 }
 0x173   :  { %353 = vmatpush.msra.mxu3 %v292_v47 }
 0x175   :  { %354 = vmatpush.msra.mxu3 %v291_v51 }
 0x176   :  { %v444_v54 = vpop.f32.mrf.mxu2 }
 0x177   :  { %355 = vmatpush.msra.mxu3 %v290_v53  ;;  %v445_v17 = vadd.f32 %v444_v54, %v416_v14 }
 0x179   :  { %356 = vmatpush.msra.mxu3 %v289_v55  ;;  %v456_v23 = vmax.f32 %v445_v17, 0.0 }
 0x17a   :  { %4923 = vmatmul.msk.f32.vlgmr.msra.gmra.mxu3 %vm247_vm2, %v6073_v56 }
 0x17e   :  { %v447_v58 = vpop.f32.mrf.mxu2 }
 0x17f   :  { %v448_v15 = vadd.f32 %v447_v58, %v419_v10 }
 0x181   :  { %v457_v20 = vmax.f32 %v448_v15, 0.0 }
 0x182   :  { %4924 = vmatmul.msk.f32.gmra.mxu3 %vm247_vm2, %v6080_v60 }
 0x186   :  { %v450_v63 = vpop.f32.mrf.mxu2 }
 0x187   :  { %v451_v11 = vadd.f32 %v450_v63, %v422_v4 }
 0x189   :  { %v458_v19 = vmax.f32 %v451_v11, 0.0 }
 0x18a   :  { %4925 = vmatmul.msk.f32.gmra.mxu3 %vm247_vm2, %v6087_v0 }
 0x18e   :  { %v453_v9 = vpop.f32.mrf.mxu2 }
 0x18f   :  { %v454_v12 = vadd.f32 %v453_v9, %v425_v6 }
 0x191   :  { %v459_v16 = vmax.f32 %v454_v12, 0.0 }
 0x192   :  { %4926 = vmatmul.msk.f32.gmra.mxu3 %vm247_vm2, %v6097_v13 }
 0x193   :  { %472 = vmatpush.msrb.mxu3 %v459_v16 }
 0x195   :  { %473 = vmatpush.msrb.mxu3 %v458_v19 }
 0x196   :  { %v596_v22 = vpop.f32.mrf.mxu2 }
 0x197   :  { %474 = vmatpush.msrb.mxu3 %v457_v20  ;;  %v597_v50 = vadd.f32 %v596_v22, %v568_v43 }
 0x199   :  { %475 = vmatpush.msrb.mxu3 %v456_v23  ;;  %v608_v54 = vmax.f32 %v597_v50, 0.0  ;;  %v5012_v23 = vld [vmem:[%s8244_s27 + $0x238] sm:$0xf] }
 0x19a   :  { %4927 = vmatmul.msk.f32.gmra.mxu3 %vm247_vm2, %v6105_v24 }
 0x19e   :  { %v599_v25 = vpop.f32.mrf.mxu2 }
 0x19f   :  { %v600_v46 = vadd.f32 %v599_v25, %v571_v37  ;;  %v5011_v25 = vld [vmem:[%s8244_s27 + $0x230] sm:$0xff] }
 0x1a1   :  { %v609_v53 = vmax.f32 %v600_v46, 0.0  ;;  %v5039_v46 = vld [vmem:[%s8244_s27 + $0x298] sm:$0xff] }
 0x1a2   :  { %4928 = vmatmul.msk.f32.gmra.mxu3 %vm247_vm2, %v6112_v26 }
 0x1a6   :  { %v602_v28 = vpop.f32.mrf.mxu2 }
 0x1a7   :  { %v603_v39 = vadd.f32 %v602_v28, %v574_v31  ;;  %v5043_v28 = vld [vmem:[%s8244_s27 + $0x2b8] sm:$0xff]  ;;  %v5041_v31 = vld [vmem:[%s8244_s27 + $0x2a8] sm:$0xff] }
 0x1a9   :  { %v610_v51 = vmax.f32 %v603_v39, 0.0 }
 0x1aa   :  { %4952 = vmatmul.msk.f32.vlgmr.msrb.gmra.mxu3 %vm247_vm2, %v5939_v62 }
 0x1ae   :  { %v605_v34 = vpop.f32.mrf.mxu2 }
 0x1af   :  { %v606_v42 = vadd.f32 %v605_v34, %v577_v32  ;;  %v5040_v34 = vld [vmem:[%s8244_s27 + $0x2a0] sm:$0xff] }
 0x1b1   :  { %v611_v47 = vmax.f32 %v606_v42, 0.0 }
 0x1b2   :  { %4953 = vmatmul.msk.f32.gmra.mxu3 %vm247_vm2, %v5956_v3 }
 0x1b3   :  { %624 = vmatpush.msra.mxu3 %v611_v47  ;;  %v5038_v47 = vld [vmem:[%s8244_s27 + $0x290] sm:$0xff] }
 0x1b5   :  { %625 = vmatpush.msra.mxu3 %v610_v51 }
 0x1b7   :  { %626 = vmatpush.msra.mxu3 %v609_v53  ;;  %v5037_v53 = vld [vmem:[%s8244_s27 + $0x288] sm:$0xff] }
 0x1b9   :  { %627 = vmatpush.msra.mxu3 %v608_v54 }
 0x1ba   :  { %4954 = vmatmul.msk.f32.gmra.mxu3 %vm247_vm2, %v5966_v5 }
 0x1c2   :  { %4955 = vmatmul.msk.f32.gmra.mxu3 %vm247_vm2, %v5976_v8 }
 0x1ca   :  { %4985 = vmatmul.msk.f32.vlgmr.msra.gmra.mxu3 %vm247_vm2, %v5939_v62 }
 0x1d2   :  { %4986 = vmatmul.msk.f32.gmra.mxu3 %vm247_vm2, %v5956_v3 }
 0x1da   :  { %4987 = vmatmul.msk.f32.gmra.mxu3 %vm247_vm2, %v5966_v5 }
 0x1e2   :  { %4988 = vmatmul.msk.f32.gmra.mxu3 %vm247_vm2, %v5976_v8 }
 0x1fd   :  { %v6136_v55 = vpop.f32.mrf.mxu3 }
 0x1fe   :  { %8252 = vst [vmem:[#allocation5_spill] sm:$0xff] %v6136_v55 }
 0x205   :  { %v6138_v57 = vpop.f32.mrf.mxu3 }
 0x206   :  { %8253 = vst [vmem:[#allocation6_spill] sm:$0xff] %v6138_v57 }
 0x20d   :  { %v6140_v58 = vpop.f32.mrf.mxu3 }
 0x215   :  { %v6142_v61 = vpop.f32.mrf.mxu3 }
 0x21d   :  { %v6144_v63 = vpop.f32.mrf.mxu3 }
 0x21e   :  { %8254 = vst [vmem:[#allocation7_spill] sm:$0xff] %v6144_v63 }
 0x225   :  { %v6146_v1 = vpop.f32.mrf.mxu3 }
 0x226   :  { %8255 = vst [vmem:[#allocation8_spill] sm:$0xff] %v6146_v1 }
 0x22d   :  { %v477_v4 = vpop.f32.mrf.mxu3 }
 0x22e   :  { %v478_v16 = vadd.f32 %v477_v4, %v6067_v49  ;;  %v5036_v4 = vld [vmem:[%s8244_s27 + $0x280] sm:$0xff] }
 0x230   :  { %v489_v21 = vmax.f32 %v478_v16, 0.0  ;;  %v5045_v16 = vld [vmem:[%s8244_s27 + $0x2c8] sm:$0xf] }
 0x235   :  { %v480_v6 = vpop.f32.mrf.mxu3 }
 0x236   :  { %v481_v14 = vadd.f32 %v480_v6, %v6064_v44 }
 0x238   :  { %v490_v19 = vmax.f32 %v481_v14, 0.0  ;;  %v5031_v14 = vld [vmem:[%s8244_s27 + $0x258] sm:$0xff] }
 0x23d   :  { %v483_v9 = vpop.f32.mrf.mxu3 }
 0x23e   :  { %v484_v11 = vadd.f32 %v483_v9, %v6060_v38  ;;  %v5035_v9 = vld [vmem:[%s8244_s27 + $0x278] sm:$0xff] }
 0x240   :  { %v491_v17 = vmax.f32 %v484_v11, 0.0  ;;  %v5033_v11 = vld [vmem:[%s8244_s27 + $0x268] sm:$0xff] }
 0x245   :  { %v486_v10 = vpop.f32.mrf.mxu3 }
 0x246   :  { %v487_v12 = vadd.f32 %v486_v10, %v6058_v33  ;;  %v5034_v10 = vld [vmem:[%s8244_s27 + $0x270] sm:$0xff] }
 0x248   :  { %v492_v15 = vmax.f32 %v487_v12, 0.0  ;;  %v5032_v12 = vld [vmem:[%s8244_s27 + $0x260] sm:$0xff] }
 0x24a   :  { %505 = vmatpush.msrb.mxu0 %v492_v15  ;;  %v5030_v15 = vld [vmem:[%s8244_s27 + $0x250] sm:$0xff] }
 0x24c   :  { %506 = vmatpush.msrb.mxu0 %v491_v17  ;;  %v5044_v17 = vld [vmem:[%s8244_s27 + $0x2c0] sm:$0xff] }
 0x24d   :  { %v629_v20 = vpop.f32.mrf.mxu3 }
 0x24e   :  { %507 = vmatpush.msrb.mxu0 %v490_v19  ;;  %v630_v50 = vadd.f32 %v629_v20, %v6067_v49  ;;  %v5029_v19 = vld [vmem:[%s8244_s27 + $0x248] sm:$0xff]  ;;  %v5028_v20 = vld [vmem:[%s8244_s27 + $0x240] sm:$0xff] }
 0x250   :  { %508 = vmatpush.msrb.mxu0 %v489_v21  ;;  %v641_v6 = vmax.f32 %v630_v50, 0.0  ;;  %v5076_v21 = vld [vmem:[%s8244_s27 + $0x348] sm:$0xff] }
 0x251   :  { %4956 = vmatmul.msk.f32.vlgmr.msrb.gmra.mxu0 %vm247_vm2, %v6073_v56 }
 0x252   :  { %5013 = vmatpush.msk.msra.mxu0 %vm161_vm0, %v5012_v23  ;;  %v5074_v23 = vld [vmem:[%s8244_s27 + $0x338] sm:$0xff] }
 0x254   :  { %746 = vmatpush.msra.mxu0 %v5011_v25  ;;  %v5073_v25 = vld [vmem:[%s8244_s27 + $0x330] sm:$0xff] }
 0x255   :  { %v632_v22 = vpop.f32.mrf.mxu3 }
 0x256   :  { %854 = vmatpush.msrb.mxu0 %v5043_v28  ;;  %v633_v42 = vadd.f32 %v632_v22, %v6064_v44  ;;  %v5075_v22 = vld [vmem:[%s8244_s27 + $0x340] sm:$0xff] }
 0x257   :  { %v5071_v28 = vld [vmem:[%s8244_s27 + $0x320] sm:$0xff] }
 0x258   :  { %855 = vmatpush.msrb.mxu0 %v5042_v30  ;;  %v642_v54 = vmax.f32 %v633_v42, 0.0  ;;  %v5070_v30 = vld [vmem:[%s8244_s27 + $0x318] sm:$0xff]  ;;  %v5064_v42 = vld [vmem:[%s8244_s27 + $0x2e8] sm:$0xff] }
 0x259   :  { %4957 = vmatmul.msk.f32.gmra.mxu0 %vm247_vm2, %v6080_v60 }
 0x25a   :  { %856 = vmatpush.msrb.mxu0 %v5041_v31  ;;  %v5069_v31 = vld [vmem:[%s8244_s27 + $0x310] sm:$0xff] }
 0x25c   :  { %857 = vmatpush.msrb.mxu0 %v5040_v34  ;;  %v5067_v34 = vld [vmem:[%s8244_s27 + $0x300] sm:$0xff] }
 0x25d   :  { %v635_v27 = vpop.f32.mrf.mxu3 }
 0x25e   :  { %v636_v37 = vadd.f32 %v635_v27, %v6060_v38  ;;  %858 = vmatpush.msrb.mxu0 %v5039_v46  ;;  %v5072_v27 = vld [vmem:[%s8244_s27 + $0x328] sm:$0xff]  ;;  %v5062_v46 = vld [vmem:[%s8244_s27 + $0x2d8] sm:$0xff] }
 0x260   :  { %v643_v51 = vmax.f32 %v636_v37, 0.0  ;;  %859 = vmatpush.msrb.mxu0 %v5038_v47  ;;  %v5066_v37 = vld [vmem:[%s8244_s27 + $0x2f8] sm:$0xff]  ;;  %v5061_v47 = vld [vmem:[%s8244_s27 + $0x2d0] sm:$0xff] }
 0x261   :  { %4958 = vmatmul.msk.f32.gmra.mxu0 %vm247_vm2, %v6087_v0 }
 0x262   :  { %860 = vmatpush.msrb.mxu0 %v5037_v53 }
 0x264   :  { %861 = vmatpush.msrb.mxu0 %v5036_v4 }
 0x265   :  { %v638_v32 = vpop.f32.mrf.mxu3 }
 0x266   :  { %v639_v39 = vadd.f32 %v638_v32, %v6058_v33  ;;  %862 = vmatpush.msrb.mxu0 %v5035_v9  ;;  %v5068_v32 = vld [vmem:[%s8244_s27 + $0x308] sm:$0xff] }
 0x268   :  { %v644_v43 = vmax.f32 %v639_v39, 0.0  ;;  %863 = vmatpush.msrb.mxu0 %v5034_v10  ;;  %v5065_v39 = vld [vmem:[%s8244_s27 + $0x2f0] sm:$0xff] }
 0x269   :  { %4959 = vmatmul.msk.f32.gmra.mxu0 %vm247_vm2, %v6097_v13 }
 0x26a   :  { %657 = vmatpush.msrb.mxu1 %v644_v43  ;;  %864 = vmatpush.msrb.mxu0 %v5033_v11  ;;  %v5063_v43 = vld [vmem:[%s8244_s27 + $0x2e0] sm:$0xff] }
 0x26c   :  { %658 = vmatpush.msrb.mxu1 %v643_v51  ;;  %865 = vmatpush.msrb.mxu0 %v5032_v12 }
 0x26e   :  { %659 = vmatpush.msrb.mxu1 %v642_v54  ;;  %866 = vmatpush.msrb.mxu0 %v5031_v14 }
 0x270   :  { %660 = vmatpush.msrb.mxu1 %v641_v6  ;;  %867 = vmatpush.msrb.mxu0 %v5030_v15 }
 0x271   :  { %4960 = vmatmul.msk.f32.gmra.mxu0 %vm247_vm2, %v6105_v24  ;;  %4989 = vmatmul.msk.f32.vlgmr.msrb.gmra.mxu1 %vm247_vm2, %v6073_v56 }
 0x272   :  { %5046 = vmatpush.msk.msra.mxu1 %vm161_vm0, %v5045_v16  ;;  %868 = vmatpush.msrb.mxu0 %v5029_v19 }
 0x274   :  { %898 = vmatpush.msra.mxu1 %v5044_v17  ;;  %869 = vmatpush.msrb.mxu0 %v5028_v20 }
 0x276   :  { %1006 = vmatpush.msrb.mxu1 %v5076_v21 }
 0x278   :  { %1007 = vmatpush.msrb.mxu1 %v5075_v22 }
 0x279   :  { %4961 = vmatmul.msk.f32.gmra.mxu0 %vm247_vm2, %v6112_v26  ;;  %4990 = vmatmul.msk.f32.gmra.mxu1 %vm247_vm2, %v6080_v60 }
 0x27a   :  { %1008 = vmatpush.msrb.mxu1 %v5074_v23 }
 0x27c   :  { %1009 = vmatpush.msrb.mxu1 %v5073_v25 }
 0x27e   :  { %1010 = vmatpush.msrb.mxu1 %v5072_v27 }
 0x280   :  { %1011 = vmatpush.msrb.mxu1 %v5071_v28 }
 0x281   :  { %4991 = vmatmul.msk.f32.gmra.mxu1 %vm247_vm2, %v6087_v0  ;;  %5014 = vmatmul.msk.f32.vlgmr.msra.gmra.mxu0 %vm148_vm1, %v5627_v7 }
 0x282   :  { %1012 = vmatpush.msrb.mxu1 %v5070_v30 }
 0x284   :  { %1013 = vmatpush.msrb.mxu1 %v5069_v31 }
 0x286   :  { %1014 = vmatpush.msrb.mxu1 %v5068_v32 }
 0x288   :  { %1015 = vmatpush.msrb.mxu1 %v5067_v34 }
 0x289   :  { %4992 = vmatmul.msk.f32.gmra.mxu1 %vm247_vm2, %v6097_v13  ;;  %5015 = vmatmul.msk.f32.gmra.mxu0 %vm148_vm1, %v5664_v18 }
 0x28a   :  { %1016 = vmatpush.msrb.mxu1 %v5066_v37 }
 0x28c   :  { %1017 = vmatpush.msrb.mxu1 %v5065_v39 }
 0x28e   :  { %1018 = vmatpush.msrb.mxu1 %v5064_v42 }
 0x290   :  { %1019 = vmatpush.msrb.mxu1 %v5063_v43 }
 0x291   :  { %4993 = vmatmul.msk.f32.gmra.mxu1 %vm247_vm2, %v6105_v24  ;;  %5016 = vmatmul.msk.f32.gmra.mxu0 %vm148_vm1, %v5701_v29 }
 0x292   :  { %1020 = vmatpush.msrb.mxu1 %v5062_v46 }
 0x294   :  { %1021 = vmatpush.msrb.mxu1 %v5061_v47 }
 0x299   :  { %4994 = vmatmul.msk.f32.gmra.mxu1 %vm247_vm2, %v6112_v26  ;;  %5017 = vmatmul.msk.f32.gmra.mxu0 %vm148_vm1, %v5738_v40 }
 0x2a1   :  { %870 = vmatmul.f32.vlgmr.msrb.gmra.mxu0 %v5757_v45  ;;  %5047 = vmatmul.msk.f32.vlgmr.msra.gmra.mxu1 %vm148_vm1, %v5627_v7 }
 0x2a9   :  { %873 = vmatmul.f32.gmra.mxu0 %v5782_v52  ;;  %5048 = vmatmul.msk.f32.gmra.mxu1 %vm148_vm1, %v5664_v18 }
 0x2b1   :  { %876 = vmatmul.f32.gmra.mxu0 %v5807_v59  ;;  %5049 = vmatmul.msk.f32.gmra.mxu1 %vm148_vm1, %v5701_v29 }
 0x2b9   :  { %879 = vmatmul.f32.gmra.mxu0 %v5832_v2  ;;  %5050 = vmatmul.msk.f32.gmra.mxu1 %vm148_vm1, %v5738_v40  ;;  %v719_v40 = vpop.f32.mrf.mxu2 }
 0x2ba   :  { %v720_v22 = vadd.f32 %v719_v40, %v5930_v48 }
 0x2c1   :  { %1022 = vmatmul.f32.vlgmr.msrb.gmra.mxu1 %v5757_v45  ;;  %v722_v54 = vpop.f32.mrf.mxu2 }
 0x2c2   :  { %v723_v19 = vadd.f32 %v722_v54, %v5917_v36 }
 0x2c9   :  { %1025 = vmatmul.f32.gmra.mxu1 %v5782_v52  ;;  %v725_v9 = vpop.f32.mrf.mxu2 }
 0x2ca   :  { %v726_v14 = vadd.f32 %v725_v9, %v5922_v41 }
 0x2ce   :  { %v6312_v7 = vpop.f32.mrf.mxu0 }
 0x2cf   :  { %8256 = vst [vmem:[#allocation9_spill] sm:$0xff] %v6312_v7 }
 0x2d1   :  { %1028 = vmatmul.f32.gmra.mxu1 %v5807_v59  ;;  %v728_v12 = vpop.f32.mrf.mxu2 }
 0x2d2   :  { %v729_v15 = vadd.f32 %v728_v12, %v5915_v35 }
 0x2d6   :  { %v6315_v50 = vpop.f32.mrf.mxu0 }
 0x2d7   :  { %8257 = vst [vmem:[#allocation10_spill] sm:$0xff] %v6315_v50 }
 0x2d9   :  { %1031 = vmatmul.f32.gmra.mxu1 %v5832_v2 }
 0x2de   :  { %v6318_v18 = vpop.f32.mrf.mxu0 }
 0x2e6   :  { %v6320_v29 = vpop.f32.mrf.mxu0 }
 0x2ee   :  { %v6322_v51 = vpop.f32.mrf.mxu0  ;;  %v6324_v53 = vpop.f32.mrf.mxu1 }
 0x2ef   :  { %8258 = vst [vmem:[#allocation11_spill] sm:$0xff] %v6322_v51 }
 0x2f0   :  { %8259 = vst [vmem:[#allocation12_spill] sm:$0xff] %v6324_v53 }
 0x2f6   :  { %v6326_v45 = vpop.f32.mrf.mxu0  ;;  %v6328_v52 = vpop.f32.mrf.mxu1 }
 0x2f7   :  { %8260 = vst [vmem:[#allocation13_spill] sm:$0xff] %v6326_v45 }
 0x2f8   :  { %8261 = vst [vmem:[#allocation14_spill] sm:$0xff] %v6328_v52 }
 0x2fe   :  { %v6330_v4 = vpop.f32.mrf.mxu1  ;;  %v748_v59 = vpop.f32.mrf.mxu0 }
 0x2ff   :  { %v749_v27 = vadd.f32 %v748_v59, %v720_v22 }
 0x301   :  { %v760_v34 = vmax.f32 %v749_v27, 0.0 }
 0x306   :  { %v6332_v6 = vpop.f32.mrf.mxu1  ;;  %v751_v2 = vpop.f32.mrf.mxu0 }
 0x307   :  { %v752_v23 = vadd.f32 %v751_v2, %v723_v19 }
 0x309   :  { %v761_v30 = vmax.f32 %v752_v23, 0.0 }
 0x30e   :  { %v6334_v10 = vpop.f32.mrf.mxu1  ;;  %v754_v11 = vpop.f32.mrf.mxu0 }
 0x30f   :  { %8262 = vst [vmem:[#allocation15_spill] sm:$0xff] %v6334_v10  ;;  %v755_v20 = vadd.f32 %v754_v11, %v726_v14 }
 0x311   :  { %v762_v28 = vmax.f32 %v755_v20, 0.0 }
 0x316   :  { %v6338_v16 = vpop.f32.mrf.mxu1  ;;  %v757_v17 = vpop.f32.mrf.mxu0 }
 0x317   :  { %v758_v21 = vadd.f32 %v757_v17, %v729_v15 }
 0x319   :  { %v763_v25 = vmax.f32 %v758_v21, 0.0 }
 0x31b   :  { %776 = vmatpush.msrb.mxu3 %v763_v25 }
 0x31d   :  { %777 = vmatpush.msrb.mxu3 %v762_v28 }
 0x31e   :  { %v871_v31 = vpop.f32.mrf.mxu0  ;;  %v900_v32 = vpop.f32.mrf.mxu1 }
 0x31f   :  { %778 = vmatpush.msrb.mxu3 %v761_v30  ;;  %v872_v2 = vadd.f32 %v871_v31, %v5930_v48 }
 0x321   :  { %779 = vmatpush.msrb.mxu3 %v760_v34  ;;  %v901_v15 = vadd.f32 %v900_v32, %v872_v2  ;;  %v5107_v2 = vld [vmem:[%s8244_s27 + $0x3c8] sm:$0xff] }
 0x322   :  { %5018 = vmatmul.msk.f32.vlgmr.msrb.gmra.mxu3 %vm247_vm2, %v5939_v62 }
 0x323   :  { %v912_v20 = vmax.f32 %v901_v15, 0.0  ;;  %v5105_v15 = vld [vmem:[%s8244_s27 + $0x3b8] sm:$0xff] }
 0x326   :  { %v874_v37 = vpop.f32.mrf.mxu0  ;;  %v903_v39 = vpop.f32.mrf.mxu1 }
 0x327   :  { %v875_v40 = vadd.f32 %v874_v37, %v5917_v36 }
 0x329   :  { %v904_v12 = vadd.f32 %v903_v39, %v875_v40 }
 0x32a   :  { %5019 = vmatmul.msk.f32.gmra.mxu3 %vm247_vm2, %v5956_v3 }
 0x32b   :  { %v913_v19 = vmax.f32 %v904_v12, 0.0 }
 0x32e   :  { %v877_v42 = vpop.f32.mrf.mxu0  ;;  %v906_v43 = vpop.f32.mrf.mxu1 }
 0x32f   :  { %v878_v46 = vadd.f32 %v877_v42, %v5922_v41 }
 0x331   :  { %v907_v9 = vadd.f32 %v906_v43, %v878_v46  ;;  %v5078_v46 = vld [vmem:[%s8244_s27 + $0x358] sm:$0xf] }
 0x332   :  { %5020 = vmatmul.msk.f32.gmra.mxu3 %vm247_vm2, %v5966_v5 }
 0x333   :  { %v914_v17 = vmax.f32 %v907_v9, 0.0  ;;  %v5106_v9 = vld [vmem:[%s8244_s27 + $0x3c0] sm:$0xff] }
 0x336   :  { %v880_v47 = vpop.f32.mrf.mxu0  ;;  %v909_v59 = vpop.f32.mrf.mxu1 }
 0x337   :  { %v881_v54 = vadd.f32 %v880_v47, %v5915_v35  ;;  %v5077_v47 = vld [vmem:[%s8244_s27 + $0x350] sm:$0xff] }
 0x339   :  { %v910_v11 = vadd.f32 %v909_v59, %v881_v54  ;;  %v5109_v54 = vld [vmem:[%s8244_s27 + $0x3d8] sm:$0xff]  ;;  %v5108_v59 = vld [vmem:[%s8244_s27 + $0x3d0] sm:$0xff] }
 0x33a   :  { %5021 = vmatmul.msk.f32.gmra.mxu3 %vm247_vm2, %v5976_v8 }
 0x33b   :  { %v915_v14 = vmax.f32 %v910_v11, 0.0 }
 0x33d   :  { %928 = vmatpush.msra.mxu3 %v915_v14 }
 0x33f   :  { %929 = vmatpush.msra.mxu3 %v914_v17 }
 0x341   :  { %930 = vmatpush.msra.mxu3 %v913_v19 }
 0x343   :  { %931 = vmatpush.msra.mxu3 %v912_v20  ;;  %v5104_v20 = vld [vmem:[%s8244_s27 + $0x3b0] sm:$0xff] }
 0x344   :  { %5051 = vmatmul.msk.f32.vlgmr.msra.gmra.mxu3 %vm247_vm2, %v5939_v62 }
 0x34c   :  { %5052 = vmatmul.msk.f32.gmra.mxu3 %vm247_vm2, %v5956_v3 }
 0x354   :  { %5053 = vmatmul.msk.f32.gmra.mxu3 %vm247_vm2, %v5966_v5 }
 0x35c   :  { %5054 = vmatmul.msk.f32.gmra.mxu3 %vm247_vm2, %v5976_v8 }
 0x3a5   :  { %v781_v21 = vpop.f32.mrf.mxu3 }
 0x3a6   :  { %v782_v32 = vadd.f32 %v781_v21, %v6067_v49  ;;  %v5103_v21 = vld [vmem:[%s8244_s27 + $0x3a8] sm:$0xff] }
 0x3a8   :  { %v793_v39 = vmax.f32 %v782_v32, 0.0  ;;  %v5099_v32 = vld [vmem:[%s8244_s27 + $0x388] sm:$0xff] }
 0x3ad   :  { %v784_v22 = vpop.f32.mrf.mxu3 }
 0x3ae   :  { %v785_v30 = vadd.f32 %v784_v22, %v6064_v44 }
 0x3b0   :  { %v794_v37 = vmax.f32 %v785_v30, 0.0  ;;  %v5101_v30 = vld [vmem:[%s8244_s27 + $0x398] sm:$0xff] }
 0x3b5   :  { %v787_v23 = vpop.f32.mrf.mxu3 }
 0x3b6   :  { %v788_v27 = vadd.f32 %v787_v23, %v6060_v38 }
 0x3b8   :  { %v795_v34 = vmax.f32 %v788_v27, 0.0 }
 0x3bd   :  { %v790_v25 = vpop.f32.mrf.mxu3 }
 0x3be   :  { %v791_v28 = vadd.f32 %v790_v25, %v6058_v33  ;;  %v5102_v25 = vld [vmem:[%s8244_s27 + $0x3a0] sm:$0xff] }
 0x3c0   :  { %v796_v31 = vmax.f32 %v791_v28, 0.0 }
 0x3c2   :  { %809 = vmatpush.msra.mxu2 %v796_v31  ;;  %v5100_v31 = vld [vmem:[%s8244_s27 + $0x390] sm:$0xff] }
 0x3c4   :  { %810 = vmatpush.msra.mxu2 %v795_v34  ;;  %v5098_v34 = vld [vmem:[%s8244_s27 + $0x380] sm:$0xff] }
 0x3c6   :  { %811 = vmatpush.msra.mxu2 %v794_v37  ;;  %v5097_v37 = vld [vmem:[%s8244_s27 + $0x378] sm:$0xff] }
 0x3c7   :  { %v933_v42 = vpop.f32.mrf.mxu3 }
 0x3c8   :  { %812 = vmatpush.msra.mxu2 %v793_v39  ;;  %v934_v22 = vadd.f32 %v933_v42, %v6067_v49  ;;  %v5096_v39 = vld [vmem:[%s8244_s27 + $0x370] sm:$0xff]  ;;  %v5095_v42 = vld [vmem:[%s8244_s27 + $0x368] sm:$0xff] }
 0x3c9   :  { %5022 = vmatmul.msk.f32.vlgmr.msra.gmra.mxu2 %vm247_vm2, %v6073_v56 }
 0x3ca   :  { %5079 = vmatpush.msk.msrb.mxu2 %vm161_vm0, %v5078_v46  ;;  %v945_v28 = vmax.f32 %v934_v22, 0.0  ;;  %v6444_v46 = vld [vmem:[%s8246_s26 + $0x8] sm:$0xff] }
 0x3cc   :  { %1050 = vmatpush.msrb.mxu2 %v5077_v47  ;;  %v6453_v47 = vld [vmem:[%s8246_s26 + $0x18] sm:$0xff] }
 0x3ce   :  { %1158 = vmatpush.msra.mxu2 %v5109_v54  ;;  %v6471_v54 = vld [vmem:[%s8246_s26 + $0x38] sm:$0xff] }
 0x3cf   :  { %v936_v43 = vpop.f32.mrf.mxu3 }
 0x3d0   :  { %1159 = vmatpush.msra.mxu2 %v5108_v59  ;;  %v937_v17 = vadd.f32 %v936_v43, %v6064_v44  ;;  %v5094_v43 = vld [vmem:[%s8244_s27 + $0x360] sm:$0xff] }
 0x3d1   :  { %5023 = vmatmul.msk.f32.gmra.mxu2 %vm247_vm2, %v6080_v60  ;;  %v6480_v59 = vld [vmem:[%s8246_s26] sm:$0xff] }
 0x3d2   :  { %1160 = vmatpush.msra.mxu2 %v5107_v2  ;;  %v946_v27 = vmax.f32 %v937_v17, 0.0  ;;  %v6486_v2 = vld [vmem:[%s8246_s26 + $0x10] sm:$0xff] }
 0x3d4   :  { %1161 = vmatpush.msra.mxu2 %v5106_v9  ;;  %v6492_v9 = vld [vmem:[%s8246_s26 + $0x20] sm:$0xff] }
 0x3d6   :  { %1162 = vmatpush.msra.mxu2 %v5105_v15 }
 0x3d7   :  { %v939_v40 = vpop.f32.mrf.mxu3 }
 0x3d8   :  { %v940_v12 = vadd.f32 %v939_v40, %v6060_v38  ;;  %1163 = vmatpush.msra.mxu2 %v5104_v20  ;;  %v6462_v40 = vld [vmem:[%s8246_s26 + $0x28] sm:$0xff]  ;;  %v1023_v20 = vpop.f32.mrf.mxu1 }
 0x3d9   :  { %5024 = vmatmul.msk.f32.gmra.mxu2 %vm247_vm2, %v6087_v0 }
 0x3da   :  { %v947_v23 = vmax.f32 %v940_v12, 0.0  ;;  %1164 = vmatpush.msra.mxu2 %v5103_v21 }
 0x3dc   :  { %1165 = vmatpush.msra.mxu2 %v5102_v25 }
 0x3de   :  { %1166 = vmatpush.msra.mxu2 %v5101_v30 }
 0x3df   :  { %v942_v11 = vpop.f32.mrf.mxu3 }
 0x3e0   :  { %v943_v14 = vadd.f32 %v942_v11, %v6058_v33  ;;  %1167 = vmatpush.msra.mxu2 %v5100_v31  ;;  %v6498_v11 = vld [vmem:[%s8246_s26 + $0x30] sm:$0xff]  ;;  %v1026_v22 = vpop.f32.mrf.mxu1 }
 0x3e1   :  { %5025 = vmatmul.msk.f32.gmra.mxu2 %vm247_vm2, %v6097_v13 }
 0x3e2   :  { %v948_v19 = vmax.f32 %v943_v14, 0.0  ;;  %1168 = vmatpush.msra.mxu2 %v5099_v32 }
 0x3e4   :  { %961 = vmatpush.msra.mxu0 %v948_v19  ;;  %1169 = vmatpush.msra.mxu2 %v5098_v34 }
 0x3e6   :  { %962 = vmatpush.msra.mxu0 %v947_v23  ;;  %1170 = vmatpush.msra.mxu2 %v5097_v37  ;;  %v1027_v37 = vadd.f32 %v1026_v22, %v5917_v36  ;;  %v5134_v22 = vld [vmem:[%s8244_s27 + $0x428] sm:$0xff] }
 0x3e8   :  { %963 = vmatpush.msra.mxu0 %v946_v27  ;;  %1171 = vmatpush.msra.mxu2 %v5096_v39  ;;  %v1029_v27 = vpop.f32.mrf.mxu1 }
 0x3e9   :  { %5026 = vmatmul.msk.f32.gmra.mxu2 %vm247_vm2, %v6105_v24  ;;  %v1030_v31 = vadd.f32 %v1029_v27, %v5922_v41  ;;  %v5111_v27 = vld [vmem:[%s8244_s27 + $0x3e8] sm:$0xf] }
 0x3ea   :  { %964 = vmatpush.msra.mxu0 %v945_v28  ;;  %1172 = vmatpush.msra.mxu2 %v5095_v42 }
 0x3eb   :  { %5055 = vmatmul.msk.f32.vlgmr.msra.gmra.mxu0 %vm247_vm2, %v6073_v56 }
 0x3ec   :  { %1173 = vmatpush.msra.mxu2 %v5094_v43  ;;  %v1024_v43 = vadd.f32 %v1023_v20, %v5930_v48  ;;  %v5110_v20 = vld [vmem:[%s8244_s27 + $0x3e0] sm:$0xff] }
 0x3f0   :  { %v1032_v30 = vpop.f32.mrf.mxu1 }
 0x3f1   :  { %5027 = vmatmul.msk.f32.gmra.mxu2 %vm247_vm2, %v6112_v26  ;;  %v1033_v32 = vadd.f32 %v1032_v30, %v5915_v35  ;;  %v5129_v30 = vld [vmem:[%s8244_s27 + $0x400] sm:$0xff] }
 0x3f3   :  { %5056 = vmatmul.msk.f32.gmra.mxu0 %vm247_vm2, %v6080_v60 }
 0x3f9   :  { %5080 = vmatmul.msk.f32.vlgmr.msrb.gmra.mxu2 %vm148_vm1, %v6444_v46 }
 0x3fb   :  { %5057 = vmatmul.msk.f32.gmra.mxu0 %vm247_vm2, %v6087_v0 }
 0x401   :  { %5081 = vmatmul.msk.f32.gmra.mxu2 %vm148_vm1, %v6453_v47 }
 0x403   :  { %5058 = vmatmul.msk.f32.gmra.mxu0 %vm247_vm2, %v6097_v13 }
 0x409   :  { %5082 = vmatmul.msk.f32.gmra.mxu2 %vm148_vm1, %v6462_v40 }
 0x40b   :  { %5059 = vmatmul.msk.f32.gmra.mxu0 %vm247_vm2, %v6105_v24 }
 0x411   :  { %5083 = vmatmul.msk.f32.gmra.mxu2 %vm148_vm1, %v6471_v54 }
 0x413   :  { %5060 = vmatmul.msk.f32.gmra.mxu0 %vm247_vm2, %v6112_v26 }
 0x419   :  { %1174 = vmatmul.f32.vlgmr.msra.gmra.mxu2 %v6480_v59 }
 0x421   :  { %1177 = vmatmul.f32.gmra.mxu2 %v6486_v2 }
 0x429   :  { %1180 = vmatmul.f32.gmra.mxu2 %v6492_v9 }
 0x431   :  { %1183 = vmatmul.f32.gmra.mxu2 %v6498_v11 }
 0x44c   :  { %v6501_v12 = vpop.f32.mrf.mxu2 }
 0x44d   :  { %8263 = vst [vmem:[#allocation16_spill] sm:$0xff] %v6501_v12 }
 0x454   :  { %v6503_v14 = vpop.f32.mrf.mxu2 }
 0x455   :  { %8264 = vst [vmem:[#allocation17_spill] sm:$0xff] %v6503_v14 }
 0x45c   :  { %v6505_v15 = vpop.f32.mrf.mxu2 }
 0x464   :  { %v6507_v17 = vpop.f32.mrf.mxu2 }
 0x46c   :  { %v6509_v19 = vpop.f32.mrf.mxu2 }
 0x474   :  { %v6511_v21 = vpop.f32.mrf.mxu2 }
 0x47c   :  { %v1052_v23 = vpop.f32.mrf.mxu2 }
 0x47d   :  { %v1053_v7 = vadd.f32 %v1052_v23, %v1024_v43  ;;  %v5133_v23 = vld [vmem:[%s8244_s27 + $0x420] sm:$0xff] }
 0x47f   :  { %v1064_v52 = vmax.f32 %v1053_v7, 0.0  ;;  %v5139_v7 = vld [vmem:[%s8244_s27 + $0x450] sm:$0xff] }
 0x484   :  { %v1055_v25 = vpop.f32.mrf.mxu2 }
 0x485   :  { %v1056_v55 = vadd.f32 %v1055_v25, %v1027_v37  ;;  %v5132_v25 = vld [vmem:[%s8244_s27 + $0x418] sm:$0xff] }
 0x487   :  { %v1065_v53 = vmax.f32 %v1056_v55, 0.0  ;;  %v5142_v55 = vld [vmem:[%s8244_s27 + $0x468] sm:$0xff] }
 0x48c   :  { %v1058_v28 = vpop.f32.mrf.mxu2 }
 0x48d   :  { %v1059_v39 = vadd.f32 %v1058_v28, %v1030_v31  ;;  %v5130_v28 = vld [vmem:[%s8244_s27 + $0x408] sm:$0xff]  ;;  %v5128_v31 = vld [vmem:[%s8244_s27 + $0x3f8] sm:$0xff] }
 0x48f   :  { %v1066_v50 = vmax.f32 %v1059_v39, 0.0 }
 0x494   :  { %v1061_v34 = vpop.f32.mrf.mxu2 }
 0x495   :  { %v1062_v42 = vadd.f32 %v1061_v34, %v1033_v32 }
 0x497   :  { %v1067_v57 = vmax.f32 %v1062_v42, 0.0 }
 0x499   :  { %1080 = vmatpush.msrb.mxu3 %v1067_v57  ;;  %v5141_v57 = vld [vmem:[%s8244_s27 + $0x460] sm:$0xff] }
 0x49b   :  { %1081 = vmatpush.msrb.mxu3 %v1066_v50  ;;  %v5138_v50 = vld [vmem:[%s8244_s27 + $0x448] sm:$0xff] }
 0x49c   :  { %v1175_v39 = vpop.f32.mrf.mxu2 }
 0x49d   :  { %1082 = vmatpush.msrb.mxu3 %v1065_v53  ;;  %v5137_v53 = vld [vmem:[%s8244_s27 + $0x440] sm:$0xff] }
 0x49f   :  { %1083 = vmatpush.msrb.mxu3 %v1064_v52  ;;  %v5136_v52 = vld [vmem:[%s8244_s27 + $0x438] sm:$0xff] }
 0x4a0   :  { %5084 = vmatmul.msk.f32.vlgmr.msrb.gmra.mxu3 %vm247_vm2, %v5939_v62  ;;  %v5140_v62 = vld [vmem:[%s8244_s27 + $0x458] sm:$0xff] }
 0x4a1   :  { %5112 = vmatpush.msk.msra.mxu3 %vm161_vm0, %v5111_v27 }
 0x4a3   :  { %1202 = vmatpush.msra.mxu3 %v5110_v20 }
 0x4a5   :  { %1310 = vmatpush.msrb.mxu3 %v5142_v55 }
 0x4a7   :  { %1311 = vmatpush.msrb.mxu3 %v5141_v57 }
 0x4a8   :  { %5085 = vmatmul.msk.f32.gmra.mxu3 %vm247_vm2, %v5956_v3  ;;  %v5135_v3 = vld [vmem:[%s8244_s27 + $0x430] sm:$0xff] }
 0x4a9   :  { %1312 = vmatpush.msrb.mxu3 %v5140_v62 }
 0x4ab   :  { %1313 = vmatpush.msrb.mxu3 %v5139_v7 }
 0x4ad   :  { %1314 = vmatpush.msrb.mxu3 %v5138_v50  ;;  %v1178_v50 = vpop.f32.mrf.mxu2 }
 0x4af   :  { %1315 = vmatpush.msrb.mxu3 %v5137_v53 }
 0x4b0   :  { %5086 = vmatmul.msk.f32.gmra.mxu3 %vm247_vm2, %v5966_v5  ;;  %v5131_v5 = vld [vmem:[%s8244_s27 + $0x410] sm:$0xff] }
 0x4b1   :  { %1316 = vmatpush.msrb.mxu3 %v5136_v52 }
 0x4b3   :  { %1317 = vmatpush.msrb.mxu3 %v5135_v3 }
 0x4b5   :  { %1318 = vmatpush.msrb.mxu3 %v5134_v22  ;;  %v1181_v22 = vpop.f32.mrf.mxu2 }
 0x4b7   :  { %1319 = vmatpush.msrb.mxu3 %v5133_v23 }
 0x4b8   :  { %5087 = vmatmul.msk.f32.gmra.mxu3 %vm247_vm2, %v5976_v8  ;;  %v5127_v8 = vld [vmem:[%s8244_s27 + $0x3f0] sm:$0xff] }
 0x4b9   :  { %1320 = vmatpush.msrb.mxu3 %v5132_v25 }
 0x4bb   :  { %1321 = vmatpush.msrb.mxu3 %v5131_v5  ;;  %v1182_v5 = vadd.f32 %v1181_v22, %v5922_v41  ;;  %v5166_v22 = vld [vmem:[%s8244_s27 + $0x4b0] sm:$0xff] }
 0x4bd   :  { %1322 = vmatpush.msrb.mxu3 %v5130_v28  ;;  %v1184_v25 = vpop.f32.mrf.mxu2 }
 0x4be   :  { %v1185_v28 = vadd.f32 %v1184_v25, %v5915_v35  ;;  %v6676_v25 = vld [vmem:[%s8250_s28 + $0x18] sm:$0xff] }
 0x4bf   :  { %1323 = vmatpush.msrb.mxu3 %v5129_v30 }
 0x4c0   :  { %5113 = vmatmul.msk.f32.vlgmr.msra.gmra.mxu3 %vm148_vm1, %v6444_v46 }
 0x4c1   :  { %1324 = vmatpush.msrb.mxu3 %v5128_v31  ;;  %v1179_v31 = vadd.f32 %v1178_v50, %v5917_v36  ;;  %v5169_v50 = vld [vmem:[%s8244_s27 + $0x4c8] sm:$0xff] }
 0x4c3   :  { %1325 = vmatpush.msrb.mxu3 %v5127_v8 }
 0x4c8   :  { %5114 = vmatmul.msk.f32.gmra.mxu3 %vm148_vm1, %v6453_v47 }
 0x4d0   :  { %5115 = vmatmul.msk.f32.gmra.mxu3 %vm148_vm1, %v6462_v40 }
 0x4d8   :  { %5116 = vmatmul.msk.f32.gmra.mxu3 %vm148_vm1, %v6471_v54 }
 0x4e0   :  { %1326 = vmatmul.f32.vlgmr.msrb.gmra.mxu3 %v6480_v59 }
 0x4e8   :  { %1329 = vmatmul.f32.gmra.mxu3 %v6486_v2 }
 0x4f0   :  { %1332 = vmatmul.f32.gmra.mxu3 %v6492_v9 }
 0x4f8   :  { %1335 = vmatmul.f32.gmra.mxu3 %v6498_v11 }
 0x523   :  { %v1085_v32 = vpop.f32.mrf.mxu3 }
 0x524   :  { %v1086_v57 = vadd.f32 %v1085_v32, %v6067_v49 }
 0x526   :  { %v1097_v52 = vmax.f32 %v1086_v57, 0.0  ;;  %v6638_v57 = vld [vmem:[%s8250_s28 + $0x8] sm:$0xff] }
 0x52b   :  { %v1088_v34 = vpop.f32.mrf.mxu3 }
 0x52c   :  { %v1089_v20 = vadd.f32 %v1088_v34, %v6064_v44 }
 0x52e   :  { %v1098_v7 = vmax.f32 %v1089_v20, 0.0  ;;  %v5175_v20 = vld [vmem:[%s8244_s27 + $0x4f8] sm:$0xff] }
 0x533   :  { %v1091_v37 = vpop.f32.mrf.mxu3 }
 0x534   :  { %v1092_v43 = vadd.f32 %v1091_v37, %v6060_v38 }
 0x536   :  { %v1099_v62 = vmax.f32 %v1092_v43, 0.0 }
 0x53b   :  { %v1094_v42 = vpop.f32.mrf.mxu3 }
 0x53c   :  { %v1095_v27 = vadd.f32 %v1094_v42, %v6058_v33 }
 0x53e   :  { %v1100_v55 = vmax.f32 %v1095_v27, 0.0  ;;  %v5144_v27 = vld [vmem:[%s8244_s27 + $0x478] sm:$0xf] }
 0x540   :  { %1113 = vmatpush.msra.mxu1 %v1100_v55  ;;  %v5173_v55 = vld [vmem:[%s8244_s27 + $0x4e8] sm:$0xff] }
 0x542   :  { %1114 = vmatpush.msra.mxu1 %v1099_v62  ;;  %v5172_v62 = vld [vmem:[%s8244_s27 + $0x4e0] sm:$0xff] }
 0x543   :  { %v1204_v53 = vpop.f32.mrf.mxu3 }
 0x544   :  { %1115 = vmatpush.msra.mxu1 %v1098_v7  ;;  %v5171_v7 = vld [vmem:[%s8244_s27 + $0x4d8] sm:$0xff] }
 0x546   :  { %1116 = vmatpush.msra.mxu1 %v1097_v52  ;;  %v5168_v52 = vld [vmem:[%s8244_s27 + $0x4c0] sm:$0xff] }
 0x547   :  { %5088 = vmatmul.msk.f32.vlgmr.msra.gmra.mxu1 %vm247_vm2, %v6073_v56  ;;  %v1176_v56 = vadd.f32 %v1175_v39, %v5930_v48  ;;  %v6616_v39 = vld [vmem:[%s8250_s28] sm:$0xff] }
 0x54b   :  { %v1207_v3 = vpop.f32.mrf.mxu3 }
 0x54c   :  { %v1208_v34 = vadd.f32 %v1207_v3, %v1179_v31  ;;  %v5167_v3 = vld [vmem:[%s8244_s27 + $0x4b8] sm:$0xff]  ;;  %v5161_v31 = vld [vmem:[%s8244_s27 + $0x488] sm:$0xff] }
 0x54f   :  { %5089 = vmatmul.msk.f32.gmra.mxu1 %vm247_vm2, %v6080_v60  ;;  %v1205_v60 = vadd.f32 %v1204_v53, %v1176_v56  ;;  %v6657_v53 = vld [vmem:[%s8250_s28 + $0x10] sm:$0xff] }
 0x551   :  { %v1216_v43 = vmax.f32 %v1205_v60, 0.0 }
 0x553   :  { %v1210_v23 = vpop.f32.mrf.mxu3 }
 0x554   :  { %v1211_v8 = vadd.f32 %v1210_v23, %v1182_v5  ;;  %v5165_v23 = vld [vmem:[%s8244_s27 + $0x4a8] sm:$0xff]  ;;  %v5164_v5 = vld [vmem:[%s8244_s27 + $0x4a0] sm:$0xff] }
 0x556   :  { %v1218_v42 = vmax.f32 %v1211_v8, 0.0  ;;  %v5160_v8 = vld [vmem:[%s8244_s27 + $0x480] sm:$0xff] }
 0x557   :  { %5090 = vmatmul.msk.f32.gmra.mxu1 %vm247_vm2, %v6087_v0  ;;  %v1217_v0 = vmax.f32 %v1208_v34, 0.0 }
 0x55b   :  { %v1213_v30 = vpop.f32.mrf.mxu3 }
 0x55c   :  { %v1214_v32 = vadd.f32 %v1213_v30, %v1185_v28  ;;  %v5163_v28 = vld [vmem:[%s8244_s27 + $0x498] sm:$0xff]  ;;  %v5162_v30 = vld [vmem:[%s8244_s27 + $0x490] sm:$0xff] }
 0x55e   :  { %v1219_v37 = vmax.f32 %v1214_v32, 0.0  ;;  %v6704_v32 = vpop.f32.mrf.mxu0 }
 0x55f   :  { %5091 = vmatmul.msk.f32.gmra.mxu1 %vm247_vm2, %v6097_v13  ;;  %v5143_v13 = vld [vmem:[%s8244_s27 + $0x470] sm:$0xff]  ;;  %8265 = vst [vmem:[#allocation18_spill] sm:$0xff] %v6704_v32 }
 0x560   :  { %1232 = vmatpush.msrb.mxu0 %v1219_v37 }
 0x562   :  { %1233 = vmatpush.msrb.mxu0 %v1218_v42 }
 0x564   :  { %1234 = vmatpush.msrb.mxu0 %v1217_v0 }
 0x566   :  { %1235 = vmatpush.msrb.mxu0 %v1216_v43  ;;  %v6707_v56 = vpop.f32.mrf.mxu0 }
 0x567   :  { %5092 = vmatmul.msk.f32.gmra.mxu1 %vm247_vm2, %v6105_v24  ;;  %5117 = vmatmul.msk.f32.vlgmr.msrb.gmra.mxu0 %vm247_vm2, %v6616_v39  ;;  %v5174_v24 = vld [vmem:[%s8244_s27 + $0x4f0] sm:$0xff]  ;;  %8266 = vst [vmem:[#allocation19_spill] sm:$0xff] %v6707_v56  ;;  %v6870_v56 = vpop.permute.xlu0 %320 }
 0x568   :  { %5145 = vmatpush.msk.msra.mxu0 %vm161_vm0, %v5144_v27 }
 0x56a   :  { %1354 = vmatpush.msra.mxu0 %v5143_v13  ;;  %v1327_v13 = vpop.f32.mrf.mxu3 }
 0x56c   :  { %1462 = vmatpush.msrb.mxu0 %v5175_v20 }
 0x56e   :  { %1463 = vmatpush.msrb.mxu0 %v5174_v24  ;;  %v6710_v34 = vpop.f32.mrf.mxu0 }
 0x56f   :  { %5093 = vmatmul.msk.f32.gmra.mxu1 %vm247_vm2, %v6112_v26  ;;  %5118 = vmatmul.msk.f32.gmra.mxu0 %vm247_vm2, %v6638_v57  ;;  %v5170_v26 = vld [vmem:[%s8244_s27 + $0x4d0] sm:$0xff] }
 0x570   :  { %1464 = vmatpush.msrb.mxu0 %v5173_v55 }
 0x572   :  { %1465 = vmatpush.msrb.mxu0 %v5172_v62 }
 0x574   :  { %1466 = vmatpush.msrb.mxu0 %v5171_v7 }
 0x576   :  { %1467 = vmatpush.msrb.mxu0 %v5170_v26  ;;  %v6713_v37 = vpop.f32.mrf.mxu0 }
 0x577   :  { %5119 = vmatmul.msk.f32.gmra.mxu0 %vm247_vm2, %v6657_v53 }
 0x578   :  { %1468 = vmatpush.msrb.mxu0 %v5169_v50 }
 0x57a   :  { %1469 = vmatpush.msrb.mxu0 %v5168_v52 }
 0x57c   :  { %1470 = vmatpush.msrb.mxu0 %v5167_v3  ;;  %v1330_v3 = vpop.f32.mrf.mxu3 }
 0x57e   :  { %1471 = vmatpush.msrb.mxu0 %v5166_v22  ;;  %v6715_v60 = vpop.f32.mrf.mxu0 }
 0x57f   :  { %5120 = vmatmul.msk.f32.gmra.mxu0 %vm247_vm2, %v6676_v25  ;;  %8267 = vst [vmem:[#allocation20_spill] sm:$0xff] %v6715_v60 }
 0x580   :  { %1472 = vmatpush.msrb.mxu0 %v5165_v23 }
 0x582   :  { %1473 = vmatpush.msrb.mxu0 %v5164_v5  ;;  %v6726_v5 = vld [vmem:[%s8251_s2] sm:$0xff] }
 0x584   :  { %1474 = vmatpush.msrb.mxu0 %v5163_v28 }
 0x586   :  { %1475 = vmatpush.msrb.mxu0 %v5162_v30  ;;  %v6717_v42 = vpop.f32.mrf.mxu0  ;;  %v1333_v30 = vpop.f32.mrf.mxu3 }
 0x587   :  { %5146 = vmatmul.msk.f32.vlgmr.msra.gmra.mxu0 %vm148_vm1, %v6444_v46  ;;  %8268 = vst [vmem:[#allocation21_spill] sm:$0xff] %v6717_v42 }
 0x588   :  { %1476 = vmatpush.msrb.mxu0 %v5161_v31  ;;  %v6733_v31 = vld [vmem:[%s8251_s2 + $0x8] sm:$0xff] }
 0x58a   :  { %1477 = vmatpush.msrb.mxu0 %v5160_v8 }
 0x58f   :  { %5147 = vmatmul.msk.f32.gmra.mxu0 %vm148_vm1, %v6453_v47 }
 0x597   :  { %5148 = vmatmul.msk.f32.gmra.mxu0 %vm148_vm1, %v6462_v40 }
 0x59f   :  { %5149 = vmatmul.msk.f32.gmra.mxu0 %vm148_vm1, %v6471_v54 }
 0x5a7   :  { %1478 = vmatmul.f32.vlgmr.msrb.gmra.mxu0 %v6480_v59 }
 0x5af   :  { %1481 = vmatmul.f32.gmra.mxu0 %v6486_v2 }
 0x5b7   :  { %1484 = vmatmul.f32.gmra.mxu0 %v6492_v9 }
 0x5bf   :  { %1487 = vmatmul.f32.gmra.mxu0 %v6498_v11 }
 0x5e4   :  { %v1237_v0 = vpop.f32.mrf.mxu0 }
 0x5e5   :  { %v1238_v26 = vadd.f32 %v1237_v0, %v6067_v49  ;;  %v1336_v0 = vpop.f32.mrf.mxu3 }
 0x5e7   :  { %v1249_v23 = vmax.f32 %v1238_v26, 0.0  ;;  %v1328_v26 = vadd.f32 %v1327_v13, %v5930_v48  ;;  %v5177_v13 = vld [vmem:[%s8244_s27 + $0x508] sm:$0xf] }
 0x5ec   :  { %v1240_v43 = vpop.f32.mrf.mxu0 }
 0x5ed   :  { %v1241_v62 = vadd.f32 %v1240_v43, %v6064_v44  ;;  %v6740_v43 = vld [vmem:[%s8251_s2 + $0x10] sm:$0xff] }
 0x5ef   :  { %v1250_v52 = vmax.f32 %v1241_v62, 0.0 }
 0x5f4   :  { %v1243_v27 = vpop.f32.mrf.mxu0 }
 0x5f5   :  { %v1244_v24 = vadd.f32 %v1243_v27, %v6060_v38  ;;  %v1334_v27 = vadd.f32 %v1333_v30, %v5922_v41 }
 0x5f7   :  { %v1251_v50 = vmax.f32 %v1244_v24, 0.0 }
 0x5fc   :  { %v1246_v20 = vpop.f32.mrf.mxu0 }
 0x5fd   :  { %v1247_v55 = vadd.f32 %v1246_v20, %v6058_v33  ;;  %v1337_v20 = vadd.f32 %v1336_v0, %v5915_v35 }
 0x5ff   :  { %v1252_v7 = vmax.f32 %v1247_v55, 0.0  ;;  %v1331_v55 = vadd.f32 %v1330_v3, %v5917_v36 }
 0x601   :  { %1265 = vmatpush.msrb.mxu2 %v1252_v7 }
 0x603   :  { %1266 = vmatpush.msrb.mxu2 %v1251_v50 }
 0x604   :  { %v1356_v22 = vpop.f32.mrf.mxu0 }
 0x605   :  { %1267 = vmatpush.msrb.mxu2 %v1250_v52  ;;  %v1357_v30 = vadd.f32 %v1356_v22, %v1328_v26  ;;  %v5208_v22 = vld [vmem:[%s8244_s27 + $0x588] sm:$0xff]  ;;  %v5201_v26 = vld [vmem:[%s8244_s27 + $0x550] sm:$0xff] }
 0x607   :  { %1268 = vmatpush.msrb.mxu2 %v1249_v23  ;;  %v6751_v23 = vld [vmem:[%s8251_s2 + $0x18] sm:$0xff]  ;;  %v1368_v3 = vmax.f32 %v1357_v30, 0.0 }
 0x608   :  { %5121 = vmatmul.msk.f32.vlgmr.msrb.gmra.mxu2 %vm247_vm2, %v6726_v5  ;;  %v5198_v30 = vld [vmem:[%s8244_s27 + $0x538] sm:$0xff] }
 0x60c   :  { %v1359_v28 = vpop.f32.mrf.mxu0 }
 0x60d   :  { %v1360_v50 = vadd.f32 %v1359_v28, %v1331_v55  ;;  %v6761_v28 = vld [vmem:[%s8251_s2 + $0x20] sm:$0xff]  ;;  %v5204_v55 = vld [vmem:[%s8244_s27 + $0x568] sm:$0xff] }
 0x60f   :  { %v1369_v0 = vmax.f32 %v1360_v50, 0.0  ;;  %v5200_v50 = vld [vmem:[%s8244_s27 + $0x548] sm:$0xff] }
 0x610   :  { %5122 = vmatmul.msk.f32.gmra.mxu2 %vm247_vm2, %v6733_v31 }
 0x614   :  { %v1362_v8 = vpop.f32.mrf.mxu0 }
 0x615   :  { %v1363_v62 = vadd.f32 %v1362_v8, %v1334_v27  ;;  %v5207_v8 = vld [vmem:[%s8244_s27 + $0x580] sm:$0xff]  ;;  %v5206_v27 = vld [vmem:[%s8244_s27 + $0x578] sm:$0xff] }
 0x617   :  { %v1370_v12 = vmax.f32 %v1363_v62, 0.0  ;;  %v5203_v62 = vld [vmem:[%s8244_s27 + $0x560] sm:$0xff] }
 0x618   :  { %5123 = vmatmul.msk.f32.gmra.mxu2 %vm247_vm2, %v6740_v43 }
 0x61c   :  { %v1365_v24 = vpop.f32.mrf.mxu0 }
 0x61d   :  { %v1366_v7 = vadd.f32 %v1365_v24, %v1337_v20  ;;  %v6783_v20 = vld [vmem:[%s8251_s2 + $0x28] sm:$0xff]  ;;  %v5205_v24 = vld [vmem:[%s8244_s27 + $0x570] sm:$0xff] }
 0x61f   :  { %v1371_v52 = vmax.f32 %v1366_v7, 0.0  ;;  %v5202_v7 = vld [vmem:[%s8244_s27 + $0x558] sm:$0xff] }
 0x620   :  { %5124 = vmatmul.msk.f32.gmra.mxu2 %vm247_vm2, %v6751_v23 }
 0x621   :  { %1384 = vmatpush.msrb.mxu1 %v1371_v52  ;;  %v5199_v52 = vld [vmem:[%s8244_s27 + $0x540] sm:$0xff] }
 0x623   :  { %1385 = vmatpush.msrb.mxu1 %v1370_v12  ;;  %v5176_v12 = vld [vmem:[%s8244_s27 + $0x500] sm:$0xff] }
 0x625   :  { %1386 = vmatpush.msrb.mxu1 %v1369_v0  ;;  %v5197_v0 = vld [vmem:[%s8244_s27 + $0x530] sm:$0xff] }
 0x627   :  { %1387 = vmatpush.msrb.mxu1 %v1368_v3  ;;  %v5196_v3 = vld [vmem:[%s8244_s27 + $0x528] sm:$0xff] }
 0x628   :  { %5125 = vmatmul.msk.f32.gmra.mxu2 %vm247_vm2, %v6761_v28  ;;  %5150 = vmatmul.msk.f32.vlgmr.msrb.gmra.mxu1 %vm247_vm2, %v6616_v39 }
 0x629   :  { %5178 = vmatpush.msk.msra.mxu1 %vm161_vm0, %v5177_v13  ;;  %v5195_v13 = vld [vmem:[%s8244_s27 + $0x520] sm:$0xff] }
 0x62b   :  { %1506 = vmatpush.msra.mxu1 %v5176_v12  ;;  %v5194_v12 = vld [vmem:[%s8244_s27 + $0x518] sm:$0xff] }
 0x62d   :  { %1614 = vmatpush.msrb.mxu1 %v5208_v22  ;;  %v5193_v22 = vld [vmem:[%s8244_s27 + $0x510] sm:$0xff] }
 0x62f   :  { %1615 = vmatpush.msrb.mxu1 %v5207_v8  ;;  %v6841_v8 = vpop.f32.mrf.mxu1 }
 0x630   :  { %5126 = vmatmul.msk.f32.gmra.mxu2 %vm247_vm2, %v6783_v20  ;;  %5151 = vmatmul.msk.f32.gmra.mxu1 %vm247_vm2, %v6638_v57  ;;  %8269 = vst [vmem:[#allocation22_spill] sm:$0xff] %v6841_v8 }
 0x631   :  { %1616 = vmatpush.msrb.mxu1 %v5206_v27 }
 0x633   :  { %1617 = vmatpush.msrb.mxu1 %v5205_v24 }
 0x635   :  { %1618 = vmatpush.msrb.mxu1 %v5204_v55 }
 0x637   :  { %1619 = vmatpush.msrb.mxu1 %v5203_v62  ;;  %v6844_v27 = vpop.f32.mrf.mxu1 }
 0x638   :  { %5152 = vmatmul.msk.f32.gmra.mxu1 %vm247_vm2, %v6657_v53  ;;  %8270 = vst [vmem:[#allocation23_spill] sm:$0xff] %v6844_v27 }
 0x639   :  { %1620 = vmatpush.msrb.mxu1 %v5202_v7 }
 0x63b   :  { %1621 = vmatpush.msrb.mxu1 %v5201_v26 }
 0x63d   :  { %1622 = vmatpush.msrb.mxu1 %v5200_v50 }
 0x63f   :  { %1623 = vmatpush.msrb.mxu1 %v5199_v52  ;;  %v6847_v24 = vpop.f32.mrf.mxu1 }
 0x640   :  { %5153 = vmatmul.msk.f32.gmra.mxu1 %vm247_vm2, %v6676_v25 }
 0x641   :  { %1624 = vmatpush.msrb.mxu1 %v5198_v30 }
 0x643   :  { %1625 = vmatpush.msrb.mxu1 %v5197_v0 }
 0x645   :  { %1626 = vmatpush.msrb.mxu1 %v5196_v3 }
 0x647   :  { %1627 = vmatpush.msrb.mxu1 %v5195_v13  ;;  %v6850_v55 = vpop.f32.mrf.mxu1 }
 0x648   :  { %5179 = vmatmul.msk.f32.vlgmr.msra.gmra.mxu1 %vm148_vm1, %v6444_v46 }
 0x649   :  { %1628 = vmatpush.msrb.mxu1 %v5194_v12 }
 0x64b   :  { %1629 = vmatpush.msrb.mxu1 %v5193_v22 }
 0x64f   :  { %v1130_v62 = vpop.f32.mrf.mxu1 }
 0x650   :  { %5180 = vmatmul.msk.f32.gmra.mxu1 %vm148_vm1, %v6453_v47 }
 0x657   :  { %v1133_v7 = vpop.f32.mrf.mxu1 }
 0x658   :  { %5181 = vmatmul.msk.f32.gmra.mxu1 %vm148_vm1, %v6462_v40 }
 0x660   :  { %5182 = vmatmul.msk.f32.gmra.mxu1 %vm148_vm1, %v6471_v54 }
 0x668   :  { %1630 = vmatmul.f32.vlgmr.msrb.gmra.mxu1 %v6480_v59  ;;  %v1479_v59 = vpop.f32.mrf.mxu0 }
 0x670   :  { %1633 = vmatmul.f32.gmra.mxu1 %v6486_v2  ;;  %v1482_v22 = vpop.f32.mrf.mxu0 }
 0x678   :  { %1636 = vmatmul.f32.gmra.mxu1 %v6492_v9  ;;  %v1485_v14 = vpop.f32.mrf.mxu0 }
 0x680   :  { %1639 = vmatmul.f32.gmra.mxu1 %v6498_v11 }
 0x6a5   :  { %v1389_v26 = vpop.f32.mrf.mxu1 }
 0x6a6   :  { %v1390_v13 = vadd.f32 %v1389_v26, %v6067_v49  ;;  %v6862_v26 = vpop.permute.xlu2 %310 }
 0x6a8   :  { %v1401_v27 = vmax.f32 %v1390_v13, 0.0 }
 0x6ad   :  { %v1392_v50 = vpop.f32.mrf.mxu1 }
 0x6ae   :  { %v1393_v3 = vadd.f32 %v1392_v50, %v6064_v44 }
 0x6b0   :  { %v1402_v11 = vmax.f32 %v1393_v3, 0.0  ;;  %v1483_v3 = vadd.f32 %v1482_v22, %v5917_v36 }
 0x6b5   :  { %v1395_v52 = vpop.f32.mrf.mxu1 }
 0x6b6   :  { %v1396_v0 = vadd.f32 %v1395_v52, %v6060_v38 }
 0x6b8   :  { %v1403_v12 = vmax.f32 %v1396_v0, 0.0  ;;  %v1486_v0 = vadd.f32 %v1485_v14, %v5922_v41  ;;  %v6873_v14 = vadd.f32 %v1133_v7, %v6870_v56  ;;  %v6924_v7 = vld [vmem:[%s8271_s19 + $0x8] sm:$0xff] }
 0x6bd   :  { %v1398_v30 = vpop.f32.mrf.mxu1 }
 0x6be   :  { %v1399_v2 = vadd.f32 %v1398_v30, %v6058_v33  ;;  %v1488_v30 = vpop.f32.mrf.mxu0 }
 0x6c0   :  { %v1404_v9 = vmax.f32 %v1399_v2, 0.0  ;;  %v1489_v2 = vadd.f32 %v1488_v30, %v5915_v35  ;;  %v6875_v30 = vpop.permute.xlu2 %315 }
 0x6c2   :  { %1417 = vmatpush.msra.mxu3 %v1404_v9 }
 0x6c4   :  { %1418 = vmatpush.msra.mxu3 %v1403_v12  ;;  %v1480_v12 = vadd.f32 %v1479_v59, %v5930_v48  ;;  %v6879_v59 = vadd.f32 %v6142_v61, %v6862_v26  ;;  %v5209_v61 = vld [vmem:[%s8244_s27 + $0x590] sm:$0xff] }
 0x6c5   :  { %v1508_v8 = vpop.f32.mrf.mxu1 }
 0x6c6   :  { %1419 = vmatpush.msra.mxu3 %v1402_v11  ;;  %v1509_v60 = vadd.f32 %v1508_v8, %v1480_v12  ;;  %v5210_v8 = vld [vmem:[%s8244_s27 + $0x598] sm:$0xf] }
 0x6c8   :  { %1420 = vmatpush.msra.mxu3 %v1401_v27 }
 0x6c9   :  { %5154 = vmatmul.msk.f32.vlgmr.msra.gmra.mxu3 %vm247_vm2, %v6726_v5 }
 0x6cd   :  { %v1511_v52 = vpop.f32.mrf.mxu1 }
 0x6ce   :  { %v1512_v11 = vadd.f32 %v1511_v52, %v1483_v3  ;;  %v6882_v52 = vadd.f32 %v1130_v62, %v6875_v30 }
 0x6d0   :  { %v1521_v22 = vmax.f32 %v1512_v11, 0.0 }
 0x6d1   :  { %5155 = vmatmul.msk.f32.gmra.mxu3 %vm247_vm2, %v6733_v31 }
 0x6d5   :  { %v1514_v50 = vpop.f32.mrf.mxu1 }
 0x6d6   :  { %v1515_v9 = vadd.f32 %v1514_v50, %v1486_v0  ;;  %v6884_v50 = vpop.permute.xlu1 %305  ;;  %v1520_v0 = vmax.f32 %v1509_v60, 0.0 }
 0x6d8   :  { %v1522_v42 = vmax.f32 %v1515_v9, 0.0 }
 0x6d9   :  { %5156 = vmatmul.msk.f32.gmra.mxu3 %vm247_vm2, %v6740_v43 }
 0x6dd   :  { %v1517_v27 = vpop.f32.mrf.mxu1 }
 0x6de   :  { %v1518_v13 = vadd.f32 %v1517_v27, %v1489_v2  ;;  %v6928_v2 = vpop.f32.mrf.mxu2 }
 0x6df   :  { %8272 = vst [vmem:[#allocation24_spill] sm:$0xff] %v6928_v2 }
 0x6e0   :  { %v1523_v32 = vmax.f32 %v1518_v13, 0.0 }
 0x6e1   :  { %5157 = vmatmul.msk.f32.gmra.mxu3 %vm247_vm2, %v6751_v23 }
 0x6e2   :  { %1536 = vmatpush.msra.mxu2 %v1523_v32  ;;  %v6888_v32 = vadd.f32 %v6140_v58, %v6884_v50 }
 0x6e4   :  { %1537 = vmatpush.msra.mxu2 %v1522_v42  ;;  %v1745_v42 = vadd.f32 %v6873_v14, %v6879_v59  ;;  %v1744_v58 = vadd.f32 %v6882_v52, %v6888_v32 }
 0x6e6   :  { %1538 = vmatpush.msra.mxu2 %v1521_v22  ;;  %v1845_v60 = vmax.f32 %v1745_v42, 0.0  ;;  %v1844_v62 = vmax.f32 %v1744_v58, 0.0  ;;  %v1631_v42 = vpop.f32.mrf.mxu1 }
 0x6e8   :  { %1539 = vmatpush.msra.mxu2 %v1520_v0 }
 0x6e9   :  { %5158 = vmatmul.msk.f32.gmra.mxu3 %vm247_vm2, %v6761_v28  ;;  %5183 = vmatmul.msk.f32.vlgmr.msra.gmra.mxu2 %vm247_vm2, %v6616_v39 }
 0x6ea   :  { %5211 = vmatpush.msk.msrb.mxu2 %vm161_vm0, %v5210_v8 }
 0x6ec   :  { %1658 = vmatpush.msrb.mxu2 %v5209_v61 }
 0x6ee   :  { %5421 = vmatpush.msra.mxu2 %v1845_v60 }
 0x6f0   :  { %5422 = vmatpush.msra.mxu2 %v1844_v62 }
 0x6f1   :  { %5159 = vmatmul.msk.f32.gmra.mxu3 %vm247_vm2, %v6783_v20  ;;  %5184 = vmatmul.msk.f32.gmra.mxu2 %vm247_vm2, %v6638_v57 }
 0x6f9   :  { %5185 = vmatmul.msk.f32.gmra.mxu2 %vm247_vm2, %v6657_v53 }
 0x701   :  { %5186 = vmatmul.msk.f32.gmra.mxu2 %vm247_vm2, %v6676_v25 }
 0x709   :  { %5212 = vmatmul.msk.f32.vlgmr.msrb.gmra.mxu2 %vm148_vm1, %v6444_v46  ;;  %v6930_v46 = vpop.f32.mrf.mxu2 }
 0x70a   :  { %8273 = vst [vmem:[#allocation25_spill] sm:$0xff] %v6930_v46 }
 0x711   :  { %5213 = vmatmul.msk.f32.gmra.mxu2 %vm148_vm1, %v6453_v47  ;;  %v6932_v47 = vpop.f32.mrf.mxu2 }
 0x719   :  { %5214 = vmatmul.msk.f32.gmra.mxu2 %vm148_vm1, %v6462_v40  ;;  %v6934_v27 = vpop.f32.mrf.mxu2 }
 0x721   :  { %5215 = vmatmul.msk.f32.gmra.mxu2 %vm148_vm1, %v6471_v54  ;;  %v1282_v54 = vpop.f32.mrf.mxu2 }
 0x729   :  { %5227 = vmatmul.msk.f32.vlgmr.msra.gmra.mxu2 %vm1959_vm3, %v6924_v7  ;;  %v1285_v9 = vpop.f32.mrf.mxu2 }
 0x74c   :  { %v6936_v40 = vpop.f32.mrf.mxu3 }
 0x74d   :  { %8274 = vst [vmem:[#allocation26_spill] sm:$0xff] %v6936_v40 }
 0x754   :  { %v6938_v3 = vpop.f32.mrf.mxu3 }
 0x755   :  { %8275 = vst [vmem:[#allocation27_spill] sm:$0xff] %v6938_v3 }
 0x75c   :  { %v6940_v13 = vpop.f32.mrf.mxu3 }
 0x75d   :  { %8276 = vst [vmem:[#allocation28_spill] sm:$0xff] %v6940_v13 }
 0x764   :  { %v6942_v11 = vpop.f32.mrf.mxu3 }
 0x765   :  { %8277 = vst [vmem:[#allocation29_spill] sm:$0xff] %v6942_v11  ;;  %v1634_v11 = vpop.f32.mrf.mxu1 }
 0x76c   :  { %v1541_v12 = vpop.f32.mrf.mxu2  ;;  %v1434_v8 = vpop.f32.mrf.mxu3 }
 0x76d   :  { %v1542_v3 = vadd.f32 %v1541_v12, %v6067_v49  ;;  %v6952_v45 = vadd.f32 %v1434_v8, %v6875_v30 }
 0x76f   :  { %v1553_v10 = vmax.f32 %v1542_v3, 0.0 }
 0x774   :  { %v1544_v22 = vpop.f32.mrf.mxu2  ;;  %v1437_v46 = vpop.f32.mrf.mxu3 }
 0x775   :  { %v1545_v40 = vadd.f32 %v1544_v22, %v6064_v44  ;;  %v6949_v51 = vadd.f32 %v1437_v46, %v6870_v56 }
 0x777   :  { %v1554_v13 = vmax.f32 %v1545_v40, 0.0  ;;  %v1749_v22 = vadd.f32 %v6949_v51, %v6879_v59  ;;  %v1637_v40 = vpop.f32.mrf.mxu1 }
 0x77c   :  { %v1547_v0 = vpop.f32.mrf.mxu2 }
 0x77d   :  { %v1548_v58 = vadd.f32 %v1547_v0, %v6060_v38 }
 0x77f   :  { %v1555_v1 = vmax.f32 %v1548_v58, 0.0  ;;  %v6968_v58 = vadd.f32 %v1285_v9, %v6870_v56 }
 0x784   :  { %v1550_v61 = vpop.f32.mrf.mxu2 }
 0x785   :  { %v1551_v2 = vadd.f32 %v1550_v61, %v6058_v33 }
 0x787   :  { %v1556_v63 = vmax.f32 %v1551_v2, 0.0  ;;  %v1849_v2 = vmax.f32 %v1749_v22, 0.0  ;;  %v1632_v22 = vadd.f32 %v1631_v42, %v5930_v48  ;;  %v6990_v42 = vadd.f32 %v6320_v29, %v6862_v26 }
 0x789   :  { %1569 = vmatpush.msra.mxu0 %v1556_v63  ;;  %v1748_v63 = vadd.f32 %v6952_v45, %v6888_v32 }
 0x78b   :  { %1570 = vmatpush.msra.mxu0 %v1555_v1  ;;  %v1848_v46 = vmax.f32 %v1748_v63, 0.0 }
 0x78c   :  { %v1660_v0 = vpop.f32.mrf.mxu2 }
 0x78d   :  { %1571 = vmatpush.msra.mxu0 %v1554_v13  ;;  %v1640_v13 = vpop.f32.mrf.mxu1 }
 0x78e   :  { %v1641_v12 = vadd.f32 %v1640_v13, %v5915_v35 }
 0x78f   :  { %1572 = vmatpush.msra.mxu0 %v1553_v10  ;;  %v1638_v10 = vadd.f32 %v1637_v40, %v5922_v41  ;;  %v1661_v41 = vadd.f32 %v1660_v0, %v1632_v22  ;;  %v6994_v0 = vadd.f32 %v6318_v18, %v6884_v50 }
 0x790   :  { %5187 = vmatmul.msk.f32.vlgmr.msra.gmra.mxu0 %vm247_vm2, %v6726_v5 }
 0x791   :  { %1980 = vmatpush.msrb.mxu0 %v1845_v60  ;;  %v1672_v9 = vmax.f32 %v1661_v41, 0.0 }
 0x793   :  { %1981 = vmatpush.msrb.mxu0 %v1844_v62  ;;  %v1635_v62 = vadd.f32 %v1634_v11, %v5917_v36  ;;  %v1747_v36 = vadd.f32 %v6968_v58, %v6879_v59 }
 0x794   :  { %v1663_v1 = vpop.f32.mrf.mxu2 }
 0x795   :  { %2026 = vmatpush.msra.mxu0 %v1849_v2  ;;  %v1664_v63 = vadd.f32 %v1663_v1, %v1635_v62  ;;  %v1847_v11 = vmax.f32 %v1747_v36, 0.0  ;;  %v7001_v1 = vld [vmem:[%s8271_s19] sm:$0xff] }
 0x797   :  { %2027 = vmatpush.msra.mxu0 %v1848_v46  ;;  %v6974_v46 = vadd.f32 %v1282_v54, %v6875_v30  ;;  %v1673_v40 = vmax.f32 %v1664_v63, 0.0 }
 0x798   :  { %5188 = vmatmul.msk.f32.gmra.mxu0 %vm247_vm2, %v6733_v31 }
 0x799   :  { %v1746_v48 = vadd.f32 %v6974_v46, %v6888_v32 }
 0x79b   :  { %v1846_v54 = vmax.f32 %v1746_v48, 0.0  ;;  %v7059_v48 = vadd.f32 %v6507_v17, %v6862_v26 }
 0x79c   :  { %v1666_v3 = vpop.f32.mrf.mxu2 }
 0x79d   :  { %v1667_v8 = vadd.f32 %v1666_v3, %v1638_v10  ;;  %v1754_v3 = vadd.f32 %v6882_v52, %v6994_v0  ;;  %v1777_v17 = vadd.f32 %v6968_v58, %v7059_v48 }
 0x79f   :  { %v1674_v35 = vmax.f32 %v1667_v8, 0.0  ;;  %v1854_v18 = vmax.f32 %v1754_v3, 0.0 }
 0x7a0   :  { %5189 = vmatmul.msk.f32.gmra.mxu0 %vm247_vm2, %v6740_v43 }
 0x7a4   :  { %v1669_v60 = vpop.f32.mrf.mxu2 }
 0x7a5   :  { %v1670_v61 = vadd.f32 %v1669_v60, %v1641_v12 }
 0x7a7   :  { %v1675_v2 = vmax.f32 %v1670_v61, 0.0  ;;  %v7039_v61 = vadd.f32 %v6332_v6, %v6862_v26  ;;  %v1757_v6 = vadd.f32 %v6968_v58, %v6990_v42 }
 0x7a8   :  { %5190 = vmatmul.msk.f32.gmra.mxu0 %vm247_vm2, %v6751_v23 }
 0x7a9   :  { %1688 = vmatpush.msrb.mxu3 %v1675_v2 }
 0x7ab   :  { %1689 = vmatpush.msrb.mxu3 %v1674_v35  ;;  %v7051_v35 = vadd.f32 %v6330_v4, %v6884_v50  ;;  %v1756_v4 = vadd.f32 %v6974_v46, %v6994_v0 }
 0x7ad   :  { %1690 = vmatpush.msrb.mxu3 %v1673_v40  ;;  %v1768_v3 = vadd.f32 %v6952_v45, %v7051_v35 }
 0x7af   :  { %1691 = vmatpush.msrb.mxu3 %v1672_v9  ;;  %v1769_v9 = vadd.f32 %v6949_v51, %v7039_v61 }
 0x7b0   :  { %5191 = vmatmul.msk.f32.gmra.mxu0 %vm247_vm2, %v6761_v28  ;;  %5216 = vmatmul.msk.f32.vlgmr.msrb.gmra.mxu3 %vm247_vm2, %v6616_v39  ;;  %v1755_v39 = vadd.f32 %v6873_v14, %v6990_v42 }
 0x7b1   :  { %2003 = vmatpush.msra.mxu3 %v1847_v11 }
 0x7b3   :  { %2004 = vmatpush.msra.mxu3 %v1846_v54 }
 0x7b8   :  { %5192 = vmatmul.msk.f32.gmra.mxu0 %vm247_vm2, %v6783_v20  ;;  %5217 = vmatmul.msk.f32.gmra.mxu3 %vm247_vm2, %v6638_v57  ;;  %v1855_v57 = vmax.f32 %v1755_v39, 0.0 }
 0x7c0   :  { %5218 = vmatmul.msk.f32.gmra.mxu3 %vm247_vm2, %v6657_v53  ;;  %5226 = vmatmul.msk.f32.vlgmr.msrb.gmra.mxu0 %vm1959_vm3, %v7001_v1 }
 0x7c1   :  { %2095 = vmatpush.msrb.mxu0 %v1855_v57  ;;  %v7067_v57 = vadd.f32 %v6505_v15, %v6884_v50  ;;  %v1764_v15 = vadd.f32 %v6882_v52, %v7051_v35 }
 0x7c3   :  { %2096 = vmatpush.msrb.mxu0 %v1854_v18  ;;  %v1765_v18 = vadd.f32 %v6873_v14, %v7039_v61 }
 0x7c8   :  { %5219 = vmatmul.msk.f32.gmra.mxu3 %vm247_vm2, %v6676_v25  ;;  %5230 = vmatmul.msk.f32.vlgmr.msra.gmra.mxu0 %vm1959_vm3, %v7001_v1 }
 0x7d0   :  { %5228 = vmatmul.msk.f32.vlgmr.msra.gmra.mxu3 %vm1959_vm3, %v7001_v1  ;;  %5231 = vmatmul.msk.f32.gmra.mxu0 %vm1959_vm3, %v6924_v7 }
 0x7d8   :  { %5229 = vmatmul.msk.f32.gmra.mxu3 %vm1959_vm3, %v6924_v7  ;;  %5236 = vmatmul.msk.f32.vlgmr.msrb.gmra.mxu0 %vm1959_vm3, %v7001_v1 }
 0x7e0   :  { %5237 = vmatmul.msk.f32.gmra.mxu0 %vm1959_vm3, %v6924_v7 }
 0x80d   :  { %v7023_v29 = vpop.f32.mrf.mxu0 }
 0x815   :  { %v7025_v53 = vpop.f32.mrf.mxu0 }
 0x81d   :  { %v7027_v25 = vpop.f32.mrf.mxu0 }
 0x825   :  { %v7029_v13 = vpop.f32.mrf.mxu0 }
 0x82d   :  { %v1586_v10 = vpop.f32.mrf.mxu0 }
 0x82e   :  { %v7032_v60 = vadd.f32 %v1586_v10, %v6875_v30  ;;  %v1857_v10 = vmax.f32 %v1757_v6, 0.0  ;;  %v1864_v6 = vmax.f32 %v1764_v15, 0.0 }
 0x830   :  { %v1750_v2 = vadd.f32 %v7032_v60, %v6888_v32  ;;  %v1760_v41 = vadd.f32 %v7032_v60, %v6994_v0 }
 0x832   :  { %v1850_v54 = vmax.f32 %v1750_v2, 0.0  ;;  %v1860_v39 = vmax.f32 %v1760_v41, 0.0  ;;  %v1868_v2 = vmax.f32 %v1768_v3, 0.0  ;;  %v1865_v41 = vmax.f32 %v1765_v18, 0.0 }
 0x833   :  { %v1693_v12 = vpop.f32.mrf.mxu3 }
 0x835   :  { %v1589_v62 = vpop.f32.mrf.mxu0 }
 0x836   :  { %v7035_v8 = vadd.f32 %v1589_v62, %v6870_v56  ;;  %v1869_v62 = vmax.f32 %v1769_v9, 0.0 }
 0x838   :  { %v1751_v22 = vadd.f32 %v7035_v8, %v6879_v59  ;;  %v1761_v63 = vadd.f32 %v7035_v8, %v6990_v42 }
 0x83a   :  { %v1851_v40 = vmax.f32 %v1751_v22, 0.0  ;;  %v1861_v36 = vmax.f32 %v1761_v63, 0.0  ;;  %v1776_v22 = vadd.f32 %v6974_v46, %v7067_v57  ;;  %v1856_v63 = vmax.f32 %v1756_v4, 0.0 }
 0x83b   :  { %v1696_v11 = vpop.f32.mrf.mxu3 }
 0x83c   :  { %2049 = vmatpush.msrb.mxu2 %v1851_v40  ;;  %2164 = vmatpush.msra.mxu0 %v1861_v36  ;;  %v1877_v40 = vmax.f32 %v1777_v17, 0.0  ;;  %v1876_v9 = vmax.f32 %v1776_v22, 0.0 }
 0x83e   :  { %2050 = vmatpush.msrb.mxu2 %v1850_v54  ;;  %2165 = vmatpush.msra.mxu0 %v1860_v39  ;;  %v7087_v54 = vadd.f32 %v6713_v37, %v6862_v26  ;;  %v7091_v39 = vadd.f32 %v6710_v34, %v6884_v50  ;;  %v1694_v34 = vadd.f32 %v1693_v12, %v6067_v49 }
 0x83f   :  { %5232 = vmatmul.msk.f32.vlgmr.msrb.gmra.mxu2 %vm1959_vm3, %v7001_v1  ;;  %5242 = vmatmul.msk.f32.vlgmr.msra.gmra.mxu0 %vm1959_vm3, %v7001_v1 }
 0x840   :  { %2118 = vmatpush.msra.mxu2 %v1857_v10  ;;  %2256 = vmatpush.msrb.mxu0 %v1869_v62  ;;  %v1785_v4 = vadd.f32 %v6873_v14, %v7087_v54  ;;  %v1784_v10 = vadd.f32 %v6882_v52, %v7091_v39  ;;  %v1697_v62 = vadd.f32 %v1696_v11, %v6064_v44 }
 0x841   :  { %v7149_v11 = vadd.f32 %v6850_v55, %v6862_v26  ;;  %v7165_v55 = vadd.f32 %v6511_v21, %v6870_v56  ;;  %v1759_v21 = vadd.f32 %v6949_v51, %v6990_v42 }
 0x842   :  { %2119 = vmatpush.msra.mxu2 %v1856_v63  ;;  %2257 = vmatpush.msrb.mxu0 %v1868_v2  ;;  %v1885_v37 = vmax.f32 %v1785_v4, 0.0  ;;  %v1705_v63 = vmax.f32 %v1694_v34, 0.0 }
 0x843   :  { %v1699_v36 = vpop.f32.mrf.mxu3  ;;  %v1801_v34 = vadd.f32 %v7149_v11, %v7165_v55 }
 0x844   :  { %2210 = vmatpush.msrb.mxu2 %v1865_v41  ;;  %2348 = vmatpush.msra.mxu0 %v1877_v40  ;;  %v1700_v18 = vadd.f32 %v1699_v36, %v6060_v38  ;;  %v1884_v38 = vmax.f32 %v1784_v10, 0.0  ;;  %v7177_v10 = vadd.f32 %v6338_v16, %v6870_v56  ;;  %v7191_v16 = vadd.f32 %v6934_v27, %v6862_v26 }
 0x845   :  { %v7203_v27 = vadd.f32 %v6932_v47, %v6884_v50  ;;  %v1767_v47 = vadd.f32 %v6968_v58, %v7039_v61 }
 0x846   :  { %2211 = vmatpush.msrb.mxu2 %v1864_v6  ;;  %2349 = vmatpush.msra.mxu0 %v1876_v9  ;;  %v1707_v22 = vmax.f32 %v1700_v18, 0.0 }
 0x847   :  { %5233 = vmatmul.msk.f32.gmra.mxu2 %vm1959_vm3, %v6924_v7  ;;  %5243 = vmatmul.msk.f32.gmra.mxu0 %vm1959_vm3, %v6924_v7 }
 0x84b   :  { %v1702_v3 = vpop.f32.mrf.mxu3 }
 0x84c   :  { %v1703_v17 = vadd.f32 %v1702_v3, %v6058_v33  ;;  %v1706_v33 = vmax.f32 %v1697_v62, 0.0  ;;  %v7185_v62 = vadd.f32 %v6509_v19, %v6875_v30  ;;  %v1758_v19 = vadd.f32 %v6952_v45, %v6994_v0 }
 0x84e   :  { %v1708_v15 = vmax.f32 %v1703_v17, 0.0 }
 0x84f   :  { %5238 = vmatmul.msk.f32.vlgmr.msra.gmra.mxu2 %vm1959_vm3, %v7001_v1  ;;  %5250 = vmatmul.msk.f32.vlgmr.msrb.gmra.mxu0 %vm1959_vm3, %v7001_v1 }
 0x850   :  { %2440 = vmatpush.msrb.mxu0 %v1885_v37  ;;  %1721 = vmatpush.msra.mxu1 %v1708_v15 }
 0x852   :  { %2441 = vmatpush.msrb.mxu0 %v1884_v38  ;;  %1722 = vmatpush.msra.mxu1 %v1707_v22  ;;  %v1781_v38 = vadd.f32 %v7035_v8, %v7059_v48 }
 0x854   :  { %1723 = vmatpush.msra.mxu1 %v1706_v33  ;;  %v1770_v33 = vadd.f32 %v7032_v60, %v7051_v35 }
 0x856   :  { %1724 = vmatpush.msra.mxu1 %v1705_v63 }
 0x857   :  { %5220 = vmatmul.msk.f32.vlgmr.msra.gmra.mxu1 %vm247_vm2, %v6726_v5  ;;  %5239 = vmatmul.msk.f32.gmra.mxu2 %vm1959_vm3, %v6924_v7 }
 0x858   :  { %5251 = vmatmul.msk.f32.gmra.mxu0 %vm1959_vm3, %v6924_v7 }
 0x85f   :  { %5221 = vmatmul.msk.f32.gmra.mxu1 %vm247_vm2, %v6733_v31  ;;  %5246 = vmatmul.msk.f32.vlgmr.msrb.gmra.mxu2 %vm1959_vm3, %v7001_v1 }
 0x860   :  { %5258 = vmatmul.msk.f32.vlgmr.msra.gmra.mxu0 %vm1959_vm3, %v7001_v1 }
 0x867   :  { %5222 = vmatmul.msk.f32.gmra.mxu1 %vm247_vm2, %v6740_v43  ;;  %5247 = vmatmul.msk.f32.gmra.mxu2 %vm1959_vm3, %v6924_v7 }
 0x868   :  { %5259 = vmatmul.msk.f32.gmra.mxu0 %vm1959_vm3, %v6924_v7 }
 0x86f   :  { %5223 = vmatmul.msk.f32.gmra.mxu1 %vm247_vm2, %v6751_v23 }
 0x870   :  { %5266 = vmatmul.msk.f32.vlgmr.msrb.gmra.mxu0 %vm1959_vm3, %v7001_v1 }
 0x877   :  { %5224 = vmatmul.msk.f32.gmra.mxu1 %vm247_vm2, %v6761_v28 }
 0x878   :  { %5267 = vmatmul.msk.f32.gmra.mxu0 %vm1959_vm3, %v6924_v7 }
 0x87f   :  { %5225 = vmatmul.msk.f32.gmra.mxu1 %vm247_vm2, %v6783_v20 }
 0x8d4   :  { %v7133_v44 = vpop.f32.mrf.mxu1 }
 0x8dc   :  { %v7135_v49 = vpop.f32.mrf.mxu1 }
 0x8e4   :  { %v7137_v5 = vpop.f32.mrf.mxu1 }
 0x8ec   :  { %v7139_v31 = vpop.f32.mrf.mxu1 }
 0x8f4   :  { %v1738_v43 = vpop.f32.mrf.mxu1 }
 0x8f5   :  { %v7142_v23 = vadd.f32 %v1738_v43, %v6875_v30  ;;  %v1859_v43 = vmax.f32 %v1759_v21, 0.0 }
 0x8f7   :  { %v1752_v20 = vadd.f32 %v7142_v23, %v6888_v32  ;;  %v1762_v2 = vadd.f32 %v7142_v23, %v6994_v0  ;;  %v7169_v32 = vadd.f32 %v6847_v24, %v6884_v50  ;;  %v1792_v9 = vadd.f32 %v7142_v23, %v7091_v39 }
 0x8f8   :  { %v1771_v24 = vadd.f32 %v7035_v8, %v7039_v61 }
 0x8f9   :  { %v1852_v15 = vmax.f32 %v1752_v20, 0.0  ;;  %v1862_v37 = vmax.f32 %v1762_v2, 0.0  ;;  %v1892_v22 = vmax.f32 %v1792_v9, 0.0  ;;  %v1800_v63 = vadd.f32 %v7169_v32, %v7185_v62  ;;  %v8278_v2 = vld [vmem:[#allocation15_spill] sm:$0xff] }
 0x8fa   :  { %v1780_v20 = vadd.f32 %v7032_v60, %v7067_v57  ;;  %v7209_v0 = vadd.f32 %v8278_v2, %v6875_v30  ;;  %v1870_v9 = vmax.f32 %v1770_v33, 0.0 }
 0x8fc   :  { %v1741_v12 = vpop.f32.mrf.mxu1  ;;  %v1808_v21 = vadd.f32 %v7203_v27, %v7209_v0 }
 0x8fd   :  { %v7145_v28 = vadd.f32 %v1741_v12, %v6870_v56  ;;  %v1871_v12 = vmax.f32 %v1771_v24, 0.0  ;;  %v1867_v24 = vmax.f32 %v1767_v47, 0.0  ;;  %v1787_v47 = vadd.f32 %v6968_v58, %v7087_v54 }
 0x8ff   :  { %v1753_v41 = vadd.f32 %v7145_v28, %v6879_v59  ;;  %v1763_v40 = vadd.f32 %v7145_v28, %v6990_v42  ;;  %v1773_v36 = vadd.f32 %v7145_v28, %v7039_v61  ;;  %v1793_v6 = vadd.f32 %v7145_v28, %v7087_v54 }
 0x900   :  { %v1772_v59 = vadd.f32 %v7142_v23, %v7051_v35  ;;  %v1858_v61 = vmax.f32 %v1758_v19, 0.0  ;;  %v8279_v19 = vld [vmem:[#allocation13_spill] sm:$0xff] }
 0x901   :  { %v1853_v4 = vmax.f32 %v1753_v41, 0.0  ;;  %v1863_v3 = vmax.f32 %v1763_v40, 0.0  ;;  %v1873_v18 = vmax.f32 %v1773_v36, 0.0  ;;  %v1893_v17 = vmax.f32 %v1793_v6, 0.0 }
 0x902   :  { %v1872_v42 = vmax.f32 %v1772_v59, 0.0  ;;  %v1779_v41 = vadd.f32 %v6949_v51, %v7059_v48  ;;  %v1881_v40 = vmax.f32 %v1781_v38, 0.0  ;;  %v1901_v36 = vmax.f32 %v1801_v34, 0.0 }
 0x903   :  { %2072 = vmatpush.msrb.mxu3 %v1853_v4  ;;  %2187 = vmatpush.msrb.mxu1 %v1863_v3  ;;  %v1789_v6 = vadd.f32 %v6949_v51, %v7087_v54  ;;  %v1809_v59 = vadd.f32 %v7191_v16, %v7177_v10  ;;  %v1766_v4 = vadd.f32 %v6974_v46, %v7051_v35  ;;  %v1880_v51 = vmax.f32 %v1780_v20, 0.0  ;;  %v8281_v20 = vld [vmem:[#allocation28_spill] sm:$0xff] }
 0x904   :  { %2302 = vmatpush.msra.mxu2 %v1873_v18  ;;  %2532 = vmatpush.msra.mxu0 %v1893_v17  ;;  %v1778_v3 = vadd.f32 %v6952_v45, %v7067_v57  ;;  %v1900_v18 = vmax.f32 %v1800_v63, 0.0  ;;  %v1788_v17 = vadd.f32 %v6952_v45, %v7091_v39  ;;  %v1908_v38 = vmax.f32 %v1808_v21, 0.0  ;;  %v7235_v45 = vpop.f32.mrf.mxu0  ;;  %v8280_v63 = vld [vmem:[#allocation29_spill] sm:$0xff] }
 0x905   :  { %2073 = vmatpush.msrb.mxu3 %v1852_v15  ;;  %2188 = vmatpush.msrb.mxu1 %v1862_v37  ;;  %v1879_v15 = vmax.f32 %v1779_v41, 0.0  ;;  %v1889_v35 = vmax.f32 %v1789_v6, 0.0  ;;  %v1909_v37 = vmax.f32 %v1809_v59, 0.0  ;;  %v1866_v34 = vmax.f32 %v1766_v4, 0.0 }
 0x906   :  { %2303 = vmatpush.msra.mxu2 %v1872_v42  ;;  %2533 = vmatpush.msra.mxu0 %v1892_v22  ;;  %v1878_v42 = vmax.f32 %v1778_v3, 0.0  ;;  %v1888_v22 = vmax.f32 %v1788_v17, 0.0  ;;  %v7247_v33 = vadd.f32 %v8279_v19, %v6870_v56  ;;  %v7257_v2 = vadd.f32 %v8281_v20, %v6884_v50 }
 0x907   :  { %5234 = vmatmul.msk.f32.vlgmr.msrb.gmra.mxu3 %vm1959_vm3, %v7001_v1  ;;  %5244 = vmatmul.msk.f32.vlgmr.msrb.gmra.mxu1 %vm1959_vm3, %v7001_v1  ;;  %v1774_v6 = vadd.f32 %v6882_v52, %v7067_v57  ;;  %v1786_v59 = vadd.f32 %v6974_v46, %v7091_v39 }
 0x908   :  { %2141 = vmatpush.msra.mxu3 %v1859_v43  ;;  %2279 = vmatpush.msra.mxu1 %v1871_v12  ;;  %v7251_v43 = vadd.f32 %v8280_v63, %v6862_v26  ;;  %v1775_v12 = vadd.f32 %v6873_v14, %v7059_v48  ;;  %v1797_v41 = vadd.f32 %v7149_v11, %v7247_v33 }
 0x909   :  { %5254 = vmatmul.msk.f32.vlgmr.msra.gmra.mxu2 %vm1959_vm3, %v7001_v1  ;;  %5274 = vmatmul.msk.f32.vlgmr.msra.gmra.mxu0 %vm1959_vm3, %v7001_v1  ;;  %v1874_v46 = vmax.f32 %v1774_v6, 0.0  ;;  %v1782_v63 = vadd.f32 %v7142_v23, %v7067_v57 }
 0x90a   :  { %2394 = vmatpush.msrb.mxu2 %v1881_v40  ;;  %2624 = vmatpush.msrb.mxu0 %v1901_v36  ;;  %v8282_v40 = vld [vmem:[#allocation11_spill] sm:$0xff]  ;;  %v1817_v14 = vadd.f32 %v7251_v43, %v7247_v33  ;;  %v1897_v4 = vmax.f32 %v1797_v41, 0.0 }
 0x90b   :  { %2142 = vmatpush.msra.mxu3 %v1858_v61  ;;  %2280 = vmatpush.msra.mxu1 %v1870_v9  ;;  %v7265_v36 = vadd.f32 %v8282_v40, %v6875_v30  ;;  %v1875_v61 = vmax.f32 %v1775_v12, 0.0  ;;  %v1887_v9 = vmax.f32 %v1787_v47, 0.0  ;;  %v1882_v23 = vmax.f32 %v1782_v63, 0.0 }
 0x90c   :  { %2395 = vmatpush.msrb.mxu2 %v1880_v51  ;;  %2625 = vmatpush.msrb.mxu0 %v1900_v18  ;;  %v7283_v3 = vpop.f32.mrf.mxu0  ;;  %v1917_v51 = vmax.f32 %v1817_v14, 0.0  ;;  %v1886_v18 = vmax.f32 %v1786_v59, 0.0 }
 0x90d   :  { %2233 = vmatpush.msrb.mxu3 %v1867_v24  ;;  %2371 = vmatpush.msrb.mxu1 %v1879_v15  ;;  %v1796_v58 = vadd.f32 %v7169_v32, %v7265_v36  ;;  %v1816_v52 = vadd.f32 %v7257_v2, %v7265_v36  ;;  %v8283_v24 = vld [vmem:[#allocation8_spill] sm:$0xff] }
 0x90e   :  { %2486 = vmatpush.msra.mxu2 %v1889_v35  ;;  %2716 = vmatpush.msra.mxu0 %v1909_v37  ;;  %v7295_v15 = vadd.f32 %v8283_v24, %v6870_v56  ;;  %v7299_v35 = vadd.f32 %v7029_v13, %v6862_v26  ;;  %v1783_v37 = vadd.f32 %v7145_v28, %v7059_v48  ;;  %v7377_v24 = vpop.f32.mrf.mxu2 }
 0x90f   :  { %2234 = vmatpush.msrb.mxu3 %v1866_v34  ;;  %2372 = vmatpush.msrb.mxu1 %v1878_v42  ;;  %v1896_v17 = vmax.f32 %v1796_v58, 0.0  ;;  %v1916_v21 = vmax.f32 %v1816_v52, 0.0  ;;  %v8284_v34 = vld [vmem:[#allocation7_spill] sm:$0xff] }
 0x910   :  { %2487 = vmatpush.msra.mxu2 %v1888_v22  ;;  %2717 = vmatpush.msra.mxu0 %v1908_v38  ;;  %v7307_v42 = vadd.f32 %v8284_v34, %v6875_v30  ;;  %v7311_v22 = vadd.f32 %v7027_v25, %v6884_v50  ;;  %v1795_v13 = vadd.f32 %v7149_v11, %v7295_v15  ;;  %v1883_v12 = vmax.f32 %v1783_v37, 0.0 }
 0x911   :  { %5235 = vmatmul.msk.f32.gmra.mxu3 %vm1959_vm3, %v6924_v7  ;;  %5245 = vmatmul.msk.f32.gmra.mxu1 %vm1959_vm3, %v6924_v7  ;;  %v1805_v19 = vadd.f32 %v7191_v16, %v7295_v15  ;;  %v1825_v48 = vadd.f32 %v7299_v35, %v7295_v15 }
 0x912   :  { %5255 = vmatmul.msk.f32.gmra.mxu2 %vm1959_vm3, %v6924_v7  ;;  %5275 = vmatmul.msk.f32.gmra.mxu0 %vm1959_vm3, %v6924_v7  ;;  %v1794_v28 = vadd.f32 %v7169_v32, %v7307_v42  ;;  %v1804_v25 = vadd.f32 %v7203_v27, %v7307_v42  ;;  %v1895_v20 = vmax.f32 %v1795_v13, 0.0  ;;  %v1824_v57 = vadd.f32 %v7311_v22, %v7307_v42 }
 0x913   :  { %v1905_v47 = vmax.f32 %v1805_v19, 0.0  ;;  %v1925_v41 = vmax.f32 %v1825_v48, 0.0 }
 0x914   :  { %v7313_v38 = vpop.f32.mrf.mxu0  ;;  %v1894_v40 = vmax.f32 %v1794_v28, 0.0  ;;  %v1904_v6 = vmax.f32 %v1804_v25, 0.0  ;;  %v1924_v14 = vmax.f32 %v1824_v57, 0.0  ;;  %v1799_v25 = vadd.f32 %v7149_v11, %v7177_v10 }
 0x915   :  { %v1821_v57 = vadd.f32 %v7251_v43, %v7165_v55 }
 0x916   :  { %v7389_v28 = vpop.f32.mrf.mxu2 }
 0x919   :  { %5240 = vmatmul.msk.f32.vlgmr.msra.gmra.mxu3 %vm1959_vm3, %v7001_v1  ;;  %5252 = vmatmul.msk.f32.vlgmr.msra.gmra.mxu1 %vm1959_vm3, %v7001_v1 }
 0x91a   :  { %2325 = vmatpush.msra.mxu3 %v1875_v61  ;;  %5262 = vmatmul.msk.f32.vlgmr.msrb.gmra.mxu2 %vm1959_vm3, %v7001_v1  ;;  %v8285_v61 = vld [vmem:[#allocation21_spill] sm:$0xff] }
 0x91b   :  { %2463 = vmatpush.msra.mxu1 %v1887_v9  ;;  %2578 = vmatpush.msrb.mxu2 %v1897_v4  ;;  %v7347_v58 = vadd.f32 %v8285_v61, %v6870_v56  ;;  %v1791_v9 = vadd.f32 %v7035_v8, %v7087_v54  ;;  %v8286_v4 = vld [vmem:[#allocation20_spill] sm:$0xff]  ;;  %v1790_v56 = vadd.f32 %v7032_v60, %v7091_v39 }
 0x91c   :  { %5282 = vmatmul.msk.f32.vlgmr.msrb.gmra.mxu0 %vm1959_vm3, %v7001_v1  ;;  %2326 = vmatpush.msra.mxu3 %v1874_v46  ;;  %v7337_v59 = vpop.f32.mrf.mxu0  ;;  %v7355_v52 = vadd.f32 %v8286_v4, %v6875_v30 }
 0x91d   :  { %2808 = vmatpush.msrb.mxu0 %v1917_v51  ;;  %2464 = vmatpush.msra.mxu1 %v1886_v18  ;;  %v1803_v46 = vadd.f32 %v7149_v11, %v7347_v58  ;;  %v1813_v51 = vadd.f32 %v7191_v16, %v7347_v58  ;;  %v1833_v18 = vadd.f32 %v7299_v35, %v7347_v58  ;;  %v1891_v8 = vmax.f32 %v1791_v9, 0.0 }
 0x91e   :  { %2579 = vmatpush.msrb.mxu2 %v1896_v17  ;;  %v1802_v17 = vadd.f32 %v7169_v32, %v7355_v52  ;;  %v1812_v30 = vadd.f32 %v7203_v27, %v7355_v52  ;;  %v1832_v39 = vadd.f32 %v7311_v22, %v7355_v52  ;;  %v1890_v37 = vmax.f32 %v1790_v56, 0.0  ;;  %v7427_v9 = vpop.f32.mrf.mxu2 }
 0x91f   :  { %2809 = vmatpush.msrb.mxu0 %v1916_v21  ;;  %v1903_v21 = vmax.f32 %v1803_v46, 0.0  ;;  %v1913_v60 = vmax.f32 %v1813_v51, 0.0  ;;  %v1933_v34 = vmax.f32 %v1833_v18, 0.0  ;;  %v1899_v11 = vmax.f32 %v1799_v25, 0.0 }
 0x920   :  { %v1902_v13 = vmax.f32 %v1802_v17, 0.0  ;;  %v1912_v19 = vmax.f32 %v1812_v30, 0.0  ;;  %v1932_v63 = vmax.f32 %v1832_v39, 0.0  ;;  %v1807_v51 = vadd.f32 %v7191_v16, %v7247_v33  ;;  %v7455_v39 = vpop.permute.xlu1 %1951 }
 0x921   :  { %5241 = vmatmul.msk.f32.gmra.mxu3 %vm1959_vm3, %v6924_v7  ;;  %5253 = vmatmul.msk.f32.gmra.mxu1 %vm1959_vm3, %v6924_v7  ;;  %v1819_v18 = vadd.f32 %v7251_v43, %v7177_v10  ;;  %v1829_v17 = vadd.f32 %v7299_v35, %v7177_v10 }
 0x922   :  { %5263 = vmatmul.msk.f32.gmra.mxu2 %vm1959_vm3, %v6924_v7 }
 0x924   :  { %5283 = vmatmul.msk.f32.gmra.mxu0 %vm1959_vm3, %v6924_v7  ;;  %v7369_v54 = vpop.f32.mrf.mxu0 }
 0x926   :  { %v2121_v30 = vpop.f32.mrf.mxu2 }
 0x929   :  { %5248 = vmatmul.msk.f32.vlgmr.msrb.gmra.mxu3 %vm1959_vm3, %v7001_v1  ;;  %5260 = vmatmul.msk.f32.vlgmr.msrb.gmra.mxu1 %vm1959_vm3, %v7001_v1 }
 0x92a   :  { %2417 = vmatpush.msrb.mxu3 %v1883_v12  ;;  %5270 = vmatmul.msk.f32.vlgmr.msra.gmra.mxu2 %vm1959_vm3, %v7001_v1  ;;  %v7395_v12 = vadd.f32 %v7139_v31, %v6862_v26  ;;  %v1798_v26 = vadd.f32 %v7169_v32, %v7209_v0 }
 0x92b   :  { %2555 = vmatpush.msrb.mxu1 %v1895_v20  ;;  %2670 = vmatpush.msra.mxu2 %v1905_v47  ;;  %v7403_v20 = vadd.f32 %v7137_v5, %v6884_v50  ;;  %v1811_v47 = vadd.f32 %v7191_v16, %v7165_v55  ;;  %v1820_v50 = vadd.f32 %v7257_v2, %v7185_v62 }
 0x92c   :  { %5290 = vmatmul.msk.f32.vlgmr.msra.gmra.mxu0 %vm1959_vm3, %v7001_v1  ;;  %2418 = vmatpush.msrb.mxu3 %v1882_v23  ;;  %v7383_v48 = vpop.f32.mrf.mxu0  ;;  %v1841_v31 = vadd.f32 %v7395_v12, %v7165_v55  ;;  %v1810_v23 = vadd.f32 %v7203_v27, %v7185_v62  ;;  %v1818_v16 = vadd.f32 %v7257_v2, %v7209_v0 }
 0x92d   :  { %2900 = vmatpush.msra.mxu0 %v1925_v41  ;;  %2556 = vmatpush.msrb.mxu1 %v1894_v40  ;;  %v1911_v5 = vmax.f32 %v1811_v47, 0.0  ;;  %v1921_v41 = vmax.f32 %v1821_v57, 0.0  ;;  %v1840_v32 = vadd.f32 %v7403_v20, %v7185_v62  ;;  %v1898_v40 = vmax.f32 %v1798_v26, 0.0 }
 0x92e   :  { %2671 = vmatpush.msra.mxu2 %v1904_v6  ;;  %v1910_v61 = vmax.f32 %v1810_v23, 0.0  ;;  %v1920_v4 = vmax.f32 %v1820_v50, 0.0  ;;  %v1918_v25 = vmax.f32 %v1818_v16, 0.0  ;;  %v2124_v26 = vpop.f32.mrf.mxu2  ;;  %v1827_v23 = vadd.f32 %v7299_v35, %v7247_v33 }
 0x92f   :  { %2901 = vmatpush.msra.mxu0 %v1924_v14  ;;  %v1941_v14 = vmax.f32 %v1841_v31, 0.0  ;;  %v1940_v46 = vmax.f32 %v1840_v32, 0.0  ;;  %v1815_v31 = vadd.f32 %v7251_v43, %v7295_v15  ;;  %v1814_v50 = vadd.f32 %v7257_v2, %v7307_v42 }
 0x930   :  { %v1823_v16 = vadd.f32 %v7251_v43, %v7347_v58 }
 0x931   :  { %5249 = vmatmul.msk.f32.gmra.mxu3 %vm1959_vm3, %v6924_v7  ;;  %5261 = vmatmul.msk.f32.gmra.mxu1 %vm1959_vm3, %v6924_v7  ;;  %v1915_v32 = vmax.f32 %v1815_v31, 0.0  ;;  %v7547_v31 = vld [vmem:[%s8271_s19 + $0x8] sm:$0xff] }
 0x932   :  { %5271 = vmatmul.msk.f32.gmra.mxu2 %vm1959_vm3, %v6924_v7  ;;  %v1923_v43 = vmax.f32 %v1823_v16, 0.0  ;;  %v1838_v16 = vadd.f32 %v7403_v20, %v7209_v0 }
 0x934   :  { %5291 = vmatmul.msk.f32.gmra.mxu0 %vm1959_vm3, %v6924_v7  ;;  %v7425_v6 = vpop.f32.mrf.mxu0 }
 0x939   :  { %5256 = vmatmul.msk.f32.vlgmr.msra.gmra.mxu3 %vm1959_vm3, %v7001_v1  ;;  %5268 = vmatmul.msk.f32.vlgmr.msra.gmra.mxu1 %vm1959_vm3, %v7001_v1 }
 0x93a   :  { %2509 = vmatpush.msra.mxu3 %v1891_v8  ;;  %5278 = vmatmul.msk.f32.vlgmr.msrb.gmra.mxu2 %vm1959_vm3, %v7001_v1  ;;  %v7447_v8 = vpop.permute.xlu0 %1956 }
 0x93b   :  { %2647 = vmatpush.msra.mxu1 %v1903_v21  ;;  %2762 = vmatpush.msrb.mxu2 %v1913_v60  ;;  %v1806_v21 = vadd.f32 %v7203_v27, %v7265_v36  ;;  %v2033_v60 = vadd.f32 %v7313_v38, %v7447_v8  ;;  %v1919_v27 = vmax.f32 %v1819_v18, 0.0  ;;  %v1929_v38 = vmax.f32 %v1829_v17, 0.0 }
 0x93c   :  { %5298 = vmatmul.msk.f32.vlgmr.msrb.gmra.mxu0 %vm1959_vm3, %v7001_v1  ;;  %2510 = vmatpush.msra.mxu3 %v1890_v37  ;;  %v7441_v56 = vpop.f32.mrf.mxu0  ;;  %v1907_v37 = vmax.f32 %v1807_v51, 0.0  ;;  %v1914_v51 = vmax.f32 %v1814_v50, 0.0  ;;  %v1831_v50 = vadd.f32 %v7299_v35, %v7165_v55 }
 0x93d   :  { %2992 = vmatpush.msrb.mxu0 %v1933_v34  ;;  %2648 = vmatpush.msra.mxu1 %v1902_v13  ;;  %v1828_v34 = vadd.f32 %v7311_v22, %v7209_v0  ;;  %v2030_v13 = vadd.f32 %v7283_v3, %v7455_v39  ;;  %v1938_v0 = vmax.f32 %v1838_v16, 0.0 }
 0x93e   :  { %2763 = vmatpush.msrb.mxu2 %v1912_v19  ;;  %v1906_v19 = vmax.f32 %v1806_v21, 0.0 }
 0x93f   :  { %2993 = vmatpush.msrb.mxu0 %v1932_v63  ;;  %v3121_v63 = vmax.f32 %v2033_v60, 0.0  ;;  %v1928_v3 = vmax.f32 %v1828_v34, 0.0  ;;  %v3120_v47 = vmax.f32 %v2030_v13, 0.0  ;;  %v1835_v34 = vadd.f32 %v7395_v12, %v7295_v15  ;;  %v7536_v15 = vld [vmem:[%s8210_s9] sm:$0xff] }
 0x940   :  { %v1822_v13 = vadd.f32 %v7257_v2, %v7355_v52 }
 0x941   :  { %5257 = vmatmul.msk.f32.gmra.mxu3 %vm1959_vm3, %v6924_v7  ;;  %5269 = vmatmul.msk.f32.gmra.mxu1 %vm1959_vm3, %v6924_v7  ;;  %v1935_v2 = vmax.f32 %v1835_v34, 0.0 }
 0x942   :  { %5279 = vmatmul.msk.f32.gmra.mxu2 %vm1959_vm3, %v6924_v7 }
 0x944   :  { %5299 = vmatmul.msk.f32.gmra.mxu0 %vm1959_vm3, %v6924_v7  ;;  %v7469_v57 = vpop.f32.mrf.mxu0 }
 0x949   :  { %5264 = vmatmul.msk.f32.vlgmr.msrb.gmra.mxu3 %vm1959_vm3, %v7001_v1  ;;  %5276 = vmatmul.msk.f32.vlgmr.msrb.gmra.mxu1 %vm1959_vm3, %v7001_v1 }
 0x94a   :  { %2601 = vmatpush.msrb.mxu3 %v1899_v11  ;;  %5286 = vmatmul.msk.f32.vlgmr.msra.gmra.mxu2 %vm1959_vm3, %v7001_v1  ;;  %v1837_v11 = vadd.f32 %v7395_v12, %v7247_v33  ;;  %v1927_v33 = vmax.f32 %v1827_v23, 0.0 }
 0x94b   :  { %2739 = vmatpush.msrb.mxu1 %v1911_v5  ;;  %2854 = vmatpush.msra.mxu2 %v1921_v41  ;;  %v2125_v5 = vadd.f32 %v2124_v26, %v7447_v8  ;;  %v1826_v41 = vadd.f32 %v7311_v22, %v7265_v36 }
 0x94c   :  { %5306 = vmatmul.msk.f32.vlgmr.msra.gmra.mxu0 %vm1959_vm3, %v7001_v1  ;;  %2602 = vmatpush.msrb.mxu3 %v1898_v40  ;;  %v1836_v40 = vadd.f32 %v7403_v20, %v7265_v36 }
 0x94d   :  { %3084 = vmatpush.msra.mxu0 %v1941_v14  ;;  %2740 = vmatpush.msrb.mxu1 %v1910_v61  ;;  %v2122_v14 = vadd.f32 %v2121_v30, %v7455_v39  ;;  %v7493_v61 = vpop.f32.mrf.mxu0  ;;  %v3129_v18 = vmax.f32 %v2125_v5, 0.0  ;;  %v1926_v36 = vmax.f32 %v1826_v41, 0.0  ;;  %v2056_v5 = vadd.f32 %v7427_v9, %v7447_v8 }
 0x94e   :  { %2855 = vmatpush.msra.mxu2 %v1920_v4  ;;  %v1937_v4 = vmax.f32 %v1837_v11, 0.0  ;;  %v1936_v17 = vmax.f32 %v1836_v40, 0.0  ;;  %v1843_v41 = vadd.f32 %v7395_v12, %v7347_v58  ;;  %v2053_v40 = vadd.f32 %v7389_v28, %v7455_v39 }
 0x94f   :  { %3085 = vmatpush.msra.mxu0 %v1940_v46  ;;  %v2213_v46 = vpop.f32.mrf.mxu2  ;;  %v3128_v30 = vmax.f32 %v2122_v14, 0.0 }
 0x950   :  { %v1943_v55 = vmax.f32 %v1843_v41, 0.0 }
 0x951   :  { %5265 = vmatmul.msk.f32.gmra.mxu3 %vm1959_vm3, %v6924_v7  ;;  %5277 = vmatmul.msk.f32.gmra.mxu1 %vm1959_vm3, %v6924_v7 }
 0x952   :  { %5287 = vmatmul.msk.f32.gmra.mxu2 %vm1959_vm3, %v6924_v7 }
 0x954   :  { %5307 = vmatmul.msk.f32.gmra.mxu0 %vm1959_vm3, %v6924_v7 }
 0x955   :  { %v7509_v21 = vpop.f32.mrf.mxu0 }
 0x957   :  { %v2216_v60 = vpop.f32.mrf.mxu2 }
 0x959   :  { %5272 = vmatmul.msk.f32.vlgmr.msra.gmra.mxu3 %vm1959_vm3, %v7001_v1  ;;  %5284 = vmatmul.msk.f32.vlgmr.msra.gmra.mxu1 %vm1959_vm3, %v7001_v1 }
 0x95a   :  { %2693 = vmatpush.msra.mxu3 %v1907_v37  ;;  %5294 = vmatmul.msk.f32.vlgmr.msrb.gmra.mxu2 %vm1959_vm3, %v7001_v1  ;;  %v1987_v37 = vadd.f32 %v7377_v24, %v7447_v8  ;;  %v2214_v24 = vadd.f32 %v2213_v46, %v7455_v39  ;;  %v3123_v46 = vmax.f32 %v2056_v5, 0.0 }
 0x95b   :  { %2831 = vmatpush.msra.mxu1 %v1919_v27  ;;  %2946 = vmatpush.msrb.mxu2 %v1929_v38  ;;  %v2217_v27 = vadd.f32 %v2216_v60, %v7447_v8  ;;  %v1834_v38 = vadd.f32 %v7403_v20, %v7307_v42 }
 0x95c   :  { %5314 = vmatmul.msk.f32.vlgmr.msrb.gmra.mxu0 %vm1959_vm3, %v7001_v1  ;;  %2694 = vmatpush.msra.mxu3 %v1906_v19  ;;  %v7526_v19 = vpop.f32.mrf.mxu3 }
 0x95d   :  { %3279 = vmatpush.msrb.mxu0 %v3121_v63  ;;  %2832 = vmatpush.msra.mxu1 %v1918_v25  ;;  %v3117_v63 = vmax.f32 %v1987_v37, 0.0  ;;  %v3137_v42 = vmax.f32 %v2217_v27, 0.0  ;;  %v1934_v25 = vmax.f32 %v1834_v38, 0.0  ;;  %v7542_v26 = vpop.f32.mrf.mxu0  ;;  %v2099_v37 = vadd.f32 %v7337_v59, %v7455_v39 }
 0x95e   :  { %2947 = vmatpush.msrb.mxu2 %v1928_v3 }
 0x95f   :  { %3280 = vmatpush.msrb.mxu0 %v3120_v47  ;;  %v3136_v47 = vmax.f32 %v2214_v24, 0.0 }
 0x961   :  { %5273 = vmatmul.msk.f32.gmra.mxu3 %vm1959_vm3, %v6924_v7  ;;  %5285 = vmatmul.msk.f32.gmra.mxu1 %vm1959_vm3, %v6924_v7 }
 0x962   :  { %5295 = vmatmul.msk.f32.gmra.mxu2 %vm1959_vm3, %v6924_v7 }
 0x964   :  { %5315 = vmatmul.msk.f32.gmra.mxu0 %vm1959_vm3, %v6924_v7  ;;  %v7553_v23 = vpop.f32.mrf.mxu3 }
 0x965   :  { %v7571_v14 = vpop.f32.mrf.mxu0 }
 0x969   :  { %5280 = vmatmul.msk.f32.vlgmr.msrb.gmra.mxu3 %vm1959_vm3, %v7001_v1  ;;  %5292 = vmatmul.msk.f32.vlgmr.msrb.gmra.mxu1 %vm1959_vm3, %v7001_v1 }
 0x96a   :  { %2785 = vmatpush.msrb.mxu3 %v1915_v32  ;;  %5302 = vmatmul.msk.f32.vlgmr.msra.gmra.mxu2 %vm1959_vm3, %v7001_v1  ;;  %v1830_v32 = vadd.f32 %v7311_v22, %v7185_v62  ;;  %v3122_v22 = vmax.f32 %v2053_v40, 0.0 }
 0x96b   :  { %2923 = vmatpush.msrb.mxu1 %v1927_v33  ;;  %3038 = vmatpush.msra.mxu2 %v1937_v4  ;;  %v1842_v33 = vadd.f32 %v7403_v20, %v7355_v52  ;;  %v1931_v4 = vmax.f32 %v1831_v50, 0.0 }
 0x96c   :  { %5322 = vmatmul.msk.f32.vlgmr.msra.gmra.mxu0 %vm1959_vm3, %v7001_v1  ;;  %2786 = vmatpush.msrb.mxu3 %v1914_v51  ;;  %v1930_v62 = vmax.f32 %v1830_v32, 0.0 }
 0x96d   :  { %3359 = vmatpush.msra.mxu0 %v3129_v18  ;;  %2924 = vmatpush.msrb.mxu1 %v1926_v36  ;;  %v1942_v58 = vmax.f32 %v1842_v33, 0.0  ;;  %v1839_v18 = vadd.f32 %v7395_v12, %v7177_v10  ;;  %v2102_v36 = vadd.f32 %v7369_v54, %v7447_v8  ;;  %v3126_v54 = vmax.f32 %v2099_v37, 0.0  ;;  %v5451_v33 = vld [vmem:[%s8271_s19] sm:$0xff] }
 0x96e   :  { %3039 = vmatpush.msra.mxu2 %v1936_v17 }
 0x96f   :  { %3360 = vmatpush.msra.mxu0 %v3128_v30  ;;  %v1939_v27 = vmax.f32 %v1839_v18, 0.0  ;;  %v3127_v38 = vmax.f32 %v2102_v36, 0.0 }
 0x971   :  { %5281 = vmatmul.msk.f32.gmra.mxu3 %vm1959_vm3, %v6924_v7  ;;  %5293 = vmatmul.msk.f32.gmra.mxu1 %vm1959_vm3, %v6924_v7 }
 0x972   :  { %5303 = vmatmul.msk.f32.gmra.mxu2 %vm1959_vm3, %v6924_v7 }
 0x974   :  { %5323 = vmatmul.msk.f32.gmra.mxu0 %vm1959_vm3, %v6924_v7  ;;  %v1984_v7 = vadd.f32 %v7235_v45, %v7455_v39  ;;  %v1922_v45 = vmax.f32 %v1822_v13, 0.0 }
 0x976   :  { %v3116_v3 = vmax.f32 %v1984_v7, 0.0 }
 0x979   :  { %5288 = vmatmul.msk.f32.vlgmr.msra.gmra.mxu3 %vm1959_vm3, %v7001_v1  ;;  %5300 = vmatmul.msk.f32.vlgmr.msra.gmra.mxu1 %vm1959_vm3, %v7001_v1 }
 0x97a   :  { %2877 = vmatpush.msra.mxu3 %v1923_v43  ;;  %5310 = vmatmul.msk.f32.vlgmr.msrb.gmra.mxu2 %vm1959_vm3, %v7001_v1  ;;  %v2010_v43 = vadd.f32 %v7553_v23, %v7447_v8 }
 0x97b   :  { %3015 = vmatpush.msra.mxu1 %v1935_v2  ;;  %3239 = vmatpush.msrb.mxu2 %v3117_v63 }
 0x97c   :  { %5328 = vmatmul.msk.f32.vlgmr.msrb.gmra.mxu0 %vm1959_vm3, %v7536_v15  ;;  %2878 = vmatpush.msra.mxu3 %v1922_v45  ;;  %v3119_v41 = vmax.f32 %v2010_v43, 0.0 }
 0x97d   :  { %3439 = vmatpush.msrb.mxu0 %v3137_v42  ;;  %3016 = vmatpush.msra.mxu1 %v1934_v25  ;;  %v2007_v42 = vadd.f32 %v7526_v19, %v7455_v39 }
 0x97e   :  { %3240 = vmatpush.msrb.mxu2 %v3116_v3 }
 0x97f   :  { %3440 = vmatpush.msrb.mxu0 %v3136_v47  ;;  %v3118_v19 = vmax.f32 %v2007_v42, 0.0 }
 0x981   :  { %5289 = vmatmul.msk.f32.gmra.mxu3 %vm1959_vm3, %v7547_v31  ;;  %5301 = vmatmul.msk.f32.gmra.mxu1 %vm1959_vm3, %v7547_v31 }
 0x982   :  { %5311 = vmatmul.msk.f32.gmra.mxu2 %vm1959_vm3, %v7547_v31 }
 0x984   :  { %5332 = vmatmul.msk.f32.vlgmr.msra.gmra.mxu0 %vm1959_vm3, %v7536_v15  ;;  %v7559_v11 = vpop.f32.mrf.mxu1 }
 0x985   :  { %v2191_v50 = vadd.f32 %v7559_v11, %v7455_v39 }
 0x986   :  { %v7585_v9 = vpop.f32.mrf.mxu0 }
 0x989   :  { %5296 = vmatmul.msk.f32.vlgmr.msrb.gmra.mxu3 %vm1959_vm3, %v7001_v1  ;;  %5308 = vmatmul.msk.f32.vlgmr.msrb.gmra.mxu1 %vm1959_vm3, %v7001_v1 }
 0x98a   :  { %2969 = vmatpush.msrb.mxu3 %v1931_v4  ;;  %5318 = vmatmul.msk.f32.vlgmr.msra.gmra.mxu2 %vm1959_vm3, %v7001_v1  ;;  %v7581_v35 = vpop.f32.mrf.mxu3 }
 0x98b   :  { %3107 = vmatpush.msrb.mxu1 %v1943_v55  ;;  %3299 = vmatpush.msra.mxu2 %v3123_v46  ;;  %v3134_v46 = vmax.f32 %v2191_v50, 0.0 }
 0x98c   :  { %5336 = vmatmul.msk.f32.vlgmr.msrb.gmra.mxu0 %vm1959_vm3, %v7536_v15  ;;  %2970 = vmatpush.msrb.mxu3 %v1930_v62  ;;  %v2305_v52 = vpop.f32.mrf.mxu2 }
 0x98d   :  { %3108 = vmatpush.msrb.mxu1 %v1942_v58  ;;  %3300 = vmatpush.msra.mxu2 %v3122_v22  ;;  %v2306_v34 = vadd.f32 %v2305_v52, %v7455_v39 }
 0x98e   :  { %v2193_v28 = vpop.f32.mrf.mxu1 }
 0x98f   :  { %v7607_v10 = vpop.f32.mrf.mxu0  ;;  %v3144_v59 = vmax.f32 %v2306_v34, 0.0  ;;  %v2194_v24 = vadd.f32 %v2193_v28, %v7447_v8 }
 0x991   :  { %5297 = vmatmul.msk.f32.gmra.mxu3 %vm1959_vm3, %v7547_v31  ;;  %5309 = vmatmul.msk.f32.gmra.mxu1 %vm1959_vm3, %v7547_v31  ;;  %v3135_v40 = vmax.f32 %v2194_v24, 0.0 }
 0x992   :  { %5319 = vmatmul.msk.f32.gmra.mxu2 %vm1959_vm3, %v7547_v31 }
 0x994   :  { %v7593_v51 = vpop.f32.mrf.mxu3 }
 0x995   :  { %v2308_v17 = vpop.f32.mrf.mxu2  ;;  %v2079_v52 = vadd.f32 %v7593_v51, %v7447_v8 }
 0x996   :  { %v2309_v30 = vadd.f32 %v2308_v17, %v7447_v8  ;;  %v7600_v60 = vpop.f32.mrf.mxu1 }
 0x998   :  { %v3145_v13 = vmax.f32 %v2309_v30, 0.0  ;;  %v2076_v30 = vadd.f32 %v7581_v35, %v7455_v39 }
 0x999   :  { %5304 = vmatmul.msk.f32.vlgmr.msra.gmra.mxu3 %vm1959_vm3, %v7001_v1  ;;  %5316 = vmatmul.msk.f32.vlgmr.msra.gmra.mxu1 %vm1959_vm3, %v7001_v1  ;;  %v7623_v1 = vpop.f32.mrf.mxu0 }
 0x99a   :  { %3061 = vmatpush.msra.mxu3 %v1939_v27  ;;  %5326 = vmatmul.msk.f32.vlgmr.msrb.gmra.mxu2 %vm1959_vm3, %v7536_v15  ;;  %v3124_v35 = vmax.f32 %v2076_v30, 0.0 }
 0x99b   :  { %3339 = vmatpush.msra.mxu1 %v3127_v38  ;;  %3519 = vmatpush.msra.mxu0 %v3145_v13  ;;  %v2283_v13 = vadd.f32 %v7600_v60, %v7455_v39 }
 0x99c   :  { %3062 = vmatpush.msra.mxu3 %v1938_v0  ;;  %v2144_v12 = vpop.f32.mrf.mxu3  ;;  %v3125_v0 = vmax.f32 %v2079_v52, 0.0 }
 0x99d   :  { %3340 = vmatpush.msra.mxu1 %v3126_v54  ;;  %3520 = vmatpush.msra.mxu0 %v3144_v59  ;;  %v2397_v20 = vpop.f32.mrf.mxu2  ;;  %v2145_v25 = vadd.f32 %v2144_v12, %v7455_v39 }
 0x99e   :  { %5340 = vmatmul.msk.f32.vlgmr.msra.gmra.mxu0 %vm1959_vm3, %v7536_v15  ;;  %v2285_v7 = vpop.f32.mrf.mxu1  ;;  %v2398_v23 = vadd.f32 %v2397_v20, %v7455_v39  ;;  %v3142_v20 = vmax.f32 %v2283_v13, 0.0 }
 0x99f   :  { %v3130_v4 = vmax.f32 %v2145_v25, 0.0  ;;  %v2286_v18 = vadd.f32 %v2285_v7, %v7447_v8 }
 0x9a0   :  { %v3152_v11 = vmax.f32 %v2398_v23, 0.0 }
 0x9a1   :  { %5305 = vmatmul.msk.f32.gmra.mxu3 %vm1959_vm3, %v7547_v31  ;;  %5317 = vmatmul.msk.f32.gmra.mxu1 %vm1959_vm3, %v7547_v31  ;;  %v7643_v62 = vpop.f32.mrf.mxu0  ;;  %v3143_v59 = vmax.f32 %v2286_v18, 0.0 }
 0x9a2   :  { %5329 = vmatmul.msk.f32.vlgmr.msra.gmra.mxu2 %vm1959_vm3, %v7536_v15 }
 0x9a4   :  { %v2147_v63 = vpop.f32.mrf.mxu3 }
 0x9a5   :  { %v2148_v2 = vadd.f32 %v2147_v63, %v7447_v8  ;;  %v2400_v45 = vpop.f32.mrf.mxu2 }
 0x9a6   :  { %v2401_v3 = vadd.f32 %v2400_v45, %v7447_v8  ;;  %v7633_v47 = vpop.f32.mrf.mxu1 }
 0x9a7   :  { %v3131_v5 = vmax.f32 %v2148_v2, 0.0  ;;  %v2375_v24 = vadd.f32 %v7633_v47, %v7455_v39 }
 0x9a8   :  { %v3153_v32 = vmax.f32 %v2401_v3, 0.0  ;;  %v2171_v3 = vadd.f32 %v7425_v6, %v7447_v8 }
 0x9a9   :  { %5312 = vmatmul.msk.f32.vlgmr.msrb.gmra.mxu3 %vm1959_vm3, %v5451_v33  ;;  %5324 = vmatmul.msk.f32.vlgmr.msrb.gmra.mxu1 %vm1959_vm3, %v5451_v33  ;;  %v7663_v27 = vpop.f32.mrf.mxu0  ;;  %v3150_v25 = vmax.f32 %v2375_v24, 0.0 }
 0x9aa   :  { %3259 = vmatpush.msrb.mxu3 %v3119_v41  ;;  %3379 = vmatpush.msrb.mxu2 %v3131_v5  ;;  %v2168_v41 = vadd.f32 %v7383_v48, %v7455_v39 }
 0x9ab   :  { %3419 = vmatpush.msrb.mxu1 %v3135_v40  ;;  %3599 = vmatpush.msrb.mxu0 %v3153_v32 }
 0x9ac   :  { %3260 = vmatpush.msrb.mxu3 %v3118_v19  ;;  %3380 = vmatpush.msrb.mxu2 %v3130_v4  ;;  %v2236_v55 = vpop.f32.mrf.mxu3  ;;  %v3133_v4 = vmax.f32 %v2171_v3, 0.0  ;;  %v3132_v48 = vmax.f32 %v2168_v41, 0.0 }
 0x9ad   :  { %3420 = vmatpush.msrb.mxu1 %v3134_v46  ;;  %3600 = vmatpush.msrb.mxu0 %v3152_v11  ;;  %v2489_v22 = vpop.f32.mrf.mxu2  ;;  %v2237_v16 = vadd.f32 %v2236_v55, %v7455_v39 }
 0x9ae   :  { %5333 = vmatmul.msk.f32.vlgmr.msrb.gmra.mxu2 %vm1959_vm3, %v7536_v15  ;;  %5344 = vmatmul.msk.f32.vlgmr.msrb.gmra.mxu0 %vm1959_vm3, %v7536_v15  ;;  %v2377_v58 = vpop.f32.mrf.mxu1  ;;  %v2490_v51 = vadd.f32 %v2489_v22, %v7455_v39 }
 0x9af   :  { %v3138_v12 = vmax.f32 %v2237_v16, 0.0  ;;  %v2378_v60 = vadd.f32 %v2377_v58, %v7447_v8 }
 0x9b0   :  { %v3160_v7 = vmax.f32 %v2490_v51, 0.0  ;;  %v2355_v51 = vadd.f32 %v7509_v21, %v7447_v8 }
 0x9b1   :  { %5313 = vmatmul.msk.f32.gmra.mxu3 %vm1959_vm3, %v7547_v31  ;;  %5325 = vmatmul.msk.f32.gmra.mxu1 %vm1959_vm3, %v7547_v31  ;;  %v3151_v45 = vmax.f32 %v2378_v60, 0.0  ;;  %v7676_v42 = vpop.f32.mrf.mxu0 }
 0x9b2   :  { %v3149_v21 = vmax.f32 %v2355_v51, 0.0 }
 0x9b4   :  { %v2239_v28 = vpop.f32.mrf.mxu3 }
 0x9b5   :  { %v2240_v36 = vadd.f32 %v2239_v28, %v7447_v8  ;;  %v2492_v17 = vpop.f32.mrf.mxu2  ;;  %v2263_v28 = vadd.f32 %v7469_v57, %v7447_v8 }
 0x9b6   :  { %v2493_v37 = vadd.f32 %v2492_v17, %v7447_v8  ;;  %v2466_v34 = vpop.f32.mrf.mxu1  ;;  %v2260_v17 = vadd.f32 %v7441_v56, %v7455_v39 }
 0x9b7   :  { %v3139_v38 = vmax.f32 %v2240_v36, 0.0 }
 0x9b8   :  { %v3161_v54 = vmax.f32 %v2493_v37, 0.0  ;;  %v3141_v37 = vmax.f32 %v2263_v28, 0.0  ;;  %v3140_v56 = vmax.f32 %v2260_v17, 0.0  ;;  %v2631_v17 = vadd.f32 %v7643_v62, %v7447_v8 }
 0x9b9   :  { %5320 = vmatmul.msk.f32.vlgmr.msra.gmra.mxu3 %vm1959_vm3, %v5451_v33  ;;  %5331 = vmatmul.msk.f32.vlgmr.msra.gmra.mxu1 %vm1959_vm3, %v7536_v15  ;;  %v2467_v33 = vadd.f32 %v2466_v34, %v7455_v39  ;;  %v7696_v58 = vpop.f32.mrf.mxu0 }
 0x9ba   :  { %3319 = vmatpush.msra.mxu3 %v3125_v0  ;;  %3459 = vmatpush.msra.mxu2 %v3139_v38 }
 0x9bb   :  { %3499 = vmatpush.msra.mxu1 %v3143_v59  ;;  %3679 = vmatpush.msra.mxu0 %v3161_v54  ;;  %v3158_v22 = vmax.f32 %v2467_v33, 0.0 }
 0x9bc   :  { %3320 = vmatpush.msra.mxu3 %v3124_v35  ;;  %3460 = vmatpush.msra.mxu2 %v3138_v12  ;;  %v2328_v43 = vpop.f32.mrf.mxu3  ;;  %v2352_v12 = vadd.f32 %v7493_v61, %v7455_v39  ;;  %v2447_v61 = vadd.f32 %v7571_v14, %v7447_v8 }
 0x9bd   :  { %3500 = vmatpush.msra.mxu1 %v3142_v20  ;;  %3680 = vmatpush.msra.mxu0 %v3160_v7  ;;  %v2581_v63 = vpop.f32.mrf.mxu2 }
 0x9be   :  { %5337 = vmatmul.msk.f32.vlgmr.msra.gmra.mxu2 %vm1959_vm3, %v7536_v15  ;;  %5348 = vmatmul.msk.f32.vlgmr.msra.gmra.mxu0 %vm1959_vm3, %v7536_v15  ;;  %v2469_v2 = vpop.f32.mrf.mxu1  ;;  %v2582_v19 = vadd.f32 %v2581_v63, %v7455_v39  ;;  %v3157_v41 = vmax.f32 %v2447_v61, 0.0 }
 0x9bf   :  { %v2470_v50 = vadd.f32 %v2469_v2, %v7447_v8  ;;  %v3148_v2 = vmax.f32 %v2352_v12, 0.0 }
 0x9c0   :  { %v3168_v52 = vmax.f32 %v2582_v19, 0.0 }
 0x9c1   :  { %5321 = vmatmul.msk.f32.gmra.mxu3 %vm1959_vm3, %v7547_v31  ;;  %5335 = vmatmul.msk.f32.vlgmr.msrb.gmra.mxu1 %vm1959_vm3, %v7536_v15  ;;  %v2329_v31 = vadd.f32 %v2328_v43, %v7455_v39  ;;  %v3159_v11 = vmax.f32 %v2470_v50, 0.0  ;;  %v7714_v0 = vpop.f32.mrf.mxu0 }
 0x9c2   :  { %3579 = vmatpush.msrb.mxu1 %v3151_v45 }
 0x9c3   :  { %v3146_v55 = vmax.f32 %v2329_v31, 0.0 }
 0x9c4   :  { %3580 = vmatpush.msrb.mxu1 %v3150_v25  ;;  %v2331_v47 = vpop.f32.mrf.mxu3 }
 0x9c5   :  { %v2332_v23 = vadd.f32 %v2331_v47, %v7447_v8  ;;  %v2584_v5 = vpop.f32.mrf.mxu2  ;;  %v2444_v47 = vadd.f32 %v7542_v26, %v7455_v39 }
 0x9c6   :  { %v2585_v32 = vadd.f32 %v2584_v5, %v7447_v8  ;;  %v2558_v40 = vpop.f32.mrf.mxu1 }
 0x9c7   :  { %v3147_v6 = vmax.f32 %v2332_v23, 0.0  ;;  %v2559_v16 = vadd.f32 %v2558_v40, %v7455_v39  ;;  %v2539_v40 = vadd.f32 %v7607_v10, %v7447_v8 }
 0x9c8   :  { %v3169_v46 = vmax.f32 %v2585_v32, 0.0  ;;  %v3156_v32 = vmax.f32 %v2444_v47, 0.0 }
 0x9c9   :  { %5327 = vmatmul.msk.f32.vlgmr.msrb.gmra.mxu3 %vm1959_vm3, %v7536_v15  ;;  %5339 = vmatmul.msk.f32.vlgmr.msra.gmra.mxu1 %vm1959_vm3, %v7536_v15  ;;  %v3166_v13 = vmax.f32 %v2559_v16, 0.0  ;;  %v7734_v23 = vpop.f32.mrf.mxu0 }
 0x9ca   :  { %3399 = vmatpush.msrb.mxu3 %v3133_v4  ;;  %3539 = vmatpush.msrb.mxu2 %v3147_v6 }
 0x9cb   :  { %3659 = vmatpush.msra.mxu1 %v3159_v11  ;;  %3759 = vmatpush.msrb.mxu0 %v3169_v46  ;;  %v2536_v46 = vadd.f32 %v7585_v9, %v7455_v39 }
 0x9cc   :  { %3400 = vmatpush.msrb.mxu3 %v3132_v48  ;;  %3540 = vmatpush.msrb.mxu2 %v3146_v55  ;;  %v2420_v18 = vpop.f32.mrf.mxu3 }
 0x9cd   :  { %3660 = vmatpush.msra.mxu1 %v3158_v22  ;;  %3760 = vmatpush.msrb.mxu0 %v3168_v52  ;;  %v2673_v36 = vpop.f32.mrf.mxu2  ;;  %v2421_v54 = vadd.f32 %v2420_v18, %v7455_v39  ;;  %v3165_v52 = vmax.f32 %v2539_v40, 0.0 }
 0x9ce   :  { %5341 = vmatmul.msk.f32.vlgmr.msrb.gmra.mxu2 %vm1959_vm3, %v7536_v15  ;;  %5352 = vmatmul.msk.f32.vlgmr.msrb.gmra.mxu0 %vm1959_vm3, %v7536_v15  ;;  %v2561_v30 = vpop.f32.mrf.mxu1  ;;  %v2674_v60 = vadd.f32 %v2673_v36, %v7455_v39  ;;  %v3164_v36 = vmax.f32 %v2536_v46, 0.0 }
 0x9cf   :  { %v2562_v57 = vadd.f32 %v2561_v30, %v7447_v8  ;;  %v3154_v24 = vmax.f32 %v2421_v54, 0.0 }
 0x9d0   :  { %v3176_v45 = vmax.f32 %v2674_v60, 0.0 }
 0x9d1   :  { %v3167_v34 = vmax.f32 %v2562_v57, 0.0  ;;  %5330 = vmatmul.msk.f32.vlgmr.msra.gmra.mxu3 %vm1959_vm3, %v7536_v15  ;;  %5343 = vmatmul.msk.f32.vlgmr.msrb.gmra.mxu1 %vm1959_vm3, %v7536_v15  ;;  %v7750_v10 = vpop.f32.mrf.mxu0  ;;  %v2628_v57 = vadd.f32 %v7623_v1, %v7455_v39  ;;  %v2723_v1 = vadd.f32 %v7676_v42, %v7447_v8 }
 0x9d2   :  { %3479 = vmatpush.msra.mxu3 %v3141_v37  ;;  %v2907_v40 = vadd.f32 %v7750_v10, %v7447_v8 }
 0x9d3   :  { %3739 = vmatpush.msrb.mxu1 %v3167_v34  ;;  %v3172_v51 = vmax.f32 %v2628_v57, 0.0 }
 0x9d4   :  { %3480 = vmatpush.msra.mxu3 %v3140_v56  ;;  %v2423_v38 = vpop.f32.mrf.mxu3 }
 0x9d5   :  { %v2424_v59 = vadd.f32 %v2423_v38, %v7447_v8  ;;  %v2676_v35 = vpop.f32.mrf.mxu2  ;;  %3740 = vmatpush.msrb.mxu1 %v3166_v13  ;;  %v3173_v13 = vmax.f32 %v2631_v17, 0.0 }
 0x9d6   :  { %v2677_v20 = vadd.f32 %v2676_v35, %v7447_v8  ;;  %v2650_v7 = vpop.f32.mrf.mxu1 }
 0x9d7   :  { %v3155_v43 = vmax.f32 %v2424_v59, 0.0  ;;  %v2651_v5 = vadd.f32 %v2650_v7, %v7455_v39  ;;  %v2720_v7 = vadd.f32 %v7663_v27, %v7455_v39  ;;  %v2815_v27 = vadd.f32 %v7714_v0, %v7447_v8 }
 0x9d8   :  { %v3177_v63 = vmax.f32 %v2677_v20, 0.0 }
 0x9d9   :  { %5334 = vmatmul.msk.f32.vlgmr.msrb.gmra.mxu3 %vm1959_vm3, %v7536_v15  ;;  %3619 = vmatpush.msra.mxu2 %v3155_v43  ;;  %v3174_v26 = vmax.f32 %v2651_v5, 0.0  ;;  %v7768_v38 = vpop.f32.mrf.mxu0  ;;  %v3189_v0 = vmax.f32 %v2815_v27, 0.0 }
 0x9da   :  { %3559 = vmatpush.msrb.mxu3 %v3149_v21  ;;  %5347 = vmatmul.msk.f32.vlgmr.msra.gmra.mxu1 %vm1959_vm3, %v7536_v15 }
 0x9db   :  { %3839 = vmatpush.msra.mxu0 %v3177_v63  ;;  %3620 = vmatpush.msra.mxu2 %v3154_v24  ;;  %v3181_v63 = vmax.f32 %v2723_v1, 0.0 }
 0x9dc   :  { %3560 = vmatpush.msrb.mxu3 %v3148_v2  ;;  %v2512_v25 = vpop.f32.mrf.mxu3  ;;  %5345 = vmatmul.msk.f32.vlgmr.msra.gmra.mxu2 %vm1959_vm3, %v7536_v15 }
 0x9dd   :  { %3840 = vmatpush.msra.mxu0 %v3176_v45  ;;  %v2765_v3 = vpop.f32.mrf.mxu2  ;;  %v2513_v19 = vadd.f32 %v2512_v25, %v7455_v39  ;;  %v3180_v45 = vmax.f32 %v2720_v7, 0.0 }
 0x9de   :  { %5356 = vmatmul.msk.f32.vlgmr.msra.gmra.mxu0 %vm1959_vm3, %v7536_v15  ;;  %v2653_v50 = vpop.f32.mrf.mxu1  ;;  %v2766_v55 = vadd.f32 %v2765_v3, %v7455_v39 }
 0x9df   :  { %v2654_v14 = vadd.f32 %v2653_v50, %v7447_v8  ;;  %v3162_v18 = vmax.f32 %v2513_v19, 0.0  ;;  %v2812_v50 = vadd.f32 %v7696_v58, %v7455_v39 }
 0x9e0   :  { %v3184_v9 = vmax.f32 %v2766_v55, 0.0 }
 0x9e1   :  { %v3175_v31 = vmax.f32 %v2654_v14, 0.0  ;;  %5338 = vmatmul.msk.f32.vlgmr.msra.gmra.mxu3 %vm1959_vm3, %v7536_v15  ;;  %v2998_v3 = vpop.f32.mrf.mxu0 }
 0x9e2   :  { %3639 = vmatpush.msra.mxu3 %v3157_v41  ;;  %5351 = vmatmul.msk.f32.vlgmr.msrb.gmra.mxu1 %vm1959_vm3, %v7536_v15 }
 0x9e3   :  { %3819 = vmatpush.msra.mxu1 %v3175_v31 }
 0x9e4   :  { %3640 = vmatpush.msra.mxu3 %v3156_v32  ;;  %v2515_v33 = vpop.f32.mrf.mxu3  ;;  %v3188_v32 = vmax.f32 %v2812_v50, 0.0 }
 0x9e5   :  { %v2516_v6 = vadd.f32 %v2515_v33, %v7447_v8  ;;  %v2768_v4 = vpop.f32.mrf.mxu2  ;;  %3820 = vmatpush.msra.mxu1 %v3174_v26 }
 0x9e6   :  { %v2769_v11 = vadd.f32 %v2768_v4, %v7447_v8  ;;  %v2742_v48 = vpop.f32.mrf.mxu1  ;;  %v2904_v4 = vadd.f32 %v7734_v23, %v7455_v39  ;;  %v2999_v23 = vadd.f32 %v2998_v3, %v7447_v8 }
 0x9e7   :  { %v3163_v22 = vmax.f32 %v2516_v6, 0.0  ;;  %v2743_v34 = vadd.f32 %v2742_v48, %v7455_v39 }
 0x9e8   :  { %v3185_v28 = vmax.f32 %v2769_v11, 0.0 }
 0x9e9   :  { %5342 = vmatmul.msk.f32.vlgmr.msrb.gmra.mxu3 %vm1959_vm3, %v7536_v15  ;;  %3699 = vmatpush.msrb.mxu2 %v3163_v22  ;;  %v3182_v54 = vmax.f32 %v2743_v34, 0.0  ;;  %v3087_v55 = vpop.f32.mrf.mxu0  ;;  %v3205_v34 = vmax.f32 %v2999_v23, 0.0 }
 0x9ea   :  { %3719 = vmatpush.msrb.mxu3 %v3165_v52  ;;  %5355 = vmatmul.msk.f32.vlgmr.msra.gmra.mxu1 %vm1959_vm3, %v7536_v15  ;;  %v3197_v52 = vmax.f32 %v2907_v40, 0.0 }
 0x9eb   :  { %3919 = vmatpush.msrb.mxu0 %v3185_v28  ;;  %3700 = vmatpush.msrb.mxu2 %v3162_v18  ;;  %v3196_v18 = vmax.f32 %v2904_v4, 0.0 }
 0x9ec   :  { %3720 = vmatpush.msrb.mxu3 %v3164_v36  ;;  %v2604_v30 = vpop.f32.mrf.mxu3  ;;  %5349 = vmatmul.msk.f32.vlgmr.msrb.gmra.mxu2 %vm1959_vm3, %v7536_v15 }
 0x9ed   :  { %3920 = vmatpush.msrb.mxu0 %v3184_v9  ;;  %v2857_v16 = vpop.f32.mrf.mxu2  ;;  %v2605_v35 = vadd.f32 %v2604_v30, %v7455_v39  ;;  %v2996_v30 = vadd.f32 %v7768_v38, %v7455_v39 }
 0x9ee   :  { %5360 = vmatmul.msk.f32.vlgmr.msrb.gmra.mxu0 %vm1959_vm3, %v7536_v15  ;;  %v2745_v37 = vpop.f32.mrf.mxu1  ;;  %v2858_v60 = vadd.f32 %v2857_v16, %v7455_v39 }
 0x9ef   :  { %v2746_v56 = vadd.f32 %v2745_v37, %v7447_v8  ;;  %v3170_v2 = vmax.f32 %v2605_v35, 0.0 }
 0x9f0   :  { %v3192_v61 = vmax.f32 %v2858_v60, 0.0 }
 0x9f1   :  { %v3183_v62 = vmax.f32 %v2746_v56, 0.0  ;;  %5346 = vmatmul.msk.f32.vlgmr.msra.gmra.mxu3 %vm1959_vm3, %v7536_v15  ;;  %v3090_v56 = vpop.f32.mrf.mxu0 }
 0x9f2   :  { %3799 = vmatpush.msra.mxu3 %v3173_v13 }
 0x9f3   :  { %3899 = vmatpush.msrb.mxu1 %v3183_v62  ;;  %v3204_v62 = vmax.f32 %v2996_v30, 0.0 }
 0x9f4   :  { %3800 = vmatpush.msra.mxu3 %v3172_v51  ;;  %v2607_v59 = vpop.f32.mrf.mxu3 }
 0x9f5   :  { %v2608_v12 = vadd.f32 %v2607_v59, %v7447_v8  ;;  %v2860_v20 = vpop.f32.mrf.mxu2  ;;  %3900 = vmatpush.msrb.mxu1 %v3182_v54  ;;  %v3091_v54 = vadd.f32 %v3090_v56, %v7447_v8 }
 0x9f6   :  { %v2861_v43 = vadd.f32 %v2860_v20, %v7447_v8  ;;  %v2834_v21 = vpop.f32.mrf.mxu1  ;;  %5359 = vmatmul.msk.f32.vlgmr.msrb.gmra.mxu1 %vm1959_vm3, %v7536_v15 }
 0x9f7   :  { %v3171_v42 = vmax.f32 %v2608_v12, 0.0  ;;  %v2835_v14 = vadd.f32 %v2834_v21, %v7455_v39  ;;  %v3088_v12 = vadd.f32 %v3087_v55, %v7455_v39  ;;  %v3213_v21 = vmax.f32 %v3091_v54, 0.0 }
 0x9f8   :  { %v3193_v24 = vmax.f32 %v2861_v43, 0.0 }
 0x9f9   :  { %5350 = vmatmul.msk.f32.vlgmr.msrb.gmra.mxu3 %vm1959_vm3, %v7536_v15  ;;  %3779 = vmatpush.msra.mxu2 %v3171_v42  ;;  %v3190_v26 = vmax.f32 %v2835_v14, 0.0  ;;  %v3282_v23 = vpop.f32.mrf.mxu0 }
 0x9fa   :  { %3879 = vmatpush.msrb.mxu3 %v3181_v63  ;;  %3999 = vmatpush.msra.mxu0 %v3193_v24  ;;  %v3212_v24 = vmax.f32 %v3088_v12, 0.0 }
 0x9fb   :  { %3780 = vmatpush.msra.mxu2 %v3170_v2 }
 0x9fc   :  { %3880 = vmatpush.msrb.mxu3 %v3180_v45  ;;  %4000 = vmatpush.msra.mxu0 %v3192_v61  ;;  %v2696_v25 = vpop.f32.mrf.mxu3 }
 0x9fd   :  { %v2949_v47 = vpop.f32.mrf.mxu2  ;;  %5353 = vmatmul.msk.f32.vlgmr.msra.gmra.mxu2 %vm1959_vm3, %v7536_v15  ;;  %5364 = vmatmul.msk.f32.vlgmr.msra.gmra.mxu0 %vm1959_vm3, %v7536_v15  ;;  %v2697_v58 = vadd.f32 %v2696_v25, %v7455_v39 }
 0x9fe   :  { %v2837_v5 = vpop.f32.mrf.mxu1  ;;  %v2950_v46 = vadd.f32 %v2949_v47, %v7455_v39 }
 0x9ff   :  { %v2838_v41 = vadd.f32 %v2837_v5, %v7447_v8  ;;  %v3178_v10 = vmax.f32 %v2697_v58, 0.0 }
 0xa00   :  { %v3200_v36 = vmax.f32 %v2950_v46, 0.0 }
 0xa01   :  { %v3191_v31 = vmax.f32 %v2838_v41, 0.0  ;;  %5354 = vmatmul.msk.f32.vlgmr.msra.gmra.mxu3 %vm1959_vm3, %v7536_v15 }
 0xa02   :  { %3959 = vmatpush.msra.mxu3 %v3189_v0 }
 0xa03   :  { %3979 = vmatpush.msra.mxu1 %v3191_v31 }
 0xa04   :  { %3960 = vmatpush.msra.mxu3 %v3188_v32  ;;  %v2699_v33 = vpop.f32.mrf.mxu3 }
 0xa05   :  { %v2700_v19 = vadd.f32 %v2699_v33, %v7447_v8  ;;  %v2952_v6 = vpop.f32.mrf.mxu2  ;;  %3980 = vmatpush.msra.mxu1 %v3190_v26 }
 0xa06   :  { %v2953_v11 = vadd.f32 %v2952_v6, %v7447_v8  ;;  %v2926_v48 = vpop.f32.mrf.mxu1  ;;  %5363 = vmatmul.msk.f32.vlgmr.msra.gmra.mxu1 %vm1959_vm3, %v7536_v15 }
 0xa07   :  { %v3179_v22 = vmax.f32 %v2700_v19, 0.0  ;;  %v2927_v57 = vadd.f32 %v2926_v48, %v7455_v39 }
 0xa08   :  { %v3201_v28 = vmax.f32 %v2953_v11, 0.0 }
 0xa09   :  { %3859 = vmatpush.msrb.mxu2 %v3179_v22  ;;  %5358 = vmatmul.msk.f32.vlgmr.msrb.gmra.mxu3 %vm1959_vm3, %v7536_v15  ;;  %v3198_v51 = vmax.f32 %v2927_v57, 0.0  ;;  %v3362_v57 = vpop.f32.mrf.mxu0 }
 0xa0a   :  { %4039 = vmatpush.msrb.mxu3 %v3197_v52  ;;  %4079 = vmatpush.msrb.mxu0 %v3201_v28 }
 0xa0b   :  { %3860 = vmatpush.msrb.mxu2 %v3178_v10 }
 0xa0c   :  { %4040 = vmatpush.msrb.mxu3 %v3196_v18  ;;  %4080 = vmatpush.msrb.mxu0 %v3200_v36  ;;  %v2788_v9 = vpop.f32.mrf.mxu3 }
 0xa0d   :  { %v3041_v17 = vpop.f32.mrf.mxu2  ;;  %5357 = vmatmul.msk.f32.vlgmr.msrb.gmra.mxu2 %vm1959_vm3, %v7536_v15  ;;  %5368 = vmatmul.msk.f32.vlgmr.msrb.gmra.mxu0 %vm1959_vm3, %v7536_v15  ;;  %v2789_v38 = vadd.f32 %v2788_v9, %v7455_v39 }
 0xa0e   :  { %v2929_v16 = vpop.f32.mrf.mxu1  ;;  %v3042_v20 = vadd.f32 %v3041_v17, %v7455_v39 }
 0xa0f   :  { %v2930_v37 = vadd.f32 %v2929_v16, %v7447_v8  ;;  %v3186_v63 = vmax.f32 %v2789_v38, 0.0 }
 0xa10   :  { %v3208_v2 = vmax.f32 %v3042_v20, 0.0 }
 0xa11   :  { %v3199_v13 = vmax.f32 %v2930_v37, 0.0  ;;  %5362 = vmatmul.msk.f32.vlgmr.msra.gmra.mxu3 %vm1959_vm3, %v7536_v15  ;;  %v7855_v37 = vpop.permute.xlu2 %3219  ;;  %v3442_v38 = vpop.f32.mrf.mxu0 }
 0xa12   :  { %4119 = vmatpush.msra.mxu3 %v3205_v34  ;;  %v3283_v54 = vadd.f32 %v3282_v23, %v7855_v37 }
 0xa13   :  { %4059 = vmatpush.msrb.mxu1 %v3199_v13 }
 0xa14   :  { %4120 = vmatpush.msra.mxu3 %v3204_v62  ;;  %v2791_v1 = vpop.f32.mrf.mxu3 }
 0xa15   :  { %v2792_v59 = vadd.f32 %v2791_v1, %v7447_v8  ;;  %v3044_v35 = vpop.f32.mrf.mxu2  ;;  %4060 = vmatpush.msrb.mxu1 %v3198_v51 }
 0xa16   :  { %v3045_v7 = vadd.f32 %v3044_v35, %v7447_v8  ;;  %v3018_v60 = vpop.f32.mrf.mxu1  ;;  %5367 = vmatmul.msk.f32.vlgmr.msrb.gmra.mxu1 %vm1959_vm3, %v7536_v15 }
 0xa17   :  { %v3187_v43 = vmax.f32 %v2792_v59, 0.0  ;;  %v3019_v27 = vadd.f32 %v3018_v60, %v7455_v39  ;;  %v3363_v60 = vadd.f32 %v3362_v57, %v7855_v37 }
 0xa18   :  { %v3209_v42 = vmax.f32 %v3045_v7, 0.0 }
 0xa19   :  { %3939 = vmatpush.msra.mxu2 %v3187_v43  ;;  %5366 = vmatmul.msk.f32.vlgmr.msrb.gmra.mxu3 %vm1959_vm3, %v7536_v15  ;;  %v3206_v47 = vmax.f32 %v3019_v27, 0.0 }
 0xa1a   :  { %4159 = vmatpush.msra.mxu0 %v3209_v42  ;;  %4199 = vmatpush.msrb.mxu3 %v3213_v21 }
 0xa1b   :  { %3940 = vmatpush.msra.mxu2 %v3186_v63 }
 0xa1c   :  { %4160 = vmatpush.msra.mxu0 %v3208_v2  ;;  %4200 = vmatpush.msrb.mxu3 %v3212_v24  ;;  %v2880_v45 = vpop.f32.mrf.mxu3 }
 0xa1d   :  { %5361 = vmatmul.msk.f32.vlgmr.msra.gmra.mxu2 %vm1959_vm3, %v7536_v15  ;;  %5372 = vmatmul.msk.f32.vlgmr.msra.gmra.mxu0 %vm1959_vm3, %v7536_v15  ;;  %v2881_v5 = vadd.f32 %v2880_v45, %v7455_v39  ;;  %v3242_v10 = vpop.f32.mrf.mxu2  ;;  %v3522_v45 = vpop.f32.mrf.mxu0 }
 0xa1e   :  { %v3021_v61 = vpop.f32.mrf.mxu1  ;;  %v3243_v13 = vadd.f32 %v3242_v10, %v7855_v37 }
 0xa1f   :  { %v3022_v25 = vadd.f32 %v3021_v61, %v7447_v8  ;;  %v3194_v31 = vmax.f32 %v2881_v5, 0.0 }
 0xa20   :  { %v4225_v59 = vmax.f32 %v3243_v13, %v3283_v54 }
 0xa21   :  { %v3207_v3 = vmax.f32 %v3022_v25, 0.0  ;;  %5370 = vmatmul.msk.f32.vlgmr.msra.gmra.mxu3 %vm1959_vm3, %v7536_v15 }
 0xa23   :  { %4139 = vmatpush.msra.mxu1 %v3207_v3  ;;  %v3443_v3 = vadd.f32 %v3442_v38, %v7855_v37  ;;  %v7882_v38 = vpop.permute.xlu0 %300 }
 0xa24   :  { %v2883_v50 = vpop.f32.mrf.mxu3 }
 0xa25   :  { %v2884_v14 = vadd.f32 %v2883_v50, %v7447_v8  ;;  %4140 = vmatpush.msra.mxu1 %v3206_v47  ;;  %v3302_v17 = vpop.f32.mrf.mxu2 }
 0xa26   :  { %v3110_v41 = vpop.f32.mrf.mxu1  ;;  %5371 = vmatmul.msk.f32.vlgmr.msra.gmra.mxu1 %vm1959_vm3, %v7536_v15 }
 0xa27   :  { %v3195_v0 = vmax.f32 %v2884_v14, 0.0  ;;  %v3111_v40 = vadd.f32 %v3110_v41, %v7455_v39 }
 0xa29   :  { %4019 = vmatpush.msrb.mxu2 %v3195_v0  ;;  %5374 = vmatmul.msk.f32.vlgmr.msrb.gmra.mxu3 %vm1959_vm3, %v7536_v15  ;;  %v3214_v19 = vmax.f32 %v3111_v40, 0.0 }
 0xa2b   :  { %4020 = vmatpush.msrb.mxu2 %v3194_v31  ;;  %v3602_v40 = vpop.f32.mrf.mxu0 }
 0xa2c   :  { %v2972_v32 = vpop.f32.mrf.mxu3  ;;  %5365 = vmatmul.msk.f32.vlgmr.msrb.gmra.mxu2 %vm1959_vm3, %v7536_v15 }
 0xa2d   :  { %v2973_v4 = vadd.f32 %v2972_v32, %v7455_v39 }
 0xa2e   :  { %v3113_v26 = vpop.f32.mrf.mxu1 }
 0xa2f   :  { %v3114_v33 = vadd.f32 %v3113_v26, %v7447_v8  ;;  %v3202_v48 = vmax.f32 %v2973_v4, 0.0  ;;  %v3523_v26 = vadd.f32 %v3522_v45, %v7855_v37 }
 0xa31   :  { %v3215_v58 = vmax.f32 %v3114_v33, 0.0  ;;  %v3382_v34 = vpop.f32.mrf.mxu2 }
 0xa32   :  { %v3383_v20 = vadd.f32 %v3382_v34, %v7855_v37 }
 0xa33   :  { %4219 = vmatpush.msrb.mxu1 %v3215_v58 }
 0xa34   :  { %v2975_v6 = vpop.f32.mrf.mxu3 }
 0xa35   :  { %v2976_v46 = vadd.f32 %v2975_v6, %v7447_v8  ;;  %4220 = vmatpush.msrb.mxu1 %v3214_v19 }
 0xa36   :  { %5375 = vmatmul.msk.f32.vlgmr.msrb.gmra.mxu1 %vm1959_vm3, %v7536_v15  ;;  %v3342_v30 = vpop.f32.mrf.mxu1 }
 0xa37   :  { %v3203_v11 = vmax.f32 %v2976_v46, 0.0 }
 0xa39   :  { %4099 = vmatpush.msra.mxu2 %v3203_v11 }
 0xa3b   :  { %4100 = vmatpush.msra.mxu2 %v3202_v48  ;;  %v3682_v10 = vpop.f32.mrf.mxu0 }
 0xa3c   :  { %v3064_v55 = vpop.f32.mrf.mxu3  ;;  %5369 = vmatmul.msk.f32.vlgmr.msra.gmra.mxu2 %vm1959_vm3, %v7536_v15 }
 0xa3d   :  { %v3065_v52 = vadd.f32 %v3064_v55, %v7455_v39  ;;  %v3603_v55 = vadd.f32 %v3602_v40, %v7855_v37 }
 0xa3e   :  { %v3422_v56 = vpop.f32.mrf.mxu1 }
 0xa3f   :  { %v3210_v36 = vmax.f32 %v3065_v52, 0.0  ;;  %v3423_v24 = vadd.f32 %v3422_v56, %v7855_v37 }
 0xa41   :  { %v3462_v12 = vpop.f32.mrf.mxu2 }
 0xa42   :  { %v3463_v47 = vadd.f32 %v3462_v12, %v7855_v37  ;;  %v7887_v12 = vpop.permute.xlu1 %295 }
 0xa44   :  { %v3067_v22 = vpop.f32.mrf.mxu3 }
 0xa45   :  { %v3068_v28 = vadd.f32 %v3067_v22, %v7447_v8  ;;  %v3303_v8 = vadd.f32 %v3302_v17, %v7855_v37 }
 0xa46   :  { %v3502_v42 = vpop.f32.mrf.mxu1 }
 0xa47   :  { %v3211_v18 = vmax.f32 %v3068_v28, 0.0  ;;  %v3503_v0 = vadd.f32 %v3502_v42, %v7855_v37 }
 0xa49   :  { %4179 = vmatpush.msrb.mxu2 %v3211_v18 }
 0xa4b   :  { %4180 = vmatpush.msrb.mxu2 %v3210_v36 }
 0xa4c   :  { %v3262_v9 = vpop.f32.mrf.mxu3  ;;  %5373 = vmatmul.msk.f32.vlgmr.msrb.gmra.mxu2 %vm1959_vm3, %v7536_v15  ;;  %v3343_v15 = vadd.f32 %v3342_v30, %v7855_v37 }
 0xa4d   :  { %v3263_v39 = vadd.f32 %v3262_v9, %v7855_v37 }
 0xa4e   :  { %v3582_v32 = vpop.f32.mrf.mxu1 }
 0xa4f   :  { %v4226_v62 = vmax.f32 %v3263_v39, %v3303_v8  ;;  %v3583_v22 = vadd.f32 %v3582_v32, %v7855_v37  ;;  %v7917_v32 = vld [vmem:[%s8212_s11 + $0x8] sm:$0xff] }
 0xa51   :  { %v4228_v35 = vmax.f32 %v4226_v62, %v3343_v15  ;;  %v3542_v25 = vpop.f32.mrf.mxu2 }
 0xa52   :  { %v3543_v6 = vadd.f32 %v3542_v25, %v7855_v37  ;;  %v8294_v25 = vld [vmem:[#allocation9_spill] sm:$0xff] }
 0xa53   :  { %v4230_v43 = vmax.f32 %v4228_v35, %v3383_v20  ;;  %v8288_v20 = vld [vmem:[#allocation18_spill] sm:$0xff] }
 0xa54   :  { %v3322_v16 = vpop.f32.mrf.mxu3 }
 0xa55   :  { %v3323_v1 = vadd.f32 %v3322_v16, %v7855_v37  ;;  %v4232_v61 = vmax.f32 %v4230_v43, %v3423_v24  ;;  %v3683_v16 = vadd.f32 %v3682_v10, %v7855_v37 }
 0xa57   :  { %v4227_v7 = vmax.f32 %v4225_v59, %v3323_v1  ;;  %v4234_v5 = vmax.f32 %v4232_v61, %v3463_v47  ;;  %v3662_v23 = vpop.f32.mrf.mxu1  ;;  %v8287_v59 = vld [vmem:[#allocation19_spill] sm:$0xff]  ;;  %v8293_v61 = vld [vmem:[#allocation10_spill] sm:$0xff] }
 0xa58   :  { %v3663_v57 = vadd.f32 %v3662_v23, %v7855_v37  ;;  %v970_v35 = vadd.f32 %v8287_v59, %v7882_v38  ;;  %v8295_v47 = vld [vmem:[#allocation6_spill] sm:$0xff] }
 0xa59   :  { %v4229_v2 = vmax.f32 %v4227_v7, %v3363_v60  ;;  %v4236_v33 = vmax.f32 %v4234_v5, %v3503_v0  ;;  %v967_v7 = vadd.f32 %v8288_v20, %v7887_v12  ;;  %v8289_v60 = vld [vmem:[#allocation17_spill] sm:$0xff] }
 0xa5a   :  { %v818_v43 = vadd.f32 %v8289_v60, %v7882_v38  ;;  %v8296_v5 = vld [vmem:[#allocation5_spill] sm:$0xff] }
 0xa5b   :  { %v4238_v46 = vmax.f32 %v4236_v33, %v3543_v6 }
 0xa5c   :  { %v3402_v51 = vpop.f32.mrf.mxu3 }
 0xa5d   :  { %v3403_v21 = vadd.f32 %v3402_v51, %v7855_v37  ;;  %v4240_v18 = vmax.f32 %v4238_v46, %v3583_v22 }
 0xa5f   :  { %v4231_v27 = vmax.f32 %v4229_v2, %v3403_v21  ;;  %v3622_v19 = vpop.f32.mrf.mxu2  ;;  %v8290_v21 = vld [vmem:[#allocation16_spill] sm:$0xff] }
 0xa60   :  { %v3623_v52 = vadd.f32 %v3622_v19, %v7855_v37  ;;  %v815_v42 = vadd.f32 %v8290_v21, %v7887_v12  ;;  %v8292_v2 = vld [vmem:[#allocation12_spill] sm:$0xff]  ;;  %v7924_v19 = vld [vmem:[%s8212_s11 + $0x10] sm:$0xff]  ;;  %v7957_v21 = vld [vmem:[%s8212_s11 + $0x28] sm:$0xff] }
 0xa61   :  { %v4233_v14 = vmax.f32 %v4231_v27, %v3443_v3  ;;  %v663_v45 = vadd.f32 %v8292_v2, %v7887_v12  ;;  %v514_v27 = vadd.f32 %v8293_v61, %v7882_v38  ;;  %v511_v3 = vadd.f32 %v8294_v25, %v7887_v12 }
 0xa62   :  { %v4242_v17 = vmax.f32 %v4240_v18, %v3623_v52 }
 0xa64   :  { %v3482_v63 = vpop.f32.mrf.mxu3  ;;  %v4244_v8 = vmax.f32 %v4242_v17, %v3663_v57 }
 0xa65   :  { %v3483_v50 = vadd.f32 %v3482_v63, %v7855_v37  ;;  %v8291_v63 = vld [vmem:[#allocation14_spill] sm:$0xff] }
 0xa66   :  { %v666_v24 = vadd.f32 %v8291_v63, %v7882_v38 }
 0xa67   :  { %v4235_v31 = vmax.f32 %v4233_v14, %v3483_v50  ;;  %v362_v50 = vadd.f32 %v8295_v47, %v7882_v38  ;;  %v359_v14 = vadd.f32 %v8296_v5, %v7887_v12 }
 0xa69   :  { %v4237_v4 = vmax.f32 %v4235_v31, %v3523_v26  ;;  %v3742_v31 = vpop.f32.mrf.mxu1  ;;  %v3762_v26 = vpop.f32.mrf.mxu0 }
 0xa6a   :  { %v3743_v22 = vadd.f32 %v3742_v31, %v7855_v37 }
 0xa6c   :  { %v3562_v41 = vpop.f32.mrf.mxu3 }
 0xa6d   :  { %v3563_v58 = vadd.f32 %v3562_v41, %v7855_v37  ;;  %v7910_v41 = vld [vmem:[%s8212_s11] sm:$0xff] }
 0xa6f   :  { %v4239_v11 = vmax.f32 %v4237_v4, %v3563_v58  ;;  %v3702_v9 = vpop.f32.mrf.mxu2 }
 0xa70   :  { %v3703_v39 = vadd.f32 %v3702_v9, %v7855_v37 }
 0xa71   :  { %v4241_v36 = vmax.f32 %v4239_v11, %v3603_v55  ;;  %v3822_v58 = vpop.f32.mrf.mxu1  ;;  %v3842_v6 = vpop.f32.mrf.mxu0  ;;  %v7932_v55 = vld [vmem:[%s8212_s11 + $0x18] sm:$0xff] }
 0xa72   :  { %v4246_v62 = vmax.f32 %v4244_v8, %v3703_v39  ;;  %v3823_v23 = vadd.f32 %v3822_v58, %v7855_v37  ;;  %v7946_v8 = vld [vmem:[%s8212_s11 + $0x20] sm:$0xff] }
 0xa74   :  { %v3642_v48 = vpop.f32.mrf.mxu3 }
 0xa75   :  { %v3643_v28 = vadd.f32 %v3642_v48, %v7855_v37 }
 0xa77   :  { %v4243_v30 = vmax.f32 %v4241_v36, %v3643_v28  ;;  %v3763_v28 = vadd.f32 %v3762_v26, %v7855_v37  ;;  %v4287_v26 = vld [vmem:[%s8212_s11 + $0x30] sm:$0xff] }
 0xa79   :  { %v4245_v13 = vmax.f32 %v4243_v30, %v3683_v16  ;;  %v3902_v46 = vpop.f32.mrf.mxu1  ;;  %v3922_v18 = vpop.f32.mrf.mxu0  ;;  %v3843_v16 = vadd.f32 %v3842_v6, %v7855_v37 }
 0xa7a   :  { %v3923_v59 = vadd.f32 %v3922_v18, %v7855_v37 }
 0xa7c   :  { %v3722_v34 = vpop.f32.mrf.mxu3 }
 0xa7d   :  { %v3723_v56 = vadd.f32 %v3722_v34, %v7855_v37 }
 0xa7f   :  { %v4247_v51 = vmax.f32 %v4245_v13, %v3723_v56 }
 0xa80   :  { %v3782_v40 = vpop.f32.mrf.mxu2 }
 0xa81   :  { %v4248_v54 = vmax.f32 %v4247_v51, %v4246_v62  ;;  %v3783_v48 = vadd.f32 %v3782_v40, %v7855_v37  ;;  %v3903_v62 = vadd.f32 %v3902_v46, %v7855_v37 }
 0xa83   :  { %v4275_v15 = vrot.slane %v4248_v54, 4  ;;  %v4249_v10 = vmax.f32 %v3743_v22, %v3783_v48  ;;  %v3982_v30 = vpop.f32.mrf.mxu1 }
 0xa84   :  { %v3802_v0 = vpop.f32.mrf.mxu3 }
 0xa85   :  { %v4279_v1 = vmax.f32 %v4248_v54, %v4275_v15  ;;  %v3803_v52 = vadd.f32 %v3802_v0, %v7855_v37  ;;  %v4251_v39 = vmax.f32 %v4249_v10, %v3823_v23  ;;  %v4002_v15 = vpop.f32.mrf.mxu0 }
 0xa87   :  { %5376 = vmatpush.msk.msrb.mxu0 %vm161_vm0, %v4279_v1  ;;  %v4250_v9 = vmax.f32 %v3763_v28, %v3803_v52 }
 0xa89   :  { %4371 = vmatpush.msrb.mxu0 %v970_v35  ;;  %v4252_v56 = vmax.f32 %v4250_v9, %v3843_v16  ;;  %v4288_v9 = vld [vmem:[%s8212_s11 + $0x38] sm:$0xff] }
 0xa8b   :  { %4372 = vmatpush.msrb.mxu0 %v967_v7 }
 0xa8c   :  { %v3882_v33 = vpop.f32.mrf.mxu3 }
 0xa8d   :  { %4373 = vmatpush.msrb.mxu0 %v818_v43  ;;  %v3883_v57 = vadd.f32 %v3882_v33, %v7855_v37  ;;  %v4082_v25 = vpop.f32.mrf.mxu0 }
 0xa8e   :  { %v4083_v40 = vadd.f32 %v4082_v25, %v7855_v37 }
 0xa8f   :  { %4374 = vmatpush.msrb.mxu0 %v815_v42  ;;  %v4254_v51 = vmax.f32 %v4252_v56, %v3883_v57  ;;  %v3983_v42 = vadd.f32 %v3982_v30, %v7855_v37 }
 0xa90   :  { %v3862_v4 = vpop.f32.mrf.mxu2 }
 0xa91   :  { %4375 = vmatpush.msrb.mxu0 %v666_v24  ;;  %v3863_v17 = vadd.f32 %v3862_v4, %v7855_v37  ;;  %v4256_v60 = vmax.f32 %v4254_v51, %v3923_v59  ;;  %v1727_v51 = vadd.f32 %v7133_v44, %v7887_v12 }
 0xa93   :  { %4376 = vmatpush.msrb.mxu0 %v663_v45  ;;  %v4253_v13 = vmax.f32 %v4251_v39, %v3863_v17  ;;  %v4062_v7 = vpop.f32.mrf.mxu1  ;;  %v4003_v45 = vadd.f32 %v4002_v15, %v7855_v37  ;;  %v8297_v15 = vld [vmem:[#allocation27_spill] sm:$0xff] }
 0xa94   :  { %v3962_v11 = vpop.f32.mrf.mxu3 }
 0xa95   :  { %4377 = vmatpush.msrb.mxu0 %v514_v27  ;;  %v3963_v35 = vadd.f32 %v3962_v11, %v7855_v37  ;;  %v4255_v20 = vmax.f32 %v4253_v13, %v3903_v62  ;;  %v1730_v62 = vadd.f32 %v7135_v49, %v7882_v38  ;;  %v8298_v49 = vld [vmem:[#allocation26_spill] sm:$0xff] }
 0xa96   :  { %v1423_v59 = vadd.f32 %v8298_v49, %v7887_v12 }
 0xa97   :  { %4378 = vmatpush.msrb.mxu0 %v511_v3  ;;  %v4258_v63 = vmax.f32 %v4256_v60, %v3963_v35  ;;  %v8299_v35 = vld [vmem:[#allocation25_spill] sm:$0xff]  ;;  %v8302_v60 = vld [vmem:[#allocation22_spill] sm:$0xff] }
 0xa98   :  { %v1274_v44 = vadd.f32 %v8299_v35, %v7882_v38 }
 0xa99   :  { %4379 = vmatpush.msrb.mxu0 %v362_v50  ;;  %v4260_v47 = vmax.f32 %v4258_v63, %v4003_v45 }
 0xa9a   :  { %v4162_v46 = vpop.f32.mrf.mxu0 }
 0xa9b   :  { %4380 = vmatpush.msrb.mxu0 %v359_v14  ;;  %v4063_v14 = vadd.f32 %v4062_v7, %v7855_v37  ;;  %v4163_v10 = vadd.f32 %v4162_v46, %v7855_v37  ;;  %v8301_v7 = vld [vmem:[#allocation23_spill] sm:$0xff] }
 0xa9c   :  { %5377 = vmatmul.msk.f32.vlgmr.msrb.gmra.mxu0 %vm4337_vm4, %v7910_v41  ;;  %v4042_v34 = vpop.f32.mrf.mxu3 }
 0xa9d   :  { %v4043_v61 = vadd.f32 %v4042_v34, %v7855_v37 }
 0xa9f   :  { %v4262_v0 = vmax.f32 %v4260_v47, %v4043_v61 }
 0xaa0   :  { %v3942_v36 = vpop.f32.mrf.mxu2 }
 0xaa1   :  { %v3943_v54 = vadd.f32 %v3942_v36, %v7855_v37  ;;  %v4264_v6 = vmax.f32 %v4262_v0, %v4083_v40 }
 0xaa3   :  { %v4257_v43 = vmax.f32 %v4255_v20, %v3943_v54  ;;  %v4142_v5 = vpop.f32.mrf.mxu1  ;;  %v1575_v54 = vadd.f32 %v7023_v29, %v7887_v12  ;;  %v8300_v20 = vld [vmem:[#allocation24_spill] sm:$0xff]  ;;  %v1122_v29 = vadd.f32 %v8301_v7, %v7882_v38 }
 0xaa4   :  { %5378 = vmatmul.msk.f32.gmra.mxu0 %vm4337_vm4, %v7917_v32  ;;  %v4122_v2 = vpop.f32.mrf.mxu3  ;;  %v4143_v48 = vadd.f32 %v4142_v5, %v7855_v37 }
 0xaa5   :  { %v4259_v27 = vmax.f32 %v4257_v43, %v3983_v42  ;;  %v4123_v33 = vadd.f32 %v4122_v2, %v7855_v37  ;;  %v1119_v43 = vadd.f32 %v8302_v60, %v7887_v12  ;;  %v8021_v2 = vpop.permute.xlu1 %4324 }
 0xaa7   :  { %v4266_v22 = vmax.f32 %v4264_v6, %v4123_v33 }
 0xaa9   :  { %v4268_v17 = vmax.f32 %v4266_v22, %v4163_v10  ;;  %v8044_v22 = vld [vmem:[%s8214_s13] sm:$0xff]  ;;  %v8065_v10 = vld [vmem:[%s8214_s13 + $0x18] sm:$0xff] }
 0xaac   :  { %5379 = vmatmul.msk.f32.gmra.mxu0 %vm4337_vm4, %v7924_v19  ;;  %v4202_v11 = vpop.f32.mrf.mxu3 }
 0xaad   :  { %v4203_v18 = vadd.f32 %v4202_v11, %v7855_v37  ;;  %v8032_v0 = vpop.permute.xlu1 %4309 }
 0xaaf   :  { %v4022_v1 = vpop.f32.mrf.mxu2  ;;  %v4270_v57 = vmax.f32 %v4268_v17, %v4203_v18  ;;  %v8072_v18 = vld [vmem:[%s8214_s13 + $0x20] sm:$0xff] }
 0xab0   :  { %v4023_v24 = vadd.f32 %v4022_v1, %v7855_v37  ;;  %v1426_v1 = vadd.f32 %v8297_v15, %v7882_v38 }
 0xab2   :  { %v4261_v50 = vmax.f32 %v4259_v27, %v4023_v24  ;;  %v8019_v24 = vpop.permute.xlu0 %4329 }
 0xab3   :  { %v4222_v52 = vpop.f32.mrf.mxu1 }
 0xab4   :  { %5380 = vmatmul.msk.f32.gmra.mxu0 %vm4337_vm4, %v7932_v55  ;;  %v4263_v58 = vmax.f32 %v4261_v50, %v4063_v14  ;;  %v4223_v30 = vadd.f32 %v4222_v52, %v7855_v37  ;;  %v8051_v52 = vld [vmem:[%s8214_s13 + $0x8] sm:$0xff] }
 0xaba   :  { %v8027_v27 = vpop.permute.xlu0 %4314 }
 0xabc   :  { %5381 = vmatmul.msk.f32.gmra.mxu0 %vm4337_vm4, %v7946_v8 }
 0xabf   :  { %v4102_v3 = vpop.f32.mrf.mxu2 }
 0xac0   :  { %v4103_v31 = vadd.f32 %v4102_v3, %v7855_v37 }
 0xac2   :  { %v4265_v4 = vmax.f32 %v4263_v58, %v4103_v31  ;;  %v8038_v6 = vpop.permute.xlu0 %4299 }
 0xac4   :  { %5382 = vmatmul.msk.f32.gmra.mxu0 %vm4337_vm4, %v7957_v21  ;;  %v4267_v23 = vmax.f32 %v4265_v4, %v4143_v48 }
 0xacc   :  { %5383 = vmatmul.msk.f32.gmra.mxu0 %vm4337_vm4, %v4287_v26 }
 0xacf   :  { %v4182_v28 = vpop.f32.mrf.mxu2 }
 0xad0   :  { %v4183_v36 = vadd.f32 %v4182_v28, %v7855_v37  ;;  %v1578_v37 = vadd.f32 %v7025_v53, %v7882_v38  ;;  %v1271_v53 = vadd.f32 %v8300_v20, %v7887_v12  ;;  %v8058_v28 = vld [vmem:[%s8214_s13 + $0x10] sm:$0xff] }
 0xad2   :  { %v4269_v16 = vmax.f32 %v4267_v23, %v4183_v36  ;;  %v8079_v36 = vld [vmem:[%s8214_s13 + $0x28] sm:$0xff]  ;;  %v8086_v23 = vld [vmem:[%s8214_s13 + $0x30] sm:$0xff] }
 0xad4   :  { %v4271_v39 = vmax.f32 %v4269_v16, %v4223_v30  ;;  %5384 = vmatmul.msk.f32.gmra.mxu0 %vm4337_vm4, %v4288_v9 }
 0xad6   :  { %v4272_v34 = vmax.f32 %v4271_v39, %v4270_v57 }
 0xad8   :  { %v4276_v56 = vrot.slane %v4272_v34, 4 }
 0xada   :  { %v4280_v13 = vmax.f32 %v4272_v34, %v4276_v56 }
 0xadc   :  { %5395 = vmatpush.msk.msra.mxu1 %vm161_vm0, %v4280_v13 }
 0xade   :  { %4596 = vmatpush.msra.mxu1 %v1730_v62 }
 0xae0   :  { %4597 = vmatpush.msra.mxu1 %v1727_v51 }
 0xae2   :  { %4598 = vmatpush.msra.mxu1 %v1578_v37 }
 0xae4   :  { %4599 = vmatpush.msra.mxu1 %v1575_v54  ;;  %v8099_v54 = vpop.permute.xlu1 %4467 }
 0xae6   :  { %4600 = vmatpush.msra.mxu1 %v1426_v1 }
 0xae8   :  { %4601 = vmatpush.msra.mxu1 %v1423_v59  ;;  %v8103_v59 = vpop.permute.xlu0 %4457 }
 0xaea   :  { %4602 = vmatpush.msra.mxu1 %v1274_v44 }
 0xaec   :  { %4603 = vmatpush.msra.mxu1 %v1271_v53  ;;  %v8105_v35 = vpop.permute.xlu1 %4452 }
 0xaee   :  { %4604 = vmatpush.msra.mxu1 %v1122_v29 }
 0xaf0   :  { %4605 = vmatpush.msra.mxu1 %v1119_v43 }
 0xaf1   :  { %5396 = vmatmul.msk.f32.vlgmr.msra.gmra.mxu1 %vm4337_vm4, %v7910_v41 }
 0xaf9   :  { %5397 = vmatmul.msk.f32.gmra.mxu1 %vm4337_vm4, %v7917_v32 }
 0xb01   :  { %5398 = vmatmul.msk.f32.gmra.mxu1 %vm4337_vm4, %v7924_v19  ;;  %v8017_v19 = vpop.permute.xlu2 %4334 }
 0xb09   :  { %5399 = vmatmul.msk.f32.gmra.mxu1 %vm4337_vm4, %v7932_v55 }
 0xb11   :  { %5400 = vmatmul.msk.f32.gmra.mxu1 %vm4337_vm4, %v7946_v8  ;;  %v8023_v8 = vpop.permute.xlu2 %4319 }
 0xb19   :  { %v4382_v38 = vpop.f32.mrf.mxu0  ;;  %5401 = vmatmul.msk.f32.gmra.mxu1 %vm4337_vm4, %v7957_v21  ;;  %v8035_v40 = vpop.permute.xlu2 %4304 }
 0xb1a   :  { %v4383_v4 = vadd.f32 %v4382_v38, %v8038_v6 }
 0xb1c   :  { %v4406_v48 = vmax.f32 %v4383_v4, 0.0 }
 0xb21   :  { %v4385_v12 = vpop.f32.mrf.mxu0  ;;  %5402 = vmatmul.msk.f32.gmra.mxu1 %vm4337_vm4, %v4287_v26  ;;  %v8101_v15 = vpop.permute.xlu2 %4462 }
 0xb22   :  { %v4386_v33 = vadd.f32 %v4385_v12, %v8035_v40 }
 0xb24   :  { %v4407_v11 = vmax.f32 %v4386_v33, 0.0  ;;  %v8128_v33 = vld [vmem:[%s8216_s15] sm:$0xff] }
 0xb29   :  { %v4388_v41 = vpop.f32.mrf.mxu0  ;;  %5403 = vmatmul.msk.f32.gmra.mxu1 %vm4337_vm4, %v4288_v9  ;;  %v8093_v9 = vld [vmem:[%s8214_s13 + $0x38] sm:$0xff]  ;;  %v8109_v7 = vpop.permute.xlu2 %4447 }
 0xb2a   :  { %v4389_v31 = vadd.f32 %v4388_v41, %v8032_v0 }
 0xb2c   :  { %v4408_v46 = vmax.f32 %v4389_v31, 0.0 }
 0xb31   :  { %v4391_v32 = vpop.f32.mrf.mxu0 }
 0xb32   :  { %v4392_v5 = vadd.f32 %v4391_v32, %v8027_v27 }
 0xb34   :  { %v4409_v58 = vmax.f32 %v4392_v5, 0.0 }
 0xb39   :  { %v4394_v42 = vpop.f32.mrf.mxu0 }
 0xb3a   :  { %v4395_v47 = vadd.f32 %v4394_v42, %v8023_v8  ;;  %v8114_v42 = vpop.permute.xlu0 %4442 }
 0xb3c   :  { %v4410_v26 = vmax.f32 %v4395_v47, 0.0 }
 0xb41   :  { %v4397_v63 = vpop.f32.mrf.mxu0 }
 0xb42   :  { %v4398_v25 = vadd.f32 %v4397_v63, %v8021_v2 }
 0xb44   :  { %v4411_v14 = vmax.f32 %v4398_v25, 0.0  ;;  %v8120_v25 = vpop.permute.xlu2 %4432 }
 0xb49   :  { %v4400_v55 = vpop.f32.mrf.mxu0 }
 0xb4a   :  { %v4401_v21 = vadd.f32 %v4400_v55, %v8019_v24 }
 0xb4c   :  { %v4412_v50 = vmax.f32 %v4401_v21, 0.0 }
 0xb51   :  { %v4403_v45 = vpop.f32.mrf.mxu0 }
 0xb52   :  { %v4404_v61 = vadd.f32 %v4403_v45, %v8017_v19  ;;  %v8117_v45 = vpop.permute.xlu1 %4437 }
 0xb54   :  { %v4413_v3 = vmax.f32 %v4404_v61, 0.0 }
 0xb56   :  { %4503 = vmatpush.msra.mxu2 %v4413_v3 }
 0xb58   :  { %4504 = vmatpush.msra.mxu2 %v4412_v50 }
 0xb5a   :  { %4505 = vmatpush.msra.mxu2 %v4411_v14 }
 0xb5c   :  { %4506 = vmatpush.msra.mxu2 %v4410_v26 }
 0xb5e   :  { %4507 = vmatpush.msra.mxu2 %v4409_v58 }
 0xb60   :  { %4508 = vmatpush.msra.mxu2 %v4408_v46 }
 0xb62   :  { %4509 = vmatpush.msra.mxu2 %v4407_v11 }
 0xb64   :  { %4510 = vmatpush.msra.mxu2 %v4406_v48 }
 0xb65   :  { %5385 = vmatmul.msk.f32.vlgmr.msra.gmra.mxu2 %vm4470_vm5, %v8044_v22 }
 0xb6d   :  { %5386 = vmatmul.msk.f32.gmra.mxu2 %vm4470_vm5, %v8051_v52 }
 0xb6e   :  { %v8097_v17 = vpop.f32.mrf.mxu1 }
 0xb75   :  { %5387 = vmatmul.msk.f32.gmra.mxu2 %vm4470_vm5, %v8058_v28 }
 0xb76   :  { %v4610_v16 = vpop.f32.mrf.mxu1 }
 0xb7d   :  { %5388 = vmatmul.msk.f32.gmra.mxu2 %vm4470_vm5, %v8065_v10 }
 0xb7e   :  { %v4613_v34 = vpop.f32.mrf.mxu1 }
 0xb7f   :  { %v4614_v48 = vadd.f32 %v4613_v34, %v8032_v0 }
 0xb85   :  { %5389 = vmatmul.msk.f32.gmra.mxu2 %vm4470_vm5, %v8072_v18 }
 0xb86   :  { %v4616_v13 = vpop.f32.mrf.mxu1 }
 0xb8d   :  { %5390 = vmatmul.msk.f32.gmra.mxu2 %vm4470_vm5, %v8079_v36 }
 0xb8e   :  { %v4619_v51 = vpop.f32.mrf.mxu1 }
 0xb95   :  { %5391 = vmatmul.msk.f32.gmra.mxu2 %vm4470_vm5, %v8086_v23 }
 0xb96   :  { %v4622_v1 = vpop.f32.mrf.mxu1 }
 0xb97   :  { %v4623_v58 = vadd.f32 %v4622_v1, %v8021_v2  ;;  %v4545_v2 = vld [vmem:[%s8216_s15 + $0x8] sm:$0xff] }
 0xb99   :  { %v4636_v11 = vmax.f32 %v4623_v58, 0.0 }
 0xb9d   :  { %5392 = vmatmul.msk.f32.gmra.mxu2 %vm4470_vm5, %v8093_v9 }
 0xb9e   :  { %v4625_v29 = vpop.f32.mrf.mxu1 }
 0xb9f   :  { %v4626_v31 = vadd.f32 %v4625_v29, %v8019_v24  ;;  %v4617_v24 = vadd.f32 %v4616_v13, %v8027_v27  ;;  %v4633_v27 = vmax.f32 %v4614_v48, 0.0 }
 0xba1   :  { %v4637_v46 = vmax.f32 %v4626_v31, 0.0 }
 0xba6   :  { %v4628_v3 = vpop.f32.mrf.mxu1 }
 0xba7   :  { %v4629_v5 = vadd.f32 %v4628_v3, %v8017_v19  ;;  %v4620_v19 = vadd.f32 %v4619_v51, %v8023_v8  ;;  %v4608_v8 = vadd.f32 %v8097_v17, %v8038_v6  ;;  %v4556_v6 = vpop.permute.xlu0 %4555 }
 0xba9   :  { %v4638_v4 = vmax.f32 %v4629_v5, 0.0  ;;  %v4631_v0 = vmax.f32 %v4608_v8, 0.0  ;;  %v4834_v8 = vld [vmem:[%s8223_s22] sm:$0x3] }
 0xbaf   :  { %v4778_v5 = vpop.permute.xlu0 %4777 }
 0xbe8   :  { %v4512_v30 = vpop.f32.mrf.mxu2 }
 0xbe9   :  { %v4513_v47 = vadd.f32 %v4512_v30, %v8120_v25  ;;  %v4635_v30 = vmax.f32 %v4620_v19, 0.0  ;;  %v4790_v19 = vld [vmem:[%s8221_s20 + $0x8] sm:$0xff] }
 0xbeb   :  { %v4536_v26 = vmax.f32 %v4513_v47, 0.0 }
 0xbf0   :  { %v4515_v57 = vpop.f32.mrf.mxu2 }
 0xbf1   :  { %v4516_v21 = vadd.f32 %v4515_v57, %v8117_v45  ;;  %v4611_v57 = vadd.f32 %v4610_v16, %v8035_v40 }
 0xbf3   :  { %v4537_v14 = vmax.f32 %v4516_v21, 0.0 }
 0xbf8   :  { %v4518_v39 = vpop.f32.mrf.mxu2 }
 0xbf9   :  { %v4519_v63 = vadd.f32 %v4518_v39, %v8114_v42  ;;  %v4634_v39 = vmax.f32 %v4617_v24, 0.0 }
 0xbfb   :  { %v4538_v50 = vmax.f32 %v4519_v63, 0.0 }
 0xc00   :  { %v4521_v56 = vpop.f32.mrf.mxu2 }
 0xc01   :  { %v4522_v41 = vadd.f32 %v4521_v56, %v8109_v7  ;;  %v4632_v56 = vmax.f32 %v4611_v57, 0.0 }
 0xc03   :  { %v4539_v61 = vmax.f32 %v4522_v41, 0.0 }
 0xc08   :  { %v4524_v62 = vpop.f32.mrf.mxu2 }
 0xc09   :  { %v4525_v38 = vadd.f32 %v4524_v62, %v8105_v35 }
 0xc0b   :  { %v4540_v55 = vmax.f32 %v4525_v38, 0.0 }
 0xc10   :  { %v4527_v37 = vpop.f32.mrf.mxu2 }
 0xc11   :  { %v4528_v60 = vadd.f32 %v4527_v37, %v8103_v59 }
 0xc13   :  { %v4541_v32 = vmax.f32 %v4528_v60, 0.0 }
 0xc18   :  { %v4530_v49 = vpop.f32.mrf.mxu2 }
 0xc19   :  { %v4531_v20 = vadd.f32 %v4530_v49, %v8101_v15 }
 0xc1b   :  { %v4542_v12 = vmax.f32 %v4531_v20, 0.0 }
 0xc20   :  { %v4533_v44 = vpop.f32.mrf.mxu2 }
 0xc21   :  { %v4534_v53 = vadd.f32 %v4533_v44, %v8099_v54 }
 0xc23   :  { %v4543_v43 = vmax.f32 %v4534_v53, 0.0 }
 0xc25   :  { %4572 = vmatpush.msra.mxu3 %v4543_v43 }
 0xc27   :  { %4573 = vmatpush.msra.mxu3 %v4542_v12  ;;  %v4712_v12 = vld [vmem:[%s8218_s17 + $0x8] sm:$0xff] }
 0xc29   :  { %4574 = vmatpush.msra.mxu3 %v4541_v32 }
 0xc2b   :  { %4575 = vmatpush.msra.mxu3 %v4540_v55  ;;  %v4713_v55 = vld [vmem:[%s8219_s18] sm:$0xff] }
 0xc2d   :  { %4576 = vmatpush.msra.mxu3 %v4539_v61 }
 0xc2f   :  { %4577 = vmatpush.msra.mxu3 %v4538_v50 }
 0xc31   :  { %4578 = vmatpush.msra.mxu3 %v4537_v14  ;;  %v4783_v14 = vpop.permute.xlu2 %4782 }
 0xc33   :  { %4579 = vmatpush.msra.mxu3 %v4536_v26 }
 0xc34   :  { %5393 = vmatmul.msk.f32.vlgmr.msra.gmra.mxu3 %vm4470_vm5, %v8128_v33 }
 0xc35   :  { %4647 = vmatpush.msrb.mxu3 %v4638_v4  ;;  %v4789_v4 = vld [vmem:[%s8221_s20] sm:$0xff]  ;;  %s5479_s20 = smov [#allocation2]  }
 0xc36   :  { %s4903_s22 = sshll.u32 %s5479_s20, 4  ;;  %s4904_s22 = int_to_ptr.vmem [resolvable:$true] %s4903_s22 }
 0xc37   :  { %4648 = vmatpush.msrb.mxu3 %v4637_v46 }
 0xc39   :  { %4649 = vmatpush.msrb.mxu3 %v4636_v11  ;;  %v4796_v11 = vpop.permute.xlu2 %4795 }
 0xc3b   :  { %4650 = vmatpush.msrb.mxu3 %v4635_v30 }
 0xc3c   :  { %5394 = vmatmul.msk.f32.gmra.mxu3 %vm4470_vm5, %v4545_v2 }
 0xc3d   :  { %4651 = vmatpush.msrb.mxu3 %v4634_v39 }
 0xc3f   :  { %4652 = vmatpush.msrb.mxu3 %v4633_v27  ;;  %v4839_v27 = vpop.permute.xlu0 %4838 }
 0xc41   :  { %4653 = vmatpush.msrb.mxu3 %v4632_v56 }
 0xc43   :  { %4654 = vmatpush.msrb.mxu3 %v4631_v0 }
 0xc44   :  { %5404 = vmatmul.msk.f32.vlgmr.msrb.gmra.mxu3 %vm4470_vm5, %v8044_v22 }
 0xc4c   :  { %5405 = vmatmul.msk.f32.gmra.mxu3 %vm4470_vm5, %v8051_v52 }
 0xc54   :  { %5406 = vmatmul.msk.f32.gmra.mxu3 %vm4470_vm5, %v8058_v28  ;;  %v4551_v28 = vpop.permute.xlu1 %4550 }
 0xc5c   :  { %5407 = vmatmul.msk.f32.gmra.mxu3 %vm4470_vm5, %v8065_v10  ;;  %v4801_v24 = vpop.permute.xlu1 %4800 }
 0xc64   :  { %5408 = vmatmul.msk.f32.gmra.mxu3 %vm4470_vm5, %v8072_v18 }
 0xc6c   :  { %5409 = vmatmul.msk.f32.gmra.mxu3 %vm4470_vm5, %v8079_v36 }
 0xc74   :  { %5410 = vmatmul.msk.f32.gmra.mxu3 %vm4470_vm5, %v8086_v23 }
 0xc7c   :  { %5411 = vmatmul.msk.f32.gmra.mxu3 %vm4470_vm5, %v8093_v9 }
 0xcb7   :  { %v4581_v40 = vpop.f32.mrf.mxu3 }
 0xcb8   :  { %v4582_v17 = vadd.f32 %v4581_v40, %v4551_v28 }
 0xcbf   :  { %v4584_v22 = vpop.f32.mrf.mxu3 }
 0xcc0   :  { %v4585_v52 = vadd.f32 %v4584_v22, %v4556_v6 }
 0xcc2   :  { %4764 = vmatpush.msrb.mxu1 %v4585_v52 }
 0xcc4   :  { %4765 = vmatpush.msrb.mxu1 %v4582_v17 }
 0xcc7   :  { %v4656_v10 = vpop.f32.mrf.mxu3 }
 0xccf   :  { %v4659_v16 = vpop.f32.mrf.mxu3 }
 0xcd0   :  { %v4660_v43 = vadd.f32 %v4659_v16, %v8117_v45  ;;  %v4714_v45 = vld [vmem:[%s8219_s18 + $0x8] sm:$0xff] }
 0xcd2   :  { %v4681_v38 = vmax.f32 %v4660_v43, 0.0 }
 0xcd7   :  { %v4662_v18 = vpop.f32.mrf.mxu3 }
 0xcd8   :  { %v4663_v29 = vadd.f32 %v4662_v18, %v8114_v42 }
 0xcdf   :  { %v4665_v34 = vpop.f32.mrf.mxu3 }
 0xce0   :  { %v4666_v20 = vadd.f32 %v4665_v34, %v8109_v7  ;;  %v4711_v7 = vld [vmem:[%s8218_s17] sm:$0xff] }
 0xce1   :  { %5416 = vmatmul.msk.f32.vlgmr.msrb.gmra.mxu1 %vm1959_vm3, %v4711_v7 }
 0xce7   :  { %v4668_v13 = vpop.f32.mrf.mxu3 }
 0xce8   :  { %v4669_v49 = vadd.f32 %v4668_v13, %v8105_v35 }
 0xce9   :  { %5417 = vmatmul.msk.f32.gmra.mxu1 %vm1959_vm3, %v4712_v12 }
 0xcea   :  { %v4684_v60 = vmax.f32 %v4669_v49, 0.0 }
 0xcef   :  { %v4671_v36 = vpop.f32.mrf.mxu3 }
 0xcf0   :  { %v4672_v37 = vadd.f32 %v4671_v36, %v8103_v59  ;;  %v4682_v59 = vmax.f32 %v4663_v29, 0.0 }
 0xcf2   :  { %v4685_v53 = vmax.f32 %v4672_v37, 0.0 }
 0xcf7   :  { %v4674_v62 = vpop.f32.mrf.mxu3 }
 0xcf8   :  { %v4675_v23 = vadd.f32 %v4674_v62, %v8101_v15  ;;  %v4683_v15 = vmax.f32 %v4666_v20, 0.0 }
 0xcfa   :  { %v4686_v44 = vmax.f32 %v4675_v23, 0.0 }
 0xcff   :  { %v4677_v51 = vpop.f32.mrf.mxu3 }
 0xd00   :  { %v4678_v9 = vadd.f32 %v4677_v51, %v8099_v54  ;;  %v4657_v54 = vadd.f32 %v4656_v10, %v8120_v25 }
 0xd02   :  { %v4687_v1 = vmax.f32 %v4678_v9, 0.0  ;;  %v4680_v35 = vmax.f32 %v4657_v54, 0.0 }
 0xd04   :  { %4696 = vmatpush.msrb.mxu2 %v4687_v1 }
 0xd06   :  { %4697 = vmatpush.msrb.mxu2 %v4686_v44 }
 0xd08   :  { %4698 = vmatpush.msrb.mxu2 %v4685_v53 }
 0xd0a   :  { %4699 = vmatpush.msrb.mxu2 %v4684_v60 }
 0xd0c   :  { %4700 = vmatpush.msrb.mxu2 %v4683_v15 }
 0xd0e   :  { %4701 = vmatpush.msrb.mxu2 %v4682_v59 }
 0xd10   :  { %4702 = vmatpush.msrb.mxu2 %v4681_v38 }
 0xd12   :  { %4703 = vmatpush.msrb.mxu2 %v4680_v35 }
 0xd13   :  { %5412 = vmatmul.msk.f32.vlgmr.msrb.gmra.mxu2 %vm4470_vm5, %v8128_v33 }
 0xd1b   :  { %5413 = vmatmul.msk.f32.gmra.mxu2 %vm4470_vm5, %v4545_v2 }
 0xd5e   :  { %v4767_v21 = vpop.f32.mrf.mxu1 }
 0xd66   :  { %v4770_v25 = vpop.f32.mrf.mxu1 }
 0xd96   :  { %v4705_v41 = vpop.f32.mrf.mxu2 }
 0xd97   :  { %v4706_v63 = vadd.f32 %v4705_v41, %v4551_v28 }
 0xd9e   :  { %v4708_v32 = vpop.f32.mrf.mxu2 }
 0xd9f   :  { %v4709_v42 = vadd.f32 %v4708_v32, %v4556_v6 }
 0xda1   :  { %4735 = vmatpush.msra.mxu0 %v4709_v42 }
 0xda3   :  { %4736 = vmatpush.msra.mxu0 %v4706_v63 }
 0xda4   :  { %5414 = vmatmul.msk.f32.vlgmr.msra.gmra.mxu0 %vm1959_vm3, %v4713_v55 }
 0xdac   :  { %5415 = vmatmul.msk.f32.gmra.mxu0 %vm1959_vm3, %v4714_v45 }
 0xe21   :  { %v4738_v61 = vpop.f32.mrf.mxu0 }
 0xe22   :  { %v4768_v3 = vadd.f32 %v4767_v21, %v4738_v61 }
 0xe24   :  { %v4785_v31 = vadd.f32 %v4778_v5, %v4768_v3 }
 0xe26   :  { %v4787_v58 = vmax.f32 %v4785_v31, 0.0 }
 0xe29   :  { %v4741_v47 = vpop.f32.mrf.mxu0 }
 0xe2a   :  { %v4771_v50 = vadd.f32 %v4770_v25, %v4741_v47 }
 0xe2c   :  { %v4786_v26 = vadd.f32 %v4783_v14, %v4771_v50 }
 0xe2e   :  { %v4788_v33 = vmax.f32 %v4786_v26, 0.0 }
 0xe30   :  { %4823 = vmatpush.msra.mxu2 %v4788_v33 }
 0xe32   :  { %4824 = vmatpush.msra.mxu2 %v4787_v58 }
 0xe33   :  { %5418 = vmatmul.msk.f32.vlgmr.msra.gmra.mxu2 %vm1959_vm3, %v4789_v4 }
 0xe3b   :  { %5419 = vmatmul.msk.f32.gmra.mxu2 %vm1959_vm3, %v4790_v19 }
 0xeb6   :  { %v4826_v46 = vpop.f32.mrf.mxu2 }
 0xeb7   :  { %v4827_v30 = vadd.f32 %v4826_v46, %v4796_v11 }
 0xeb9   :  { %v4832_v39 = vmax.f32 %v4827_v30, 0.0 }
 0xebe   :  { %v4829_v48 = vpop.f32.mrf.mxu2 }
 0xebf   :  { %v4830_v2 = vadd.f32 %v4829_v48, %v4801_v24 }
 0xec1   :  { %v4833_v57 = vmax.f32 %v4830_v2, 0.0 }
 0xec3   :  { %4858 = vmatpush.msra.mxu3 %v4833_v57 }
 0xec5   :  { %4859 = vmatpush.msra.mxu3 %v4832_v39 }
 0xec6   :  { %5420 = vmatmul.msk.f32.vlgmr.msra.gmra.mxu3 %vm1959_vm3, %v4834_v8 }
 0xf49   :  { %v4861_v56 = vpop.f32.mrf.mxu3 }
 0xf4a   :  { %v4862_v0 = vadd.f32 %v4861_v56, %v4839_v27 }
 0xf4c   :  { %v4865_v40 = vsel %vm4864_vm6, %v4862_v0, -inf }
 0xf4d   :  { %v4866_v6 = vrot.slane %v4865_v40, 4 }
 0xf4f   :  { %v4867_v22 = vmax.f32 %v4865_v40, %v4866_v6 }
 0xf51   :  { %v4868_v52 = vrot.slane %v4867_v22, 2 }
 0xf53   :  { %v4869_v28 = vmax.f32 %v4867_v22, %v4868_v52 }
 0xf55   :  { %v4870_v17 = vrot.slane %v4869_v28, 1 }
 0xf57   :  { %v4871_v10 = vmax.f32 %v4869_v28, %v4870_v17 }
 0xf59   :  { %v4872_v16 = vsub.f32 %v4862_v0, %v4871_v10 }
 0xf5b   :  { %v4873_v18 = vmul.f32 1.442695, %v4872_v16 }
 0xf5d   :  { %5428 = vpow2.f32 %v4873_v18 }
 0xf63   :  { %v5429_v34 = vpop.eup %5428 }
 0xf64   :  { %v4875_v13 = vsel %vm4864_vm6, %v5429_v34, 0.0 }
 0xf65   :  { %v4876_v36 = vrot.slane %v4875_v13, 4 }
 0xf67   :  { %v4877_v62 = vadd.f32 %v4876_v36, %v4875_v13 }
 0xf69   :  { %v4878_v51 = vrot.slane %v4877_v62, 2 }
 0xf6b   :  { %v4879_v23 = vadd.f32 %v4878_v51, %v4877_v62 }
 0xf6d   :  { %v4880_v9 = vrot.slane %v4879_v23, 1 }
 0xf6f   :  { %v4881_v37 = vadd.f32 %v4880_v9, %v4879_v23 }
 0xf71   :  { %5430 = vrcp.f32 %v4881_v37  ;;  %v4893_v20 = vand.u32 2147483648, %v4881_v37  ;;  %v4891_v29 = vand.u32 2147483647, %v4881_v37  ;;  %vm4887_vm8 = vweird.f32 %v4881_v37 }
 0xf73   :  { %v4894_v43 = vor.u32 1.1754944e-38, %v4893_v20  ;;  %vm4892_vm10 = vcmp.eq.f32.partialorder %v4891_v29, 8.507059e+37 }
 0xf77   :  { %v5431_v1 = vpop.eup %5430 }
 0xf78   :  { %v4883_v49 = vmul.f32 %v5431_v1, %v4881_v37  ;;  %vm4888_vm7 = vweird.f32 %v5431_v1 }
 0xf79   :  { %vm4889_vm9 = vmor %vm4887_vm8, %vm4888_vm7 }
 0xf7a   :  { %v4884_v44 = vsub.f32 1.0, %v4883_v49 }
 0xf7c   :  { %v4885_v53 = vmul.f32 %v5431_v1, %v4884_v44 }
 0xf7e   :  { %v4886_v60 = vadd.f32 %v5431_v1, %v4885_v53 }
 0xf80   :  { %v4890_v15 = vsel %vm4889_vm9, %v5431_v1, %v4886_v60 }
 0xf81   :  { %v4895_v54 = vsel %vm4892_vm10, %v4894_v43, %v4890_v15 }
 0xf82   :  { %v4896_v59 = vmul.f32 %v5429_v34, %v4895_v54 }
 0xf84   :  { %4897 = vst [vmem:[#allocation2] sm:$0x3] %v4896_v59 }
 0xf85   :  { %4908 = dma.vmem_to_hbm [thread:$0]  %s4904_s22, 32, %s4906_s25, [#allocation3]  }
 0xf86   :  { %5476 = dma.done.wait [#allocation3], 32  }
 0xf87   :  { %5477 = vsyncadd [#allocation3], 4294967264 }
 0xf88   :  { %4913 = vsyncpa [#allocation3], 1 }

</bundles_post_ra>
